<compile_context>
chip_gen: v5e
topology: v5e:2x2
jax: 0.10.0
libtpu: 0.0.40
codegen_flags: <defaults>
</compile_context>

<pallas_src>
import functools

import jax
import jax.numpy as jnp
from jax.experimental import pallas as pl
from jax.experimental.pallas import tpu as pltpu


def _round_up(x, m):
    return ((x + m - 1) // m) * m


# --------------------------------------------------------------------------- #
# Fused kernel: normalize + 3x3 conv + ReLU + Gram + U-centred distance matrix #
# --------------------------------------------------------------------------- #

def _model2matrix_kernel(x_ref, w_ref, m_ref, b_ref, msk_ref, o_ref, *, wp, p_out):
    # x_ref  : [B, Cin, P_in]     mean-padded, spatially-flattened raw images
    # w_ref  : [9, B, Cout, Cin]  conv taps with 1/std folded in, batch-broadcast
    # m_ref  : [1, Cin, 1]        per-channel mean
    # b_ref  : [1, Cout, 1]       conv bias
    # msk_ref: [1, 1, P_out]      1.0 on valid output columns, 0.0 on padding
    # o_ref  : [B, B]             U-centred distance matrix
    batch = x_ref.shape[0]
    cout = w_ref.shape[2]

    # Normalize once (mean part; 1/std is folded into the weights) — hoisted
    # out of the tap loop.
    xn = x_ref[...] - m_ref[...]                                    # [B, Cin, P_in]

    # Fused 3x3 conv via 9 shifted-slice batched matmuls (in-VMEM im2col;
    # the [Cin, 9*...] patch tensor is never materialized in HBM).
    acc = jnp.zeros((batch, cout, p_out), jnp.float32)
    for kh in range(3):
        for kw in range(3):
            off = kh * wp + kw
            xk = xn[:, :, off:off + p_out]                          # [B, Cin, P_out]
            wk = w_ref[kh * 3 + kw]                                 # [B, Cout, Cin]
            acc += jax.lax.dot_general(
                wk, xk,
                (((2,), (1,)), ((0,), (0,))),                       # boc,bcp -> bop
                preferred_element_type=jnp.float32)

    # Bias + ReLU, then zero the padded columns so they drop out of the Gram
    # (zero features contribute nothing to any inner product -> no compaction
    # / transpose of the padded conv output is required).
    feat = jnp.maximum(acc + b_ref[...], 0.0) * msk_ref[...]        # [B, Cout, P_out]

    # Gram matrix G[i, j] = <f_i, f_j> over the (Cout, valid-spatial) axes.
    g = jnp.zeros((batch, batch), jnp.float32)
    for c in range(cout):
        fc = feat[:, c, :]                                          # [B, P_out]
        g += jax.lax.dot_general(fc, fc, (((1,), (1,)), ((), ())),
                                 preferred_element_type=jnp.float32)

    # ||fi - fj||^2 = ni + nj - 2*G, then U-centering (P_Distance_Matrix).
    n = batch
    ii = jax.lax.broadcasted_iota(jnp.int32, (n, n), 0)
    jj = jax.lax.broadcasted_iota(jnp.int32, (n, n), 1)
    diag = ii == jj
    gd = jnp.where(diag, g, 0.0)                                    # diag(G) = ||fi||^2
    sq_col = jnp.sum(gd, axis=1, keepdims=True)                     # [n, 1]
    sq_row = jnp.sum(gd, axis=0, keepdims=True)                     # [1, n]
    d2 = jnp.maximum(sq_col + sq_row - 2.0 * g, 0.0)                # clamp fp cancellation
    d2 = jnp.where(diag, 0.0, d2)                                   # exact 0 on diagonal
    a = jnp.sqrt(d2 + 1e-12)
    row = jnp.sum(a, axis=0, keepdims=True) / (n - 2)
    col = jnp.sum(a, axis=1, keepdims=True) / (n - 2)
    tot = jnp.sum(a) / ((n - 1) * (n - 2))
    o_ref[...] = jnp.where(diag, 0.0, a - row - col + tot)          # A * (1 - eye(n))


def model2matrix_forward(x, mean, std, conv_w, conv_b):
    """normalize_X + modelX.forward_features + reshape + P_Distance_Matrix, fused."""
    B, Cin, H, W = x.shape
    Cout = conv_w.shape[0]
    assert B >= 3, "U-centering needs batch >= 3"
    WP = W + 2
    P_out = _round_up(H * WP, 128)            # lane-aligned conv-output width
    o_max = 2 * WP + 2                        # largest tap offset in flat coords
    rows = -(-(P_out + o_max) // WP)          # padded rows so all tap slices stay in-bounds
    P_in = rows * WP

    # Mean-valued padding: after the in-kernel (x - mean) the border is exactly 0,
    # matching the reference's zero padding applied *after* normalization.
    xpad = jnp.broadcast_to(mean.reshape(1, Cin, 1, 1).astype(jnp.float32),
                            (B, Cin, rows, WP))
    xpad = xpad.at[:, :, 1:H + 1, 1:W + 1].set(x.astype(jnp.float32))
    xflat = xpad.reshape(B, Cin, P_in)

    # Fold 1/std into the weights (exact regardless of padding); taps leading,
    # pre-broadcast over the batch so every tap matmul is one batched dot.
    inv_std = (1.0 / std).reshape(1, Cin, 1, 1)
    w9 = (conv_w * inv_std).transpose(2, 3, 0, 1).reshape(9, Cout, Cin)
    w9b = jnp.broadcast_to(w9[:, None], (9, B, Cout, Cin)).astype(jnp.float32)
    mean3 = mean.reshape(1, Cin, 1).astype(jnp.float32)
    bias3 = conv_b.reshape(1, Cout, 1).astype(jnp.float32)

    # Valid-column mask: output pixel (oh, ow) lives at flat column oh*WP + ow.
    p_idx = jnp.arange(P_out)
    mask = ((p_idx < H * WP) & ((p_idx % WP) < W)).astype(jnp.float32)
    mask = mask.reshape(1, 1, P_out)

    kernel = functools.partial(_model2matrix_kernel, wp=WP, p_out=P_out)
    flops = 2 * B * Cout * Cin * 9 * P_out + 2 * B * B * Cout * P_out
    bytes_accessed = 4 * (B * Cin * P_in + 9 * B * Cout * Cin + B * B)

    return pl.pallas_call(
        kernel,
        out_shape=jax.ShapeDtypeStruct((B, B), jnp.float32),
        grid=(1,),
        in_specs=[
            pl.BlockSpec((B, Cin, P_in), lambda i: (0, 0, 0)),
            pl.BlockSpec((9, B, Cout, Cin), lambda i: (0, 0, 0, 0)),
            pl.BlockSpec((1, Cin, 1), lambda i: (0, 0, 0)),
            pl.BlockSpec((1, Cout, 1), lambda i: (0, 0, 0)),
            pl.BlockSpec((1, 1, P_out), lambda i: (0, 0, 0)),
        ],
        out_specs=pl.BlockSpec((B, B), lambda i: (0, 0)),
        compiler_params=pltpu.CompilerParams(
            dimension_semantics=("arbitrary",),
            vmem_limit_bytes=32 * 1024 * 1024,
        ),
        cost_estimate=pl.CostEstimate(flops=flops, transcendentals=B * B,
                                      bytes_accessed=bytes_accessed),
    )(xflat, w9b, mean3, bias3, mask)


# --------------------------------------------------------------------------- #
# Pure-JAX reference (no Pallas) for validation                                 #
# --------------------------------------------------------------------------- #

def _reference_forward(x, mean, std, conv_w, conv_b):
    B = x.shape[0]
    xn = (x - mean.reshape(1, -1, 1, 1)) / std.reshape(1, -1, 1, 1)
    feat = jax.lax.conv_general_dilated(
        xn, conv_w, window_strides=(1, 1), padding=((1, 1), (1, 1)),
        dimension_numbers=("NCHW", "OIHW", "NCHW"),
        precision=jax.lax.Precision.HIGHEST)
    feat = jnp.maximum(feat + conv_b.reshape(1, -1, 1, 1), 0.0)
    f = feat.reshape(B, -1)
    n = B
    diff = f[:, None, :] - f[None, :, :]
    a = jnp.sqrt(jnp.sum(diff * diff, axis=-1) + 1e-12)
    A = (a - jnp.sum(a, axis=0, keepdims=True) / (n - 2)
           - jnp.sum(a, axis=1, keepdims=True) / (n - 2)
           + jnp.sum(a) / ((n - 1) * (n - 2)))
    return A * (1.0 - jnp.eye(n, dtype=A.dtype))


if __name__ == "__main__":
    key = jax.random.PRNGKey(0)
    # batch >= 3 required by the (n-2) / (n-1)(n-2) U-centering denominators
    B, C_in, H, W = 8, 4, 16, 16
    C_out = 8

    k_x, k_w = jax.random.split(key, 2)
    x = jax.random.normal(k_x, (B, C_in, H, W), dtype=jnp.float32)

    # normalize_X parameters (deterministic, per-channel)
    mean = jnp.array([0.485, 0.456, 0.406, 0.5], dtype=jnp.float32)
    std = jnp.array([0.229, 0.224, 0.225, 0.25], dtype=jnp.float32)

    # modelX parameters (synthetic, shapes as nn.Conv2d(4, 8, 3, padding=1))
    conv_w = 0.1 * jax.random.normal(k_w, (C_out, C_in, 3, 3), dtype=jnp.float32)
    conv_b = 0.01 * jnp.arange(C_out, dtype=jnp.float32)

    out = model2matrix_forward(x, mean, std, conv_w, conv_b)
    out = jax.block_until_ready(out)
    assert out.shape == (B, B), out.shape
    assert out.dtype == jnp.float32
    assert bool(jnp.all(jnp.isfinite(out)))

    # Sanity-check against the pure-JAX reference (loose tolerance: the MXU
    # matmul pass structure differs from XLA's conv, and distances ~O(100)
    # pass through the Gram identity before U-centering).
    ref = jax.block_until_ready(_reference_forward(x, mean, std, conv_w, conv_b))
    err = float(jnp.max(jnp.abs(out - ref)))
    assert err < 0.2, f"max abs error vs reference: {err}"

    print("KERNEL_OK")
</pallas_src>

<mosaic_0001>
module attributes {stable_mosaic.version = 11 : i64} {
  func.func @_model2matrix_kernel(%arg0: i32, %arg1: memref<8x4x432xf32, #tpu.memory_space<vmem>>, %arg2: memref<9x8x8x4xf32, #tpu.memory_space<vmem>>, %arg3: memref<1x4x1xf32, #tpu.memory_space<vmem>>, %arg4: memref<1x8x1xf32, #tpu.memory_space<vmem>>, %arg5: memref<1x1x384xf32, #tpu.memory_space<vmem>>, %arg6: memref<8x8xf32, #tpu.memory_space<vmem>>) attributes {dimension_semantics = [#tpu.dimension_semantics<arbitrary>], iteration_bounds = array<i64: 1>, scalar_prefetch = 0 : i64, scratch_operands = 0 : i64, tpu.core_type = #tpu.core_type<tc>, window_params = [{pipeline_mode = #tpu.pipeline_mode<synchronous>, transform_indices = @transform_0, window_bounds = array<i64: 8, 4, 432>}, {pipeline_mode = #tpu.pipeline_mode<synchronous>, transform_indices = @transform_1, window_bounds = array<i64: 9, 8, 8, 4>}, {pipeline_mode = #tpu.pipeline_mode<synchronous>, transform_indices = @transform_2, window_bounds = array<i64: 1, 4, 1>}, {pipeline_mode = #tpu.pipeline_mode<synchronous>, transform_indices = @transform_3, window_bounds = array<i64: 1, 8, 1>}, {pipeline_mode = #tpu.pipeline_mode<synchronous>, transform_indices = @transform_4, window_bounds = array<i64: 1, 1, 384>}, {pipeline_mode = #tpu.pipeline_mode<synchronous>, transform_indices = @transform_5, window_bounds = array<i64: 8, 8>}]} {
    %c0 = arith.constant 0 : index
    %c0_0 = arith.constant 0 : index
    %c0_1 = arith.constant 0 : index
    %0 = vector.load %arg1[%c0, %c0_0, %c0_1] : memref<8x4x432xf32, #tpu.memory_space<vmem>>, vector<8x4x432xf32>
    %c0_2 = arith.constant 0 : index
    %c0_3 = arith.constant 0 : index
    %c0_4 = arith.constant 0 : index
    %1 = vector.load %arg3[%c0_2, %c0_3, %c0_4] : memref<1x4x1xf32, #tpu.memory_space<vmem>>, vector<1x4x1xf32>
    %2 = vector.broadcast %1 : vector<1x4x1xf32> to vector<8x4x432xf32>
    %3 = arith.subf %0, %2 : vector<8x4x432xf32>
    %cst = arith.constant 0.000000e+00 : f32
    %4 = vector.broadcast %cst : f32 to vector<8x8x384xf32>
    %5 = vector.extract_strided_slice %3 {offsets = [0, 0, 0], sizes = [8, 4, 384], strides = [1, 1, 1]} : vector<8x4x432xf32> to vector<8x4x384xf32>
    %c0_5 = arith.constant 0 : index
    %c0_6 = arith.constant 0 : index
    %c0_7 = arith.constant 0 : index
    %c0_8 = arith.constant 0 : index
    %6 = vector.load %arg2[%c0_5, %c0_6, %c0_7, %c0_8] : memref<9x8x8x4xf32, #tpu.memory_space<vmem>>, vector<1x8x8x4xf32>
    %7 = vector.shape_cast %6 : vector<1x8x8x4xf32> to vector<8x8x4xf32>
    %cst_9 = arith.constant dense<0.000000e+00> : vector<8x8x384xf32>
    %8 = tpu.matmul %7, %5, %cst_9 {dimension_numbers = #tpu.dot_dimension_numbers<[2], [1], [1], [2], [0, 0, 0, 1, 1, 2], [0], [0]>} : vector<8x8x4xf32>, vector<8x4x384xf32>, vector<8x8x384xf32> -> vector<8x8x384xf32>
    %9 = arith.addf %4, %8 : vector<8x8x384xf32>
    %10 = vector.extract_strided_slice %3 {offsets = [0, 0, 1], sizes = [8, 4, 384], strides = [1, 1, 1]} : vector<8x4x432xf32> to vector<8x4x384xf32>
    %c1 = arith.constant 1 : index
    %c0_10 = arith.constant 0 : index
    %c0_11 = arith.constant 0 : index
    %c0_12 = arith.constant 0 : index
    %11 = vector.load %arg2[%c1, %c0_10, %c0_11, %c0_12] : memref<9x8x8x4xf32, #tpu.memory_space<vmem>>, vector<1x8x8x4xf32>
    %12 = vector.shape_cast %11 : vector<1x8x8x4xf32> to vector<8x8x4xf32>
    %cst_13 = arith.constant dense<0.000000e+00> : vector<8x8x384xf32>
    %13 = tpu.matmul %12, %10, %cst_13 {dimension_numbers = #tpu.dot_dimension_numbers<[2], [1], [1], [2], [0, 0, 0, 1, 1, 2], [0], [0]>} : vector<8x8x4xf32>, vector<8x4x384xf32>, vector<8x8x384xf32> -> vector<8x8x384xf32>
    %14 = arith.addf %9, %13 : vector<8x8x384xf32>
    %15 = vector.extract_strided_slice %3 {offsets = [0, 0, 2], sizes = [8, 4, 384], strides = [1, 1, 1]} : vector<8x4x432xf32> to vector<8x4x384xf32>
    %c2 = arith.constant 2 : index
    %c0_14 = arith.constant 0 : index
    %c0_15 = arith.constant 0 : index
    %c0_16 = arith.constant 0 : index
    %16 = vector.load %arg2[%c2, %c0_14, %c0_15, %c0_16] : memref<9x8x8x4xf32, #tpu.memory_space<vmem>>, vector<1x8x8x4xf32>
    %17 = vector.shape_cast %16 : vector<1x8x8x4xf32> to vector<8x8x4xf32>
    %cst_17 = arith.constant dense<0.000000e+00> : vector<8x8x384xf32>
    %18 = tpu.matmul %17, %15, %cst_17 {dimension_numbers = #tpu.dot_dimension_numbers<[2], [1], [1], [2], [0, 0, 0, 1, 1, 2], [0], [0]>} : vector<8x8x4xf32>, vector<8x4x384xf32>, vector<8x8x384xf32> -> vector<8x8x384xf32>
    %19 = arith.addf %14, %18 : vector<8x8x384xf32>
    %20 = vector.extract_strided_slice %3 {offsets = [0, 0, 18], sizes = [8, 4, 384], strides = [1, 1, 1]} : vector<8x4x432xf32> to vector<8x4x384xf32>
    %c3 = arith.constant 3 : index
    %c0_18 = arith.constant 0 : index
    %c0_19 = arith.constant 0 : index
    %c0_20 = arith.constant 0 : index
    %21 = vector.load %arg2[%c3, %c0_18, %c0_19, %c0_20] : memref<9x8x8x4xf32, #tpu.memory_space<vmem>>, vector<1x8x8x4xf32>
    %22 = vector.shape_cast %21 : vector<1x8x8x4xf32> to vector<8x8x4xf32>
    %cst_21 = arith.constant dense<0.000000e+00> : vector<8x8x384xf32>
    %23 = tpu.matmul %22, %20, %cst_21 {dimension_numbers = #tpu.dot_dimension_numbers<[2], [1], [1], [2], [0, 0, 0, 1, 1, 2], [0], [0]>} : vector<8x8x4xf32>, vector<8x4x384xf32>, vector<8x8x384xf32> -> vector<8x8x384xf32>
    %24 = arith.addf %19, %23 : vector<8x8x384xf32>
    %25 = vector.extract_strided_slice %3 {offsets = [0, 0, 19], sizes = [8, 4, 384], strides = [1, 1, 1]} : vector<8x4x432xf32> to vector<8x4x384xf32>
    %c4 = arith.constant 4 : index
    %c0_22 = arith.constant 0 : index
    %c0_23 = arith.constant 0 : index
    %c0_24 = arith.constant 0 : index
    %26 = vector.load %arg2[%c4, %c0_22, %c0_23, %c0_24] : memref<9x8x8x4xf32, #tpu.memory_space<vmem>>, vector<1x8x8x4xf32>
    %27 = vector.shape_cast %26 : vector<1x8x8x4xf32> to vector<8x8x4xf32>
    %cst_25 = arith.constant dense<0.000000e+00> : vector<8x8x384xf32>
    %28 = tpu.matmul %27, %25, %cst_25 {dimension_numbers = #tpu.dot_dimension_numbers<[2], [1], [1], [2], [0, 0, 0, 1, 1, 2], [0], [0]>} : vector<8x8x4xf32>, vector<8x4x384xf32>, vector<8x8x384xf32> -> vector<8x8x384xf32>
    %29 = arith.addf %24, %28 : vector<8x8x384xf32>
    %30 = vector.extract_strided_slice %3 {offsets = [0, 0, 20], sizes = [8, 4, 384], strides = [1, 1, 1]} : vector<8x4x432xf32> to vector<8x4x384xf32>
    %c5 = arith.constant 5 : index
    %c0_26 = arith.constant 0 : index
    %c0_27 = arith.constant 0 : index
    %c0_28 = arith.constant 0 : index
    %31 = vector.load %arg2[%c5, %c0_26, %c0_27, %c0_28] : memref<9x8x8x4xf32, #tpu.memory_space<vmem>>, vector<1x8x8x4xf32>
    %32 = vector.shape_cast %31 : vector<1x8x8x4xf32> to vector<8x8x4xf32>
    %cst_29 = arith.constant dense<0.000000e+00> : vector<8x8x384xf32>
    %33 = tpu.matmul %32, %30, %cst_29 {dimension_numbers = #tpu.dot_dimension_numbers<[2], [1], [1], [2], [0, 0, 0, 1, 1, 2], [0], [0]>} : vector<8x8x4xf32>, vector<8x4x384xf32>, vector<8x8x384xf32> -> vector<8x8x384xf32>
    %34 = arith.addf %29, %33 : vector<8x8x384xf32>
    %35 = vector.extract_strided_slice %3 {offsets = [0, 0, 36], sizes = [8, 4, 384], strides = [1, 1, 1]} : vector<8x4x432xf32> to vector<8x4x384xf32>
    %c6 = arith.constant 6 : index
    %c0_30 = arith.constant 0 : index
    %c0_31 = arith.constant 0 : index
    %c0_32 = arith.constant 0 : index
    %36 = vector.load %arg2[%c6, %c0_30, %c0_31, %c0_32] : memref<9x8x8x4xf32, #tpu.memory_space<vmem>>, vector<1x8x8x4xf32>
    %37 = vector.shape_cast %36 : vector<1x8x8x4xf32> to vector<8x8x4xf32>
    %cst_33 = arith.constant dense<0.000000e+00> : vector<8x8x384xf32>
    %38 = tpu.matmul %37, %35, %cst_33 {dimension_numbers = #tpu.dot_dimension_numbers<[2], [1], [1], [2], [0, 0, 0, 1, 1, 2], [0], [0]>} : vector<8x8x4xf32>, vector<8x4x384xf32>, vector<8x8x384xf32> -> vector<8x8x384xf32>
    %39 = arith.addf %34, %38 : vector<8x8x384xf32>
    %40 = vector.extract_strided_slice %3 {offsets = [0, 0, 37], sizes = [8, 4, 384], strides = [1, 1, 1]} : vector<8x4x432xf32> to vector<8x4x384xf32>
    %c7 = arith.constant 7 : index
    %c0_34 = arith.constant 0 : index
    %c0_35 = arith.constant 0 : index
    %c0_36 = arith.constant 0 : index
    %41 = vector.load %arg2[%c7, %c0_34, %c0_35, %c0_36] : memref<9x8x8x4xf32, #tpu.memory_space<vmem>>, vector<1x8x8x4xf32>
    %42 = vector.shape_cast %41 : vector<1x8x8x4xf32> to vector<8x8x4xf32>
    %cst_37 = arith.constant dense<0.000000e+00> : vector<8x8x384xf32>
    %43 = tpu.matmul %42, %40, %cst_37 {dimension_numbers = #tpu.dot_dimension_numbers<[2], [1], [1], [2], [0, 0, 0, 1, 1, 2], [0], [0]>} : vector<8x8x4xf32>, vector<8x4x384xf32>, vector<8x8x384xf32> -> vector<8x8x384xf32>
    %44 = arith.addf %39, %43 : vector<8x8x384xf32>
    %45 = vector.extract_strided_slice %3 {offsets = [0, 0, 38], sizes = [8, 4, 384], strides = [1, 1, 1]} : vector<8x4x432xf32> to vector<8x4x384xf32>
    %c8 = arith.constant 8 : index
    %c0_38 = arith.constant 0 : index
    %c0_39 = arith.constant 0 : index
    %c0_40 = arith.constant 0 : index
    %46 = vector.load %arg2[%c8, %c0_38, %c0_39, %c0_40] : memref<9x8x8x4xf32, #tpu.memory_space<vmem>>, vector<1x8x8x4xf32>
    %47 = vector.shape_cast %46 : vector<1x8x8x4xf32> to vector<8x8x4xf32>
    %cst_41 = arith.constant dense<0.000000e+00> : vector<8x8x384xf32>
    %48 = tpu.matmul %47, %45, %cst_41 {dimension_numbers = #tpu.dot_dimension_numbers<[2], [1], [1], [2], [0, 0, 0, 1, 1, 2], [0], [0]>} : vector<8x8x4xf32>, vector<8x4x384xf32>, vector<8x8x384xf32> -> vector<8x8x384xf32>
    %49 = arith.addf %44, %48 : vector<8x8x384xf32>
    %c0_42 = arith.constant 0 : index
    %c0_43 = arith.constant 0 : index
    %c0_44 = arith.constant 0 : index
    %50 = vector.load %arg4[%c0_42, %c0_43, %c0_44] : memref<1x8x1xf32, #tpu.memory_space<vmem>>, vector<1x8x1xf32>
    %51 = vector.broadcast %50 : vector<1x8x1xf32> to vector<8x8x384xf32>
    %52 = arith.addf %49, %51 : vector<8x8x384xf32>
    %cst_45 = arith.constant 0.000000e+00 : f32
    %53 = vector.broadcast %cst_45 : f32 to vector<8x8x384xf32>
    %54 = arith.maximumf %52, %53 : vector<8x8x384xf32>
    %c0_46 = arith.constant 0 : index
    %c0_47 = arith.constant 0 : index
    %c0_48 = arith.constant 0 : index
    %55 = vector.load %arg5[%c0_46, %c0_47, %c0_48] : memref<1x1x384xf32, #tpu.memory_space<vmem>>, vector<1x1x384xf32>
    %56 = vector.broadcast %55 : vector<1x1x384xf32> to vector<8x8x384xf32>
    %57 = arith.mulf %54, %56 : vector<8x8x384xf32>
    %cst_49 = arith.constant 0.000000e+00 : f32
    %58 = vector.broadcast %cst_49 : f32 to vector<8x8xf32>
    %59 = vector.extract_strided_slice %57 {offsets = [0, 0, 0], sizes = [8, 1, 384], strides = [1, 1, 1]} : vector<8x8x384xf32> to vector<8x1x384xf32>
    %60 = vector.shape_cast %59 : vector<8x1x384xf32> to vector<8x384xf32>
    %cst_50 = arith.constant dense<0.000000e+00> : vector<8x8xf32>
    %61 = tpu.matmul %60, %60, %cst_50 {dimension_numbers = #tpu.dot_dimension_numbers<[1], [1], [0], [0], [0, 0, 1, 0], [], []>} : vector<8x384xf32>, vector<8x384xf32>, vector<8x8xf32> -> vector<8x8xf32>
    %62 = arith.addf %58, %61 : vector<8x8xf32>
    %63 = vector.extract_strided_slice %57 {offsets = [0, 1, 0], sizes = [8, 1, 384], strides = [1, 1, 1]} : vector<8x8x384xf32> to vector<8x1x384xf32>
    %64 = vector.shape_cast %63 : vector<8x1x384xf32> to vector<8x384xf32>
    %cst_51 = arith.constant dense<0.000000e+00> : vector<8x8xf32>
    %65 = tpu.matmul %64, %64, %cst_51 {dimension_numbers = #tpu.dot_dimension_numbers<[1], [1], [0], [0], [0, 0, 1, 0], [], []>} : vector<8x384xf32>, vector<8x384xf32>, vector<8x8xf32> -> vector<8x8xf32>
    %66 = arith.addf %62, %65 : vector<8x8xf32>
    %67 = vector.extract_strided_slice %57 {offsets = [0, 2, 0], sizes = [8, 1, 384], strides = [1, 1, 1]} : vector<8x8x384xf32> to vector<8x1x384xf32>
    %68 = vector.shape_cast %67 : vector<8x1x384xf32> to vector<8x384xf32>
    %cst_52 = arith.constant dense<0.000000e+00> : vector<8x8xf32>
    %69 = tpu.matmul %68, %68, %cst_52 {dimension_numbers = #tpu.dot_dimension_numbers<[1], [1], [0], [0], [0, 0, 1, 0], [], []>} : vector<8x384xf32>, vector<8x384xf32>, vector<8x8xf32> -> vector<8x8xf32>
    %70 = arith.addf %66, %69 : vector<8x8xf32>
    %71 = vector.extract_strided_slice %57 {offsets = [0, 3, 0], sizes = [8, 1, 384], strides = [1, 1, 1]} : vector<8x8x384xf32> to vector<8x1x384xf32>
    %72 = vector.shape_cast %71 : vector<8x1x384xf32> to vector<8x384xf32>
    %cst_53 = arith.constant dense<0.000000e+00> : vector<8x8xf32>
    %73 = tpu.matmul %72, %72, %cst_53 {dimension_numbers = #tpu.dot_dimension_numbers<[1], [1], [0], [0], [0, 0, 1, 0], [], []>} : vector<8x384xf32>, vector<8x384xf32>, vector<8x8xf32> -> vector<8x8xf32>
    %74 = arith.addf %70, %73 : vector<8x8xf32>
    %75 = vector.extract_strided_slice %57 {offsets = [0, 4, 0], sizes = [8, 1, 384], strides = [1, 1, 1]} : vector<8x8x384xf32> to vector<8x1x384xf32>
    %76 = vector.shape_cast %75 : vector<8x1x384xf32> to vector<8x384xf32>
    %cst_54 = arith.constant dense<0.000000e+00> : vector<8x8xf32>
    %77 = tpu.matmul %76, %76, %cst_54 {dimension_numbers = #tpu.dot_dimension_numbers<[1], [1], [0], [0], [0, 0, 1, 0], [], []>} : vector<8x384xf32>, vector<8x384xf32>, vector<8x8xf32> -> vector<8x8xf32>
    %78 = arith.addf %74, %77 : vector<8x8xf32>
    %79 = vector.extract_strided_slice %57 {offsets = [0, 5, 0], sizes = [8, 1, 384], strides = [1, 1, 1]} : vector<8x8x384xf32> to vector<8x1x384xf32>
    %80 = vector.shape_cast %79 : vector<8x1x384xf32> to vector<8x384xf32>
    %cst_55 = arith.constant dense<0.000000e+00> : vector<8x8xf32>
    %81 = tpu.matmul %80, %80, %cst_55 {dimension_numbers = #tpu.dot_dimension_numbers<[1], [1], [0], [0], [0, 0, 1, 0], [], []>} : vector<8x384xf32>, vector<8x384xf32>, vector<8x8xf32> -> vector<8x8xf32>
    %82 = arith.addf %78, %81 : vector<8x8xf32>
    %83 = vector.extract_strided_slice %57 {offsets = [0, 6, 0], sizes = [8, 1, 384], strides = [1, 1, 1]} : vector<8x8x384xf32> to vector<8x1x384xf32>
    %84 = vector.shape_cast %83 : vector<8x1x384xf32> to vector<8x384xf32>
    %cst_56 = arith.constant dense<0.000000e+00> : vector<8x8xf32>
    %85 = tpu.matmul %84, %84, %cst_56 {dimension_numbers = #tpu.dot_dimension_numbers<[1], [1], [0], [0], [0, 0, 1, 0], [], []>} : vector<8x384xf32>, vector<8x384xf32>, vector<8x8xf32> -> vector<8x8xf32>
    %86 = arith.addf %82, %85 : vector<8x8xf32>
    %87 = vector.extract_strided_slice %57 {offsets = [0, 7, 0], sizes = [8, 1, 384], strides = [1, 1, 1]} : vector<8x8x384xf32> to vector<8x1x384xf32>
    %88 = vector.shape_cast %87 : vector<8x1x384xf32> to vector<8x384xf32>
    %cst_57 = arith.constant dense<0.000000e+00> : vector<8x8xf32>
    %89 = tpu.matmul %88, %88, %cst_57 {dimension_numbers = #tpu.dot_dimension_numbers<[1], [1], [0], [0], [0, 0, 1, 0], [], []>} : vector<8x384xf32>, vector<8x384xf32>, vector<8x8xf32> -> vector<8x8xf32>
    %90 = arith.addf %86, %89 : vector<8x8xf32>
    %91 = tpu.iota {dimensions = array<i32: 0>} : vector<8x8xi32>
    %92 = tpu.iota {dimensions = array<i32: 1>} : vector<8x8xi32>
    %93 = arith.cmpi eq, %91, %92 : vector<8x8xi32>
    %cst_58 = arith.constant 0.000000e+00 : f32
    %94 = vector.broadcast %cst_58 : f32 to vector<8x8xf32>
    %95 = arith.select %93, %90, %94 : vector<8x8xi1>, vector<8x8xf32>
    %cst_59 = arith.constant dense<0.000000e+00> : vector<8xf32>
    %96 = vector.multi_reduction <add>, %95, %cst_59 [1] : vector<8x8xf32> to vector<8xf32>
    %97 = vector.shape_cast %96 : vector<8xf32> to vector<8x1xf32>
    %cst_60 = arith.constant dense<0.000000e+00> : vector<8xf32>
    %98 = vector.multi_reduction <add>, %95, %cst_60 [0] : vector<8x8xf32> to vector<8xf32>
    %99 = vector.shape_cast %98 : vector<8xf32> to vector<1x8xf32>
    %100 = vector.broadcast %97 : vector<8x1xf32> to vector<8x8xf32>
    %101 = vector.broadcast %99 : vector<1x8xf32> to vector<8x8xf32>
    %102 = arith.addf %100, %101 : vector<8x8xf32>
    %cst_61 = arith.constant 2.000000e+00 : f32
    %103 = vector.broadcast %cst_61 : f32 to vector<8x8xf32>
    %104 = arith.mulf %103, %90 : vector<8x8xf32>
    %105 = arith.subf %102, %104 : vector<8x8xf32>
    %cst_62 = arith.constant 0.000000e+00 : f32
    %106 = vector.broadcast %cst_62 : f32 to vector<8x8xf32>
    %107 = arith.maximumf %105, %106 : vector<8x8xf32>
    %cst_63 = arith.constant 0.000000e+00 : f32
    %108 = vector.broadcast %cst_63 : f32 to vector<8x8xf32>
    %109 = arith.select %93, %108, %107 : vector<8x8xi1>, vector<8x8xf32>
    %cst_64 = arith.constant 9.99999996E-13 : f32
    %110 = vector.broadcast %cst_64 : f32 to vector<8x8xf32>
    %111 = arith.addf %109, %110 : vector<8x8xf32>
    %112 = math.sqrt %111 : vector<8x8xf32>
    %cst_65 = arith.constant dense<0.000000e+00> : vector<8xf32>
    %113 = vector.multi_reduction <add>, %112, %cst_65 [0] : vector<8x8xf32> to vector<8xf32>
    %114 = vector.shape_cast %113 : vector<8xf32> to vector<1x8xf32>
    %cst_66 = arith.constant 6.000000e+00 : f32
    %115 = vector.broadcast %cst_66 : f32 to vector<1x8xf32>
    %116 = arith.divf %114, %115 : vector<1x8xf32>
    %cst_67 = arith.constant dense<0.000000e+00> : vector<8xf32>
    %117 = vector.multi_reduction <add>, %112, %cst_67 [1] : vector<8x8xf32> to vector<8xf32>
    %118 = vector.shape_cast %117 : vector<8xf32> to vector<8x1xf32>
    %cst_68 = arith.constant 6.000000e+00 : f32
    %119 = vector.broadcast %cst_68 : f32 to vector<8x1xf32>
    %120 = arith.divf %118, %119 : vector<8x1xf32>
    %121 = vector.shape_cast %112 : vector<8x8xf32> to vector<1x8x8xf32>
    %cst_69 = arith.constant dense<0.000000e+00> : vector<1xf32>
    %122 = vector.multi_reduction <add>, %121, %cst_69 [1, 2] : vector<1x8x8xf32> to vector<1xf32>
    %123 = vector.shape_cast %122 : vector<1xf32> to vector<1x1x1xf32>
    %124 = vector.extract %123[0, 0, 0] : f32 from vector<1x1x1xf32>
    %cst_70 = arith.constant 4.200000e+01 : f32
    %125 = arith.divf %124, %cst_70 : f32
    %126 = vector.broadcast %116 : vector<1x8xf32> to vector<8x8xf32>
    %127 = arith.subf %112, %126 : vector<8x8xf32>
    %128 = vector.broadcast %120 : vector<8x1xf32> to vector<8x8xf32>
    %129 = arith.subf %127, %128 : vector<8x8xf32>
    %130 = vector.broadcast %125 : f32 to vector<8x8xf32>
    %131 = arith.addf %129, %130 : vector<8x8xf32>
    %cst_71 = arith.constant 0.000000e+00 : f32
    %132 = vector.broadcast %cst_71 : f32 to vector<8x8xf32>
    %133 = arith.select %93, %132, %131 : vector<8x8xi1>, vector<8x8xf32>
    %c0_72 = arith.constant 0 : index
    %c0_73 = arith.constant 0 : index
    %134 = vector.load %arg6[%c0_72, %c0_73] : memref<8x8xf32, #tpu.memory_space<vmem>>, vector<8x8xf32>
    tpu.vector_store %arg6[%c0_72, %c0_73], %133 {strides = array<i32>} : memref<8x8xf32, #tpu.memory_space<vmem>>, vector<8x8xf32>,
    return
  }
  func.func @transform_0(%arg0: i32) -> (i32, i32, i32) {
    %c0_i32 = arith.constant 0 : i32
    %c0_i32_0 = arith.constant 0 : i32
    %c0_i32_1 = arith.constant 0 : i32
    %c0_i32_2 = arith.constant 0 : i32
    return %c0_i32, %c0_i32_0, %c0_i32_1 : i32, i32, i32
  }
  func.func @transform_1(%arg0: i32) -> (i32, i32, i32, i32) {
    %c0_i32 = arith.constant 0 : i32
    %c0_i32_0 = arith.constant 0 : i32
    %c0_i32_1 = arith.constant 0 : i32
    %c0_i32_2 = arith.constant 0 : i32
    %c0_i32_3 = arith.constant 0 : i32
    return %c0_i32, %c0_i32_0, %c0_i32_1, %c0_i32_2 : i32, i32, i32, i32
  }
  func.func @transform_2(%arg0: i32) -> (i32, i32, i32) {
    %c0_i32 = arith.constant 0 : i32
    %c0_i32_0 = arith.constant 0 : i32
    %c0_i32_1 = arith.constant 0 : i32
    %c0_i32_2 = arith.constant 0 : i32
    return %c0_i32, %c0_i32_0, %c0_i32_1 : i32, i32, i32
  }
  func.func @transform_3(%arg0: i32) -> (i32, i32, i32) {
    %c0_i32 = arith.constant 0 : i32
    %c0_i32_0 = arith.constant 0 : i32
    %c0_i32_1 = arith.constant 0 : i32
    %c0_i32_2 = arith.constant 0 : i32
    return %c0_i32, %c0_i32_0, %c0_i32_1 : i32, i32, i32
  }
  func.func @transform_4(%arg0: i32) -> (i32, i32, i32) {
    %c0_i32 = arith.constant 0 : i32
    %c0_i32_0 = arith.constant 0 : i32
    %c0_i32_1 = arith.constant 0 : i32
    %c0_i32_2 = arith.constant 0 : i32
    return %c0_i32, %c0_i32_0, %c0_i32_1 : i32, i32, i32
  }
  func.func @transform_5(%arg0: i32) -> (i32, i32) {
    %c0_i32 = arith.constant 0 : i32
    %c0_i32_0 = arith.constant 0 : i32
    %c0_i32_1 = arith.constant 0 : i32
    return %c0_i32, %c0_i32_0 : i32, i32
  }
}

</mosaic_0001>

<bundles_post_ra>
// kernel: tpu_custom_call.1
= control target key start
LH: loop header
LB: loop body
LE: loop exit
PB: predicated region body
PF: predicated region fallthrough
CT: control target
= control target key end

     0   :  { %v8105_v1 = vmov 0   ;;  %s11577_s0 = inlined_call_operand.vmem [shape: f32[8,4,432], index: 0, kind: input, shape index: {}]   ;;  %s11578_s1 = inlined_call_operand.vmem [shape: f32[9,8,8,4], index: 1, kind: input, shape index: {}]   ;;  %s11579_s2 = inlined_call_operand.vmem [shape: f32[1,4,1], index: 2, kind: input, shape index: {}]   ;;  %s11580_s3 = inlined_call_operand.vmem [shape: f32[1,8,1], index: 3, kind: input, shape index: {}]   ;;  %s11581_s4 = inlined_call_operand.vmem [shape: f32[1,1,384], index: 4, kind: input, shape index: {}]   ;;  %s11582_s5 = inlined_call_operand.hbm [shape: f32[8,8], index: 5, kind: output, shape index: {}]  }
   0x1   :  { %v37_v0 = vld [vmem:[%s11579_s2] sm:$0xf]  ;;  %8071 = vset.pattern.permute.xlu0 %v8105_v1  ;;  %8072 = vset.pattern.permute.xlu2 %v8105_v1 }
   0x2   :  { %10 = vsyncpa [#allocation3], 0  ;;  %40 = vperm.xlu0 %8071, %v37_v0   ;;  %v8106_v2 = vmov 839922192   ;;  %v21_v6 = vld [vmem:[%s11577_s0] sm:$0xff]  ;;  %v22_v7 = vld [vmem:[%s11577_s0 + $0x8] sm:$0xff] }
   0x3   :  { %v43_v3 = vunpack.c.l.s4 %v8106_v2  ;;  %v23_v11 = vld [vmem:[%s11577_s0 + $0x10] sm:$0xff]  ;;  %v24_v12 = vld [vmem:[%s11577_s0 + $0x18] sm:$0xff]  ;;  %s8107_s27 = smov 127   ;;  %v25_v19 = vld [vmem:[%s11577_s0 + $0x20] sm:$0xff]  ;;  %vm97_vm0 = vcmask 1039360   ;;  %vm105_vm1 = vcmask 1043456  }
   0x4   :  { %v26_v20 = vld [vmem:[%s11577_s0 + $0x28] sm:$0xff]  ;;  %v27_v27 = vld [vmem:[%s11577_s0 + $0x30] sm:$0xff]  ;;  %v28_v28 = vld [vmem:[%s11577_s0 + $0x38] sm:$0xff]  ;;  %vm101_vm2 = vcmask 31744   ;;  %s8108_s6 = smov 126   ;;  %s8109_s24 = smov 110  }
   0x5   :  { %v44_v4 = vunpack.c.0.s8 %v43_v3  ;;  %v29_v35 = vld [vmem:[%s11577_s0 + $0x40] sm:$0xff]  ;;  %v30_v36 = vld [vmem:[%s11577_s0 + $0x48] sm:$0xff]  ;;  %v31_v43 = vld [vmem:[%s11577_s0 + $0x50] sm:$0xff]  ;;  %vm1419_vm3 = vcmask 1031168   ;;  %s8110_s19 = smov 109   ;;  %vm2149_vm4 = vcmask 900096  }
   0x6   :  { %v32_v44 = vld [vmem:[%s11577_s0 + $0x58] sm:$0xff]  ;;  %v33_v51 = vld [vmem:[%s11577_s0 + $0x60] sm:$0xff]  ;;  %v34_v52 = vld [vmem:[%s11577_s0 + $0x68] sm:$0xff]  ;;  %s8111_s9 = smov 108   ;;  %vm2879_vm5 = vcmask 891904   ;;  %s8112_s2 = smov 92  }
   0x7   :  { %v35_v59 = vld [vmem:[%s11577_s0 + $0x70] sm:$0xff]  ;;  %v36_v60 = vld [vmem:[%s11577_s0 + $0x78] sm:$0xff]  ;;  %vm3609_vm6 = vcmask 883712   ;;  %s8113_s16 = smov 91   ;;  %vm4339_vm7 = vcmask 752640   ;;  %vm5069_vm8 = vcmask 744448  }
   0x8   :  { %vm5799_vm9 = vcmask 736256   ;;  %vm6616_vm10 = vcmask 1041409   ;;  %vm6619_vm11 = vcmask 1042434   ;;  %vm6622_vm12 = vcmask 1043459   ;;  %s8117_s20 = smov [#allocation2]  }
   0x9   :  { %vm6625_vm13 = vcmask 1044484   ;;  %vm6628_vm14 = vcmask 1045509   ;;  %vm6631_vm15 = vcmask 1046534   ;;  %s7547_s21 = sshll.u32 %s8117_s20, 4  ;;  %s7548_s21 = int_to_ptr.vmem [resolvable:$true] %s7547_s21 }
  0x74   :  { %v41_v5 = vpop.permute.xlu0 %40 }
  0x75   :  { %v8157_v8 = vperm.slane %v41_v5, %v44_v4 }
  0x77   :  { %v8160_v9 = vsub.f32 %v21_v6, %v8157_v8  ;;  %v8163_v10 = vsub.f32 %v22_v7, %v8157_v8  ;;  %v8174_v13 = vsub.f32 %v23_v11, %v8157_v8  ;;  %v8177_v16 = vsub.f32 %v24_v12, %v8157_v8 }
  0x78   :  { %v8191_v21 = vsub.f32 %v25_v19, %v8157_v8  ;;  %v8195_v24 = vsub.f32 %v26_v20, %v8157_v8  ;;  %v8209_v29 = vsub.f32 %v27_v27, %v8157_v8  ;;  %v8213_v32 = vsub.f32 %v28_v28, %v8157_v8 }
  0x79   :  { %82 = vst [vmem:[#allocation1] ss:$2 sm:$0xff] %v8160_v9  ;;  %v8226_v37 = vsub.f32 %v29_v35, %v8157_v8  ;;  %v8230_v40 = vsub.f32 %v30_v36, %v8157_v8  ;;  %v8244_v45 = vsub.f32 %v31_v43, %v8157_v8  ;;  %v8247_v48 = vsub.f32 %v32_v44, %v8157_v8 }
  0x7a   :  { %84 = vst [vmem:[#allocation1 + $0x10] ss:$2 sm:$0xff] %v8163_v10  ;;  %v8261_v53 = vsub.f32 %v33_v51, %v8157_v8  ;;  %v8265_v56 = vsub.f32 %v34_v52, %v8157_v8  ;;  %v8279_v61 = vsub.f32 %v35_v59, %v8157_v8  ;;  %v8282_v0 = vsub.f32 %v36_v60, %v8157_v8 }
  0x80   :  { %v85_v14 = vld.sshfl [vmem:[#allocation1] sm:$0xff pattern:$0x75316420]  ;;  %v86_v15 = vld.sshfl [vmem:[#allocation1 + $0x8] sm:$0xff pattern:$0x75316420] }
  0x81   :  { %v87_v17 = vld.sshfl [vmem:[#allocation1 + $0x10] sm:$0xff pattern:$0x75316420]  ;;  %v88_v18 = vld.sshfl [vmem:[#allocation1 + $0x18] sm:$0xff pattern:$0x75316420]  ;;  %91 = vrot.lane.b32.xlu2 %v86_v15, %s8107_s27  ;;  %89 = vrot.lane.b32.xlu1 %v85_v14, %s8107_s27 }
  0x82   :  { %174 = vst [vmem:[#allocation1] ss:$2 sm:$0xff] %v8174_v13  ;;  %95 = vrot.lane.b32.xlu0 %v88_v18, %s8107_s27 }
  0x83   :  { %176 = vst [vmem:[#allocation1 + $0x10] ss:$2 sm:$0xff] %v8177_v16 }
  0x89   :  { %v177_v22 = vld.sshfl [vmem:[#allocation1] sm:$0xff pattern:$0x75316420]  ;;  %v178_v23 = vld.sshfl [vmem:[#allocation1 + $0x8] sm:$0xff pattern:$0x75316420]  ;;  %93 = vrot.lane.b32.xlu2 %v87_v17, %s8107_s27 }
  0x8a   :  { %v179_v25 = vld.sshfl [vmem:[#allocation1 + $0x10] sm:$0xff pattern:$0x75316420]  ;;  %v180_v26 = vld.sshfl [vmem:[#allocation1 + $0x18] sm:$0xff pattern:$0x75316420]  ;;  %183 = vrot.lane.b32.xlu1 %v178_v23, %s8107_s27  ;;  %181 = vrot.lane.b32.xlu0 %v177_v22, %s8107_s27 }
  0x8b   :  { %263 = vst [vmem:[#allocation1] ss:$2 sm:$0xff] %v8191_v21 }
  0x8c   :  { %265 = vst [vmem:[#allocation1 + $0x10] ss:$2 sm:$0xff] %v8195_v24 }
  0x91   :  { %187 = vrot.lane.b32.xlu2 %v180_v26, %s8107_s27 }
  0x92   :  { %v266_v30 = vld.sshfl [vmem:[#allocation1] sm:$0xff pattern:$0x75316420]  ;;  %v267_v31 = vld.sshfl [vmem:[#allocation1 + $0x8] sm:$0xff pattern:$0x75316420]  ;;  %185 = vrot.lane.b32.xlu0 %v179_v25, %s8107_s27 }
  0x93   :  { %v268_v33 = vld.sshfl [vmem:[#allocation1 + $0x10] sm:$0xff pattern:$0x75316420]  ;;  %v269_v34 = vld.sshfl [vmem:[#allocation1 + $0x18] sm:$0xff pattern:$0x75316420]  ;;  %272 = vrot.lane.b32.xlu1 %v267_v31, %s8107_s27 }
  0x94   :  { %352 = vst [vmem:[#allocation1] ss:$2 sm:$0xff] %v8209_v29 }
  0x95   :  { %354 = vst [vmem:[#allocation1 + $0x10] ss:$2 sm:$0xff] %v8213_v32 }
  0x99   :  { %274 = vrot.lane.b32.xlu2 %v268_v33, %s8107_s27 }
  0x9b   :  { %v355_v38 = vld.sshfl [vmem:[#allocation1] sm:$0xff pattern:$0x75316420]  ;;  %v356_v39 = vld.sshfl [vmem:[#allocation1 + $0x8] sm:$0xff pattern:$0x75316420]  ;;  %270 = vrot.lane.b32.xlu1 %v266_v30, %s8107_s27 }
  0x9c   :  { %v357_v41 = vld.sshfl [vmem:[#allocation1 + $0x10] sm:$0xff pattern:$0x75316420]  ;;  %v358_v42 = vld.sshfl [vmem:[#allocation1 + $0x18] sm:$0xff pattern:$0x75316420] }
  0x9d   :  { %441 = vst [vmem:[#allocation1] ss:$2 sm:$0xff] %v8226_v37  ;;  %363 = vrot.lane.b32.xlu0 %v357_v41, %s8107_s27 }
  0x9e   :  { %443 = vst [vmem:[#allocation1 + $0x10] ss:$2 sm:$0xff] %v8230_v40 }
  0xa1   :  { %276 = vrot.lane.b32.xlu2 %v269_v34, %s8107_s27  ;;  %v7558_v34 = vld [vmem:[%s11578_s1 + $0x40] sm:$0xff] }
  0xa3   :  { %365 = vrot.lane.b32.xlu1 %v358_v42, %s8107_s27 }
  0xa4   :  { %v444_v46 = vld.sshfl [vmem:[#allocation1] sm:$0xff pattern:$0x75316420]  ;;  %v445_v47 = vld.sshfl [vmem:[#allocation1 + $0x8] sm:$0xff pattern:$0x75316420] }
  0xa5   :  { %v446_v49 = vld.sshfl [vmem:[#allocation1 + $0x10] sm:$0xff pattern:$0x75316420]  ;;  %v447_v50 = vld.sshfl [vmem:[#allocation1 + $0x18] sm:$0xff pattern:$0x75316420]  ;;  %361 = vrot.lane.b32.xlu0 %v356_v39, %s8107_s27 }
  0xa6   :  { %530 = vst [vmem:[#allocation1] ss:$2 sm:$0xff] %v8244_v45 }
  0xa7   :  { %532 = vst [vmem:[#allocation1 + $0x10] ss:$2 sm:$0xff] %v8247_v48 }
  0xa9   :  { %450 = vrot.lane.b32.xlu2 %v445_v47, %s8107_s27 }
  0xab   :  { %359 = vrot.lane.b32.xlu1 %v355_v38, %s8107_s27 }
  0xad   :  { %v533_v54 = vld.sshfl [vmem:[#allocation1] sm:$0xff pattern:$0x75316420]  ;;  %v534_v55 = vld.sshfl [vmem:[#allocation1 + $0x8] sm:$0xff pattern:$0x75316420]  ;;  %452 = vrot.lane.b32.xlu0 %v446_v49, %s8107_s27 }
  0xae   :  { %v535_v57 = vld.sshfl [vmem:[#allocation1 + $0x10] sm:$0xff pattern:$0x75316420]  ;;  %v536_v58 = vld.sshfl [vmem:[#allocation1 + $0x18] sm:$0xff pattern:$0x75316420] }
  0xaf   :  { %619 = vst [vmem:[#allocation1] ss:$2 sm:$0xff] %v8261_v53 }
  0xb0   :  { %621 = vst [vmem:[#allocation1 + $0x10] ss:$2 sm:$0xff] %v8265_v56 }
  0xb1   :  { %537 = vrot.lane.b32.xlu2 %v533_v54, %s8107_s27  ;;  %v7559_v54 = vld [vmem:[%s11578_s1 + $0x48] sm:$0xff] }
  0xb3   :  { %448 = vrot.lane.b32.xlu1 %v444_v46, %s8107_s27 }
  0xb5   :  { %539 = vrot.lane.b32.xlu0 %v534_v55, %s8107_s27 }
  0xb6   :  { %v622_v62 = vld.sshfl [vmem:[#allocation1] sm:$0xff pattern:$0x75316420]  ;;  %v623_v63 = vld.sshfl [vmem:[#allocation1 + $0x8] sm:$0xff pattern:$0x75316420] }
  0xb7   :  { %v624_v1 = vld.sshfl [vmem:[#allocation1 + $0x10] sm:$0xff pattern:$0x75316420]  ;;  %v625_v2 = vld.sshfl [vmem:[#allocation1 + $0x18] sm:$0xff pattern:$0x75316420] }
  0xb8   :  { %708 = vst [vmem:[#allocation1] ss:$2 sm:$0xff] %v8279_v61 }
  0xb9   :  { %710 = vst [vmem:[#allocation1 + $0x10] ss:$2 sm:$0xff] %v8282_v0  ;;  %628 = vrot.lane.b32.xlu2 %v623_v63, %s8107_s27 }
  0xbb   :  { %454 = vrot.lane.b32.xlu1 %v447_v50, %s8107_s27 }
  0xbd   :  { %543 = vrot.lane.b32.xlu0 %v536_v58, %s8107_s27 }
  0xbf   :  { %v711_v3 = vld.sshfl [vmem:[#allocation1] sm:$0xff pattern:$0x75316420]  ;;  %v712_v4 = vld.sshfl [vmem:[#allocation1 + $0x8] sm:$0xff pattern:$0x75316420] }
  0xc0   :  { %v713_v5 = vld.sshfl [vmem:[#allocation1 + $0x10] sm:$0xff pattern:$0x75316420]  ;;  %v714_v6 = vld.sshfl [vmem:[#allocation1 + $0x18] sm:$0xff pattern:$0x75316420] }
  0xc1   :  { %795 = vst [vmem:[#allocation1] ss:$2 sm:$0xff] %v8160_v9  ;;  %626 = vrot.lane.b32.xlu2 %v622_v62, %s8107_s27 }
  0xc2   :  { %797 = vst [vmem:[#allocation1 + $0x10] ss:$2 sm:$0xff] %v8163_v10 }
  0xc3   :  { %541 = vrot.lane.b32.xlu1 %v535_v57, %s8107_s27 }
  0xc5   :  { %630 = vrot.lane.b32.xlu0 %v624_v1, %s8107_s27 }
  0xc8   :  { %v8294_v7 = vld.sshfl [vmem:[#allocation1] sm:$0xff pattern:$0x75316420]  ;;  %v8296_v8 = vld.sshfl [vmem:[#allocation1 + $0x8] sm:$0xff pattern:$0x75316420] }
  0xc9   :  { %v8298_v11 = vld.sshfl [vmem:[#allocation1 + $0x10] sm:$0xff pattern:$0x75316420]  ;;  %870 = vst [vmem:[#allocation1] ss:$2 sm:$0xff] %v8174_v13  ;;  %721 = vrot.lane.b32.xlu2 %v714_v6, %s8107_s27 }
  0xca   :  { %872 = vst [vmem:[#allocation1 + $0x10] ss:$2 sm:$0xff] %v8177_v16 }
  0xcb   :  { %719 = vrot.lane.b32.xlu1 %v713_v5, %s8107_s27 }
  0xcd   :  { %632 = vrot.lane.b32.xlu0 %v625_v2, %s8107_s27 }
  0xd0   :  { %v8305_v12 = vld.sshfl [vmem:[#allocation1] sm:$0xff pattern:$0x75316420]  ;;  %v8307_v14 = vld.sshfl [vmem:[#allocation1 + $0x8] sm:$0xff pattern:$0x75316420] }
  0xd1   :  { %v8309_v15 = vld.sshfl [vmem:[#allocation1 + $0x10] sm:$0xff pattern:$0x75316420]  ;;  %945 = vst [vmem:[#allocation1] ss:$2 sm:$0xff] %v8191_v21  ;;  %715 = vrot.lane.b32.xlu2 %v711_v3, %s8107_s27 }
  0xd2   :  { %947 = vst [vmem:[#allocation1 + $0x10] ss:$2 sm:$0xff] %v8195_v24 }
  0xd3   :  { %717 = vrot.lane.b32.xlu1 %v712_v4, %s8107_s27  ;;  %v7560_v4 = vld [vmem:[%s11578_s1 + $0x50] sm:$0xff] }
  0xd8   :  { %v8315_v17 = vld.sshfl [vmem:[#allocation1] sm:$0xff pattern:$0x75316420]  ;;  %v8317_v18 = vld.sshfl [vmem:[#allocation1 + $0x8] sm:$0xff pattern:$0x75316420] }
  0xd9   :  { %v8319_v19 = vld.sshfl [vmem:[#allocation1 + $0x10] sm:$0xff pattern:$0x75316420]  ;;  %1020 = vst [vmem:[#allocation1] ss:$2 sm:$0xff] %v8209_v29 }
  0xda   :  { %1022 = vst [vmem:[#allocation1 + $0x10] ss:$2 sm:$0xff] %v8213_v32 }
  0xdb   :  { %v92_v20 = vpop.permute.xlu2 %91 }
  0xe0   :  { %v8323_v22 = vld.sshfl [vmem:[#allocation1] sm:$0xff pattern:$0x75316420]  ;;  %v8325_v23 = vld.sshfl [vmem:[#allocation1 + $0x8] sm:$0xff pattern:$0x75316420] }
  0xe1   :  { %v8327_v25 = vld.sshfl [vmem:[#allocation1 + $0x10] sm:$0xff pattern:$0x75316420]  ;;  %1095 = vst [vmem:[#allocation1] ss:$2 sm:$0xff] %v8226_v37 }
  0xe2   :  { %1097 = vst [vmem:[#allocation1 + $0x10] ss:$2 sm:$0xff] %v8230_v40 }
  0xe3   :  { %v94_v26 = vpop.permute.xlu2 %93 }
  0xe4   :  { %v99_v27 = vsel %vm97_vm0, %v92_v20, %v94_v26 }
  0xe5   :  { %7568 = vmatpush.msk.msra.mxu1 %vm105_vm1, %v99_v27 }
  0xe6   :  { %7569 = vmatmul.msk.f32.vlgmr.msra.gmra.mxu1 %vm101_vm2, %v7558_v34 }
  0xe8   :  { %v8333_v28 = vld.sshfl [vmem:[#allocation1] sm:$0xff pattern:$0x75316420]  ;;  %v8335_v30 = vld.sshfl [vmem:[#allocation1 + $0x8] sm:$0xff pattern:$0x75316420] }
  0xe9   :  { %v8337_v31 = vld.sshfl [vmem:[#allocation1 + $0x10] sm:$0xff pattern:$0x75316420]  ;;  %1170 = vst [vmem:[#allocation1] ss:$2 sm:$0xff] %v8244_v45 }
  0xea   :  { %1172 = vst [vmem:[#allocation1 + $0x10] ss:$2 sm:$0xff] %v8247_v48 }
  0xeb   :  { %v188_v33 = vpop.permute.xlu2 %187 }
  0xf0   :  { %v8344_v35 = vld.sshfl [vmem:[#allocation1] sm:$0xff pattern:$0x75316420]  ;;  %v8346_v36 = vld.sshfl [vmem:[#allocation1 + $0x8] sm:$0xff pattern:$0x75316420] }
  0xf1   :  { %v8349_v38 = vld.sshfl [vmem:[#allocation1 + $0x10] sm:$0xff pattern:$0x75316420]  ;;  %1245 = vst [vmem:[#allocation1] ss:$2 sm:$0xff] %v8261_v53 }
  0xf2   :  { %1247 = vst [vmem:[#allocation1 + $0x10] ss:$2 sm:$0xff] %v8265_v56 }
  0xf3   :  { %v90_v39 = vpop.permute.xlu1 %89  ;;  %v275_v49 = vpop.permute.xlu2 %274 }
  0xf4   :  { %v96_v41 = vpop.permute.xlu0 %95  ;;  %v98_v42 = vsel %vm97_vm0, %v90_v39, %v92_v20 }
  0xf5   :  { %7566 = vmatpush.msk.msra.mxu0 %vm105_vm1, %v98_v42  ;;  %v100_v43 = vsel %vm97_vm0, %v94_v26, %v96_v41 }
  0xf6   :  { %7570 = vmatpush.msk.msra.mxu2 %vm105_vm1, %v100_v43  ;;  %7567 = vmatmul.msk.f32.vlgmr.msra.gmra.mxu0 %vm101_vm2, %v7558_v34 }
  0xf7   :  { %7571 = vmatmul.msk.f32.vlgmr.msra.gmra.mxu2 %vm101_vm2, %v7558_v34 }
  0xf8   :  { %v8359_v44 = vld.sshfl [vmem:[#allocation1] sm:$0xff pattern:$0x75316420]  ;;  %v8361_v46 = vld.sshfl [vmem:[#allocation1 + $0x8] sm:$0xff pattern:$0x75316420] }
  0xf9   :  { %v8363_v47 = vld.sshfl [vmem:[#allocation1 + $0x10] sm:$0xff pattern:$0x75316420]  ;;  %1320 = vst [vmem:[#allocation1] ss:$2 sm:$0xff] %v8279_v61 }
  0xfa   :  { %1322 = vst [vmem:[#allocation1 + $0x10] ss:$2 sm:$0xff] %v8282_v0 }
  0xfb   :  { %v277_v59 = vpop.permute.xlu2 %276 }
  0xfc   :  { %v184_v50 = vpop.permute.xlu1 %183  ;;  %v182_v51 = vpop.permute.xlu0 %181  ;;  %v280_v2 = vsel %vm97_vm0, %v275_v49, %v277_v59 }
  0xfd   :  { %v189_v52 = vsel %vm97_vm0, %v182_v51, %v184_v50  ;;  %v7561_v51 = vld [vmem:[%s11578_s1 + $0x58] sm:$0xff] }
  0xfe   :  { %7572 = vmatpush.msk.msra.mxu3 %vm105_vm1, %v189_v52 }
  0xff   :  { %7573 = vmatmul.msk.f32.vlgmr.msra.gmra.mxu3 %vm101_vm2, %v7559_v54 }
 0x100   :  { %v8372_v55 = vld.sshfl [vmem:[#allocation1] sm:$0xff pattern:$0x75316420]  ;;  %v8374_v57 = vld.sshfl [vmem:[#allocation1 + $0x8] sm:$0xff pattern:$0x75316420] }
 0x101   :  { %v8377_v58 = vld.sshfl [vmem:[#allocation1 + $0x10] sm:$0xff pattern:$0x75316420]  ;;  %1404 = vst [vmem:[#allocation1] ss:$2 sm:$0xff] %v8160_v9 }
 0x102   :  { %1406 = vst [vmem:[#allocation1 + $0x10] ss:$2 sm:$0xff] %v8163_v10 }
 0x104   :  { %v186_v60 = vpop.permute.xlu0 %185 }
 0x105   :  { %v273_v62 = vpop.permute.xlu1 %272  ;;  %v190_v63 = vsel %vm97_vm0, %v184_v50, %v186_v60  ;;  %v191_v1 = vsel %vm97_vm0, %v186_v60, %v188_v33  ;;  %v451_v33 = vpop.permute.xlu2 %450 }
 0x106   :  { %7574 = vmatpush.msk.msrb.mxu0 %vm105_vm1, %v190_v63  ;;  %7576 = vmatpush.msk.msrb.mxu1 %vm105_vm1, %v191_v1  ;;  %v279_v3 = vsel %vm97_vm0, %v273_v62, %v275_v49 }
 0x107   :  { %7580 = vmatpush.msk.msrb.mxu3 %vm105_vm1, %v279_v3  ;;  %7575 = vmatmul.msk.f32.vlgmr.msrb.gmra.mxu0 %vm101_vm2, %v7559_v54 }
 0x108   :  { %7582 = vmatpush.msk.msra.mxu0 %vm105_vm1, %v280_v2  ;;  %v1407_v5 = vld.sshfl [vmem:[#allocation1] sm:$0xff pattern:$0x75316420]  ;;  %v1408_v6 = vld.sshfl [vmem:[#allocation1 + $0x8] sm:$0xff pattern:$0x75316420]  ;;  %7577 = vmatmul.msk.f32.vlgmr.msrb.gmra.mxu1 %vm101_vm2, %v7559_v54 }
 0x109   :  { %v1409_v20 = vld.sshfl [vmem:[#allocation1 + $0x10] sm:$0xff pattern:$0x75316420]  ;;  %v1410_v26 = vld.sshfl [vmem:[#allocation1 + $0x18] sm:$0xff pattern:$0x75316420]  ;;  %1413 = vrot.lane.b32.xlu0 %v1408_v6, %s8108_s6  ;;  %1411 = vrot.lane.b32.xlu2 %v1407_v5, %s8108_s6 }
 0x10a   :  { %1492 = vst [vmem:[#allocation1] ss:$2 sm:$0xff] %v8174_v13  ;;  %1415 = vrot.lane.b32.xlu1 %v1409_v20, %s8108_s6  ;;  %7581 = vmatmul.msk.f32.vlgmr.msrb.gmra.mxu3 %vm101_vm2, %v7560_v4 }
 0x10b   :  { %1494 = vst [vmem:[#allocation1 + $0x10] ss:$2 sm:$0xff] %v8177_v16 }
 0x10d   :  { %v271_v27 = vpop.permute.xlu1 %270  ;;  %v538_v59 = vpop.permute.xlu2 %537 }
 0x10e   :  { %v278_v34 = vsel %vm97_vm0, %v271_v27, %v273_v62 }
 0x10f   :  { %v364_v39 = vpop.permute.xlu0 %363  ;;  %7578 = vmatpush.msk.msrb.mxu2 %vm105_vm1, %v278_v34  ;;  %7583 = vmatmul.msk.f32.vlgmr.msra.gmra.mxu0 %vm101_vm2, %v7560_v4 }
 0x110   :  { %7579 = vmatmul.msk.f32.vlgmr.msrb.gmra.mxu2 %vm101_vm2, %v7560_v4 }
 0x111   :  { %1417 = vrot.lane.b32.xlu2 %v1410_v26, %s8108_s6  ;;  %v1496_v41 = vld.sshfl [vmem:[#allocation1 + $0x8] sm:$0xff pattern:$0x75316420]  ;;  %v1495_v42 = vld.sshfl [vmem:[#allocation1] sm:$0xff pattern:$0x75316420] }
 0x112   :  { %v1497_v43 = vld.sshfl [vmem:[#allocation1 + $0x10] sm:$0xff pattern:$0x75316420]  ;;  %v1498_v49 = vld.sshfl [vmem:[#allocation1 + $0x18] sm:$0xff pattern:$0x75316420]  ;;  %1501 = vrot.lane.b32.xlu1 %v1496_v41, %s8108_s6  ;;  %1499 = vrot.lane.b32.xlu0 %v1495_v42, %s8108_s6 }
 0x113   :  { %1581 = vst [vmem:[#allocation1 + $0x10] ss:$2 sm:$0xff] %v8195_v24  ;;  %v7562_v42 = vld [vmem:[%s11578_s1 + $0x60] sm:$0xff] }
 0x114   :  { %1579 = vst [vmem:[#allocation1] ss:$2 sm:$0xff] %v8191_v21 }
 0x115   :  { %v366_v50 = vpop.permute.xlu1 %365  ;;  %v629_v27 = vpop.permute.xlu2 %628 }
 0x116   :  { %v369_v52 = vsel %vm97_vm0, %v364_v39, %v366_v50  ;;  %v7563_v50 = vld [vmem:[%s11578_s1 + $0x68] sm:$0xff] }
 0x117   :  { %v362_v54 = vpop.permute.xlu0 %361  ;;  %7588 = vmatpush.msk.msra.mxu3 %vm105_vm1, %v369_v52 }
 0x118   :  { %v368_v60 = vsel %vm97_vm0, %v362_v54, %v364_v39  ;;  %7589 = vmatmul.msk.f32.vlgmr.msra.gmra.mxu3 %vm101_vm2, %v7561_v51 }
 0x119   :  { %1503 = vrot.lane.b32.xlu2 %v1497_v43, %s8108_s6  ;;  %7586 = vmatpush.msk.msra.mxu2 %vm105_vm1, %v368_v60 }
 0x11a   :  { %v1584_v62 = vld.sshfl [vmem:[#allocation1 + $0x10] sm:$0xff pattern:$0x75316420]  ;;  %v1585_v63 = vld.sshfl [vmem:[#allocation1 + $0x18] sm:$0xff pattern:$0x75316420]  ;;  %1505 = vrot.lane.b32.xlu1 %v1498_v49, %s8108_s6  ;;  %7587 = vmatmul.msk.f32.vlgmr.msra.gmra.mxu2 %vm101_vm2, %v7561_v51 }
 0x11b   :  { %1668 = vst [vmem:[#allocation1 + $0x10] ss:$2 sm:$0xff] %v8213_v32  ;;  %v1583_v1 = vld.sshfl [vmem:[#allocation1 + $0x8] sm:$0xff pattern:$0x75316420] }
 0x11c   :  { %1588 = vrot.lane.b32.xlu0 %v1583_v1, %s8108_s6  ;;  %v1582_v2 = vld.sshfl [vmem:[#allocation1] sm:$0xff pattern:$0x75316420] }
 0x11d   :  { %1666 = vst [vmem:[#allocation1] ss:$2 sm:$0xff] %v8209_v29  ;;  %v360_v3 = vpop.permute.xlu1 %359 }
 0x11e   :  { %v367_v4 = vsel %vm97_vm0, %v360_v3, %v362_v54  ;;  %v627_v54 = vpop.permute.xlu2 %626 }
 0x11f   :  { %v453_v5 = vpop.permute.xlu0 %452  ;;  %7584 = vmatpush.msk.msra.mxu1 %vm105_vm1, %v367_v4 }
 0x120   :  { %v457_v6 = vsel %vm97_vm0, %v451_v33, %v453_v5  ;;  %7585 = vmatmul.msk.f32.vlgmr.msra.gmra.mxu1 %vm101_vm2, %v7561_v51 }
 0x121   :  { %7592 = vmatpush.msk.msrb.mxu1 %vm105_vm1, %v457_v6 }
 0x122   :  { %v1671_v20 = vld.sshfl [vmem:[#allocation1 + $0x10] sm:$0xff pattern:$0x75316420]  ;;  %v1672_v26 = vld.sshfl [vmem:[#allocation1 + $0x18] sm:$0xff pattern:$0x75316420]  ;;  %1590 = vrot.lane.b32.xlu1 %v1584_v62, %s8108_s6 }
 0x123   :  { %1755 = vst [vmem:[#allocation1 + $0x10] ss:$2 sm:$0xff] %v8230_v40  ;;  %1677 = vrot.lane.b32.xlu2 %v1671_v20, %s8108_s6 }
 0x124   :  { %1586 = vrot.lane.b32.xlu0 %v1582_v2, %s8108_s6  ;;  %v1670_v34 = vld.sshfl [vmem:[#allocation1 + $0x8] sm:$0xff pattern:$0x75316420]  ;;  %v1669_v39 = vld.sshfl [vmem:[#allocation1] sm:$0xff pattern:$0x75316420] }
 0x125   :  { %v449_v41 = vpop.permute.xlu1 %448  ;;  %1753 = vst [vmem:[#allocation1] ss:$2 sm:$0xff] %v8226_v37 }
 0x126   :  { %v456_v43 = vsel %vm97_vm0, %v449_v41, %v451_v33 }
 0x127   :  { %v540_v49 = vpop.permute.xlu0 %539  ;;  %7590 = vmatpush.msk.msrb.mxu0 %vm105_vm1, %v456_v43 }
 0x128   :  { %v545_v51 = vsel %vm97_vm0, %v538_v59, %v540_v49  ;;  %7591 = vmatmul.msk.f32.vlgmr.msrb.gmra.mxu0 %vm101_vm2, %v7562_v42  ;;  %7593 = vmatmul.msk.f32.vlgmr.msrb.gmra.mxu1 %vm101_vm2, %v7562_v42 }
 0x129   :  { %7596 = vmatpush.msk.msrb.mxu3 %vm105_vm1, %v545_v51  ;;  %v722_v51 = vpop.permute.xlu2 %721 }
 0x12a   :  { %1592 = vrot.lane.b32.xlu1 %v1585_v63, %s8108_s6  ;;  %v1758_v52 = vld.sshfl [vmem:[#allocation1 + $0x10] sm:$0xff pattern:$0x75316420]  ;;  %7597 = vmatmul.msk.f32.vlgmr.msrb.gmra.mxu3 %vm101_vm2, %v7563_v50  ;;  %v1759_v33 = vld.sshfl [vmem:[#allocation1 + $0x18] sm:$0xff pattern:$0x75316420]  ;;  %v634_v63 = vsel %vm97_vm0, %v627_v54, %v629_v27 }
 0x12b   :  { %1675 = vrot.lane.b32.xlu2 %v1670_v34, %s8108_s6  ;;  %1842 = vst [vmem:[#allocation1 + $0x10] ss:$2 sm:$0xff] %v8247_v48 }
 0x12c   :  { %1679 = vrot.lane.b32.xlu0 %v1672_v26, %s8108_s6  ;;  %v1757_v59 = vld.sshfl [vmem:[#allocation1 + $0x8] sm:$0xff pattern:$0x75316420]  ;;  %v1756_v60 = vld.sshfl [vmem:[#allocation1] sm:$0xff pattern:$0x75316420] }
 0x12d   :  { %v455_v62 = vpop.permute.xlu1 %454  ;;  %1840 = vst [vmem:[#allocation1] ss:$2 sm:$0xff] %v8244_v45 }
 0x12e   :  { %v458_v1 = vsel %vm97_vm0, %v453_v5, %v455_v62 }
 0x12f   :  { %v544_v2 = vpop.permute.xlu0 %543  ;;  %7594 = vmatpush.msk.msrb.mxu2 %vm105_vm1, %v458_v1  ;;  %v7565_v1 = vld [vmem:[%s11578_s1 + $0x78] sm:$0xff] }
 0x130   :  { %7595 = vmatmul.msk.f32.vlgmr.msrb.gmra.mxu2 %vm101_vm2, %v7562_v42  ;;  %v7564_v42 = vld [vmem:[%s11578_s1 + $0x70] sm:$0xff] }
 0x131   :  { %7602 = vmatpush.msk.msra.mxu2 %vm105_vm1, %v634_v63 }
 0x132   :  { %1762 = vrot.lane.b32.xlu1 %v1757_v59, %s8108_s6  ;;  %v1846_v3 = vld.sshfl [vmem:[#allocation1 + $0x18] sm:$0xff pattern:$0x75316420]  ;;  %v8457_v4 = vld.sshfl [vmem:[#allocation1 + $0x10] sm:$0xff pattern:$0x75316420] }
 0x133   :  { %1764 = vrot.lane.b32.xlu2 %v1758_v52, %s8108_s6  ;;  %1929 = vst [vmem:[#allocation1 + $0x10] ss:$2 sm:$0xff] %v8265_v56 }
 0x134   :  { %1673 = vrot.lane.b32.xlu0 %v1669_v39, %s8108_s6  ;;  %v1844_v5 = vld.sshfl [vmem:[#allocation1 + $0x8] sm:$0xff pattern:$0x75316420]  ;;  %v1843_v6 = vld.sshfl [vmem:[#allocation1] sm:$0xff pattern:$0x75316420] }
 0x135   :  { %1927 = vst [vmem:[#allocation1] ss:$2 sm:$0xff] %v8261_v53  ;;  %v542_v20 = vpop.permute.xlu1 %541 }
 0x136   :  { %v546_v26 = vsel %vm97_vm0, %v540_v49, %v542_v20  ;;  %v547_v34 = vsel %vm97_vm0, %v542_v20, %v544_v2 }
 0x137   :  { %v631_v41 = vpop.permute.xlu0 %630  ;;  %7598 = vmatpush.msk.msra.mxu0 %vm105_vm1, %v546_v26  ;;  %7600 = vmatpush.msk.msra.mxu1 %vm105_vm1, %v547_v34  ;;  %v68_v26 = vld [vmem:[%s11578_s1 + $0x28] sm:$0xff] }
 0x138   :  { %v635_v39 = vsel %vm97_vm0, %v629_v27, %v631_v41  ;;  %7599 = vmatmul.msk.f32.vlgmr.msra.gmra.mxu0 %vm101_vm2, %v7563_v50  ;;  %7601 = vmatmul.msk.f32.vlgmr.msra.gmra.mxu1 %vm101_vm2, %v7563_v50 }
 0x139   :  { %7604 = vmatpush.msk.msra.mxu3 %vm105_vm1, %v635_v39  ;;  %7603 = vmatmul.msk.f32.vlgmr.msra.gmra.mxu2 %vm101_vm2, %v7564_v42  ;;  %v70_v39 = vld [vmem:[%s11578_s1 + $0x38] sm:$0xff] }
 0x13a   :  { %1847 = vrot.lane.b32.xlu1 %v1843_v6, %s8108_s6  ;;  %7605 = vmatmul.msk.f32.vlgmr.msra.gmra.mxu3 %vm101_vm2, %v7564_v42  ;;  %v1932_v43 = vld.sshfl [vmem:[#allocation1 + $0x10] sm:$0xff pattern:$0x75316420]  ;;  %v8477_v49 = vld.sshfl [vmem:[#allocation1 + $0x18] sm:$0xff pattern:$0x75316420] }
 0x13b   :  { %1849 = vrot.lane.b32.xlu2 %v1844_v5, %s8108_s6  ;;  %2016 = vst [vmem:[#allocation1 + $0x10] ss:$2 sm:$0xff] %v8282_v0  ;;  %v716_v5 = vpop.permute.xlu2 %715 }
 0x13c   :  { %1760 = vrot.lane.b32.xlu0 %v1756_v60, %s8108_s6  ;;  %v1931_v27 = vld.sshfl [vmem:[#allocation1 + $0x8] sm:$0xff pattern:$0x75316420]  ;;  %v1930_v50 = vld.sshfl [vmem:[#allocation1] sm:$0xff pattern:$0x75316420] }
 0x13d   :  { %v720_v52 = vpop.permute.xlu1 %719  ;;  %2014 = vst [vmem:[#allocation1] ss:$2 sm:$0xff] %v8279_v61 }
 0x13e   :  { %v725_v54 = vsel %vm97_vm0, %v720_v52, %v722_v51 }
 0x13f   :  { %v633_v59 = vpop.permute.xlu0 %632  ;;  %7612 = vmatpush.msk.msrb.mxu3 %vm105_vm1, %v725_v54 }
 0x140   :  { %v636_v62 = vsel %vm97_vm0, %v631_v41, %v633_v59 }
 0x141   :  { %7620 = vmatpush.msk.msra.mxu3 %vm105_vm1, %v8305_v12  ;;  %7606 = vmatpush.msk.msrb.mxu0 %vm105_vm1, %v636_v62 }
 0x142   :  { %1936 = vrot.lane.b32.xlu1 %v1931_v27, %s8108_s6  ;;  %7607 = vmatmul.msk.f32.vlgmr.msrb.gmra.mxu0 %vm101_vm2, %v7564_v42  ;;  %v2019_v60 = vld.sshfl [vmem:[#allocation1 + $0x10] sm:$0xff pattern:$0x75316420]  ;;  %v2020_v63 = vld.sshfl [vmem:[#allocation1 + $0x18] sm:$0xff pattern:$0x75316420] }
 0x143   :  { %1853 = vrot.lane.b32.xlu2 %v1846_v3, %s8108_s6  ;;  %7613 = vmatmul.msk.f32.vlgmr.msrb.gmra.mxu3 %vm101_vm2, %v7565_v1  ;;  %2136 = vst [vmem:[#allocation1 + $0x10] ss:$2 sm:$0xff] %v8163_v10 }
 0x144   :  { %1766 = vrot.lane.b32.xlu0 %v1759_v33, %s8108_s6  ;;  %7614 = vmatpush.msk.msra.mxu0 %vm105_vm1, %v8294_v7  ;;  %v2018_v12 = vld.sshfl [vmem:[#allocation1 + $0x8] sm:$0xff pattern:$0x75316420]  ;;  %v2017_v2 = vld.sshfl [vmem:[#allocation1] sm:$0xff pattern:$0x75316420] }
 0x145   :  { %7628 = vmatpush.msk.msrb.mxu3 %vm105_vm1, %v8317_v18  ;;  %v718_v6 = vpop.permute.xlu1 %717  ;;  %2134 = vst [vmem:[#allocation1] ss:$2 sm:$0xff] %v8160_v9  ;;  %v63_v7 = vld [vmem:[%s11578_s1] sm:$0xff] }
 0x146   :  { %7622 = vmatpush.msk.msrb.mxu0 %vm105_vm1, %v8307_v14  ;;  %v723_v3 = vsel %vm97_vm0, %v716_v5, %v718_v6  ;;  %v724_v20 = vsel %vm97_vm0, %v718_v6, %v720_v52  ;;  %v64_v14 = vld [vmem:[%s11578_s1 + $0x8] sm:$0xff]  ;;  %v7662_v6 = vld [vmem:[%s11578_s1 + $0x80] sm:$0xff]  ;;  %vm6634_vm0 = vcmask 1047559  }
 0x147   :  { %7608 = vmatpush.msk.msrb.mxu1 %vm105_vm1, %v723_v3  ;;  %7610 = vmatpush.msk.msrb.mxu2 %vm105_vm1, %v724_v20 }
 0x148   :  { %7609 = vmatmul.msk.f32.vlgmr.msrb.gmra.mxu1 %vm101_vm2, %v7565_v1  ;;  %7611 = vmatmul.msk.f32.vlgmr.msrb.gmra.mxu2 %vm101_vm2, %v7565_v1 }
 0x149   :  { %7616 = vmatpush.msk.msra.mxu1 %vm105_vm1, %v8296_v8  ;;  %7618 = vmatpush.msk.msra.mxu2 %vm105_vm1, %v8298_v11 }
 0x14a   :  { %1934 = vrot.lane.b32.xlu1 %v1930_v50, %s8108_s6  ;;  %7615 = vmatmul.msk.f32.vlgmr.msra.gmra.mxu0 %vm101_vm2, %v63_v7  ;;  %v8523_v18 = vld.sshfl [vmem:[#allocation1 + $0x10] sm:$0xff pattern:$0x75316420]  ;;  %v8525_v33 = vld.sshfl [vmem:[#allocation1 + $0x18] sm:$0xff pattern:$0x75316420] }
 0x14b   :  { %1938 = vrot.lane.b32.xlu2 %v1932_v43, %s8108_s6  ;;  %7621 = vmatmul.msk.f32.vlgmr.msra.gmra.mxu3 %vm101_vm2, %v64_v14  ;;  %2224 = vst [vmem:[#allocation1 + $0x10] ss:$2 sm:$0xff] %v8177_v16 }
 0x14c   :  { %1851 = vrot.lane.b32.xlu0 %v8457_v4, %s8108_s6  ;;  %7630 = vmatpush.msk.msra.mxu0 %vm105_vm1, %v8319_v19  ;;  %v2138_v8 = vld.sshfl [vmem:[#allocation1 + $0x8] sm:$0xff pattern:$0x75316420]  ;;  %v2137_v11 = vld.sshfl [vmem:[#allocation1] sm:$0xff pattern:$0x75316420] }
 0x14d   :  { %7636 = vmatpush.msk.msra.mxu3 %vm105_vm1, %v8327_v25  ;;  %7624 = vmatpush.msk.msrb.mxu1 %vm105_vm1, %v8309_v15  ;;  %2222 = vst [vmem:[#allocation1] ss:$2 sm:$0xff] %v8174_v13  ;;  %v65_v19 = vld [vmem:[%s11578_s1 + $0x10] sm:$0xff]  ;;  %v66_v25 = vld [vmem:[%s11578_s1 + $0x18] sm:$0xff]  ;;  %v67_v4 = vld [vmem:[%s11578_s1 + $0x20] sm:$0xff] }
 0x14e   :  { %7626 = vmatpush.msk.msrb.mxu2 %vm105_vm1, %v8315_v17 }
 0x150   :  { %7617 = vmatmul.msk.f32.vlgmr.msra.gmra.mxu1 %vm101_vm2, %v63_v7  ;;  %7619 = vmatmul.msk.f32.vlgmr.msra.gmra.mxu2 %vm101_vm2, %v63_v7  ;;  %v7663_v7 = vld [vmem:[%s11578_s1 + $0x88] sm:$0xff] }
 0x151   :  { %7632 = vmatpush.msk.msra.mxu1 %vm105_vm1, %v8323_v22  ;;  %7634 = vmatpush.msk.msra.mxu2 %vm105_vm1, %v8325_v23 }
 0x152   :  { %2027 = vrot.lane.b32.xlu1 %v2020_v63, %s8108_s6  ;;  %7623 = vmatmul.msk.f32.vlgmr.msrb.gmra.mxu0 %vm101_vm2, %v64_v14  ;;  %v8552_v15 = vld.sshfl [vmem:[#allocation1 + $0x10] sm:$0xff pattern:$0x75316420]  ;;  %v8554_v17 = vld.sshfl [vmem:[#allocation1 + $0x18] sm:$0xff pattern:$0x75316420] }
 0x153   :  { %1940 = vrot.lane.b32.xlu2 %v8477_v49, %s8108_s6  ;;  %7629 = vmatmul.msk.f32.vlgmr.msrb.gmra.mxu3 %vm101_vm2, %v65_v19  ;;  %2311 = vst [vmem:[#allocation1 + $0x10] ss:$2 sm:$0xff] %v8195_v24 }
 0x154   :  { %2025 = vrot.lane.b32.xlu0 %v2019_v60, %s8108_s6  ;;  %7638 = vmatpush.msk.msrb.mxu0 %vm105_vm1, %v8333_v28  ;;  %v2225_v22 = vld.sshfl [vmem:[#allocation1] sm:$0xff pattern:$0x75316420]  ;;  %v2226_v23 = vld.sshfl [vmem:[#allocation1 + $0x8] sm:$0xff pattern:$0x75316420] }
 0x155   :  { %7644 = vmatpush.msk.msrb.mxu3 %vm105_vm1, %v8344_v35  ;;  %2309 = vst [vmem:[#allocation1] ss:$2 sm:$0xff] %v8191_v21 }
 0x158   :  { %7625 = vmatmul.msk.f32.vlgmr.msrb.gmra.mxu1 %vm101_vm2, %v64_v14  ;;  %7627 = vmatmul.msk.f32.vlgmr.msrb.gmra.mxu2 %vm101_vm2, %v65_v19 }
 0x159   :  { %7640 = vmatpush.msk.msrb.mxu1 %vm105_vm1, %v8335_v30  ;;  %7642 = vmatpush.msk.msrb.mxu2 %vm105_vm1, %v8337_v31 }
 0x15a   :  { %2021 = vrot.lane.b32.xlu1 %v2017_v2, %s8108_s6  ;;  %7631 = vmatmul.msk.f32.vlgmr.msra.gmra.mxu0 %vm101_vm2, %v65_v19  ;;  %v8577_v28 = vld.sshfl [vmem:[#allocation1 + $0x10] sm:$0xff pattern:$0x75316420]  ;;  %v8579_v35 = vld.sshfl [vmem:[#allocation1 + $0x18] sm:$0xff pattern:$0x75316420] }
 0x15b   :  { %2143 = vrot.lane.b32.xlu2 %v2138_v8, %s8109_s24  ;;  %7637 = vmatmul.msk.f32.vlgmr.msra.gmra.mxu3 %vm101_vm2, %v66_v25  ;;  %2398 = vst [vmem:[#allocation1 + $0x10] ss:$2 sm:$0xff] %v8213_v32 }
 0x15c   :  { %2023 = vrot.lane.b32.xlu0 %v2018_v12, %s8108_s6  ;;  %7646 = vmatpush.msk.msra.mxu0 %vm105_vm1, %v8346_v36  ;;  %v2313_v30 = vld.sshfl [vmem:[#allocation1 + $0x8] sm:$0xff pattern:$0x75316420]  ;;  %v2312_v31 = vld.sshfl [vmem:[#allocation1] sm:$0xff pattern:$0x75316420] }
 0x15d   :  { %7652 = vmatpush.msk.msra.mxu3 %vm105_vm1, %v8361_v46  ;;  %2396 = vst [vmem:[#allocation1] ss:$2 sm:$0xff] %v8209_v29  ;;  %s8114_s6 = smov 90  }
 0x160   :  { %7633 = vmatmul.msk.f32.vlgmr.msra.gmra.mxu1 %vm101_vm2, %v66_v25  ;;  %7635 = vmatmul.msk.f32.vlgmr.msra.gmra.mxu2 %vm101_vm2, %v66_v25 }
 0x161   :  { %7648 = vmatpush.msk.msra.mxu1 %vm105_vm1, %v8349_v38  ;;  %7650 = vmatpush.msk.msra.mxu2 %vm105_vm1, %v8359_v44 }
 0x162   :  { %2141 = vrot.lane.b32.xlu1 %v2137_v11, %s8109_s24  ;;  %7639 = vmatmul.msk.f32.vlgmr.msrb.gmra.mxu0 %vm101_vm2, %v67_v4  ;;  %v2401_v36 = vld.sshfl [vmem:[#allocation1 + $0x10] sm:$0xff pattern:$0x75316420]  ;;  %v2402_v46 = vld.sshfl [vmem:[#allocation1 + $0x18] sm:$0xff pattern:$0x75316420] }
 0x163   :  { %2229 = vrot.lane.b32.xlu2 %v2225_v22, %s8109_s24  ;;  %v1412_v34 = vpop.permute.xlu2 %1411  ;;  %7645 = vmatmul.msk.f32.vlgmr.msrb.gmra.mxu3 %vm101_vm2, %v68_v26  ;;  %2485 = vst [vmem:[#allocation1 + $0x10] ss:$2 sm:$0xff] %v8230_v40 }
 0x164   :  { %2145 = vrot.lane.b32.xlu0 %v8523_v18, %s8109_s24  ;;  %7654 = vmatpush.msk.msrb.mxu0 %vm105_vm1, %v8363_v47  ;;  %v2400_v38 = vld.sshfl [vmem:[#allocation1 + $0x8] sm:$0xff pattern:$0x75316420]  ;;  %v2399_v44 = vld.sshfl [vmem:[#allocation1] sm:$0xff pattern:$0x75316420] }
 0x165   :  { %7660 = vmatpush.msk.msrb.mxu3 %vm105_vm1, %v8377_v58  ;;  %2483 = vst [vmem:[#allocation1] ss:$2 sm:$0xff] %v8226_v37  ;;  %v69_v47 = vld [vmem:[%s11578_s1 + $0x30] sm:$0xff] }
 0x168   :  { %7641 = vmatmul.msk.f32.vlgmr.msrb.gmra.mxu1 %vm101_vm2, %v67_v4  ;;  %7643 = vmatmul.msk.f32.vlgmr.msrb.gmra.mxu2 %vm101_vm2, %v67_v4 }
 0x169   :  { %7656 = vmatpush.msk.msrb.mxu1 %vm105_vm1, %v8372_v55  ;;  %7658 = vmatpush.msk.msrb.mxu2 %vm105_vm1, %v8374_v57 }
 0x16a   :  { %2147 = vrot.lane.b32.xlu1 %v8525_v33, %s8109_s24  ;;  %7647 = vmatmul.msk.f32.vlgmr.msra.gmra.mxu0 %vm101_vm2, %v68_v26  ;;  %v8626_v58 = vld.sshfl [vmem:[#allocation1 + $0x10] sm:$0xff pattern:$0x75316420]  ;;  %v8628_v41 = vld.sshfl [vmem:[#allocation1 + $0x18] sm:$0xff pattern:$0x75316420] }
 0x16b   :  { %2318 = vrot.lane.b32.xlu2 %v2313_v30, %s8109_s24  ;;  %v1418_v42 = vpop.permute.xlu2 %1417  ;;  %7653 = vmatmul.msk.f32.vlgmr.msra.gmra.mxu3 %vm101_vm2, %v69_v47  ;;  %2572 = vst [vmem:[#allocation1 + $0x10] ss:$2 sm:$0xff] %v8247_v48 }
 0x16c   :  { %2231 = vrot.lane.b32.xlu0 %v2226_v23, %s8109_s24  ;;  %v8634_v55 = vld.sshfl [vmem:[#allocation1 + $0x8] sm:$0xff pattern:$0x75316420]  ;;  %v8636_v57 = vld.sshfl [vmem:[#allocation1] sm:$0xff pattern:$0x75316420] }
 0x16d   :  { %2570 = vst [vmem:[#allocation1] ss:$2 sm:$0xff] %v8244_v45 }
 0x170   :  { %7649 = vmatmul.msk.f32.vlgmr.msra.gmra.mxu1 %vm101_vm2, %v68_v26  ;;  %7651 = vmatmul.msk.f32.vlgmr.msra.gmra.mxu2 %vm101_vm2, %v69_v47 }
 0x172   :  { %2233 = vrot.lane.b32.xlu1 %v8552_v15, %s8109_s24  ;;  %7655 = vmatmul.msk.f32.vlgmr.msrb.gmra.mxu0 %vm101_vm2, %v69_v47  ;;  %v8647_v43 = vld.sshfl [vmem:[#allocation1 + $0x10] sm:$0xff pattern:$0x75316420]  ;;  %v8649_v49 = vld.sshfl [vmem:[#allocation1 + $0x18] sm:$0xff pattern:$0x75316420] }
 0x173   :  { %2316 = vrot.lane.b32.xlu2 %v2312_v31, %s8109_s24  ;;  %v1504_v51 = vpop.permute.xlu2 %1503  ;;  %7661 = vmatmul.msk.f32.vlgmr.msrb.gmra.mxu3 %vm101_vm2, %v70_v39  ;;  %2659 = vst [vmem:[#allocation1 + $0x10] ss:$2 sm:$0xff] %v8265_v56 }
 0x174   :  { %2235 = vrot.lane.b32.xlu0 %v8554_v17, %s8109_s24  ;;  %v2574_v27 = vld.sshfl [vmem:[#allocation1 + $0x8] sm:$0xff pattern:$0x75316420]  ;;  %v8656_v50 = vld.sshfl [vmem:[#allocation1] sm:$0xff pattern:$0x75316420] }
 0x175   :  { %2657 = vst [vmem:[#allocation1] ss:$2 sm:$0xff] %v8261_v53 }
 0x178   :  { %7657 = vmatmul.msk.f32.vlgmr.msrb.gmra.mxu1 %vm101_vm2, %v70_v39  ;;  %7659 = vmatmul.msk.f32.vlgmr.msrb.gmra.mxu2 %vm101_vm2, %v70_v39 }
 0x17a   :  { %2407 = vrot.lane.b32.xlu1 %v2401_v36, %s8109_s24  ;;  %v8662_v52 = vld.sshfl [vmem:[#allocation1 + $0x10] sm:$0xff pattern:$0x75316420]  ;;  %v8664_v54 = vld.sshfl [vmem:[#allocation1 + $0x18] sm:$0xff pattern:$0x75316420] }
 0x17b   :  { %2409 = vrot.lane.b32.xlu2 %v2402_v46, %s8109_s24  ;;  %v1414_v59 = vpop.permute.xlu0 %1413  ;;  %2746 = vst [vmem:[#allocation1 + $0x10] ss:$2 sm:$0xff] %v8282_v0  ;;  %v7664_v36 = vld [vmem:[%s11578_s1 + $0x90] sm:$0xff] }
 0x17c   :  { %2320 = vrot.lane.b32.xlu0 %v8577_v28, %s8109_s24  ;;  %v1416_v62 = vpop.permute.xlu1 %1415  ;;  %v1420_v1 = vsel %vm1419_vm3, %v1412_v34, %v1414_v59  ;;  %v8671_v60 = vld.sshfl [vmem:[#allocation1 + $0x8] sm:$0xff pattern:$0x75316420]  ;;  %v8673_v63 = vld.sshfl [vmem:[#allocation1] sm:$0xff pattern:$0x75316420] }
 0x17d   :  { %v1422_v12 = vsel %vm1419_vm3, %v1416_v62, %v1418_v42  ;;  %v1421_v2 = vsel %vm1419_vm3, %v1414_v59, %v1416_v62  ;;  %v8677_v5 = vpop.permute.xlu2 %1677  ;;  %7670 = vmatpush.msk.msra.mxu0 %vm105_vm1, %v1420_v1  ;;  %2744 = vst [vmem:[#allocation1] ss:$2 sm:$0xff] %v8279_v61 }
 0x17e   :  { %7672 = vmatpush.msk.msra.mxu1 %vm105_vm1, %v1421_v2  ;;  %7674 = vmatpush.msk.msra.mxu2 %vm105_vm1, %v1422_v12 }
 0x17f   :  { %7671 = vmatmul.msk.f32.vlgmr.msra.gmra.mxu0 %vm101_vm2, %v7662_v6 }
 0x180   :  { %7675 = vmatmul.msk.f32.vlgmr.msra.gmra.mxu2 %vm101_vm2, %v7662_v6  ;;  %7673 = vmatmul.msk.f32.vlgmr.msra.gmra.mxu1 %vm101_vm2, %v7662_v6 }
 0x182   :  { %2405 = vrot.lane.b32.xlu1 %v2400_v38, %s8109_s24  ;;  %v8690_v3 = vld.sshfl [vmem:[#allocation1 + $0x10] sm:$0xff pattern:$0x75316420]  ;;  %v8692_v20 = vld.sshfl [vmem:[#allocation1 + $0x18] sm:$0xff pattern:$0x75316420] }
 0x183   :  { %2403 = vrot.lane.b32.xlu2 %v2399_v44, %s8109_s24  ;;  %2866 = vst [vmem:[#allocation1 + $0x10] ss:$2 sm:$0xff] %v8163_v10 }
 0x184   :  { %2322 = vrot.lane.b32.xlu0 %v8579_v35, %s8109_s24  ;;  %v1502_v14 = vpop.permute.xlu1 %1501  ;;  %v1500_v18 = vpop.permute.xlu0 %1499  ;;  %v8701_v33 = vld.sshfl [vmem:[#allocation1 + $0x8] sm:$0xff pattern:$0x75316420]  ;;  %v8703_v8 = vld.sshfl [vmem:[#allocation1] sm:$0xff pattern:$0x75316420] }
 0x185   :  { %v1508_v11 = vsel %vm1419_vm3, %v1502_v14, %v1504_v51  ;;  %v1507_v19 = vsel %vm1419_vm3, %v1500_v18, %v1502_v14  ;;  %v8707_v15 = vpop.permute.xlu2 %1675  ;;  %2864 = vst [vmem:[#allocation1] ss:$2 sm:$0xff] %v8160_v9  ;;  %v7667_v18 = vld [vmem:[%s11578_s1 + $0xa8] sm:$0xff] }
 0x186   :  { %7676 = vmatpush.msk.msra.mxu3 %vm105_vm1, %v1507_v19  ;;  %7678 = vmatpush.msk.msrb.mxu0 %vm105_vm1, %v1508_v11  ;;  %v1682_v42 = vsel %vm1419_vm3, %v8707_v15, %v8677_v5 }
 0x187   :  { %7677 = vmatmul.msk.f32.vlgmr.msra.gmra.mxu3 %vm101_vm2, %v7663_v7  ;;  %7679 = vmatmul.msk.f32.vlgmr.msrb.gmra.mxu0 %vm101_vm2, %v7663_v7 }
 0x18a   :  { %2494 = vrot.lane.b32.xlu1 %v8626_v58, %s8109_s24  ;;  %v8716_v17 = vld.sshfl [vmem:[#allocation1 + $0x10] sm:$0xff pattern:$0x75316420]  ;;  %v8718_v22 = vld.sshfl [vmem:[#allocation1 + $0x18] sm:$0xff pattern:$0x75316420] }
 0x18b   :  { %2490 = vrot.lane.b32.xlu2 %v8636_v57, %s8109_s24  ;;  %2954 = vst [vmem:[#allocation1 + $0x10] ss:$2 sm:$0xff] %v8177_v16 }
 0x18c   :  { %2492 = vrot.lane.b32.xlu0 %v8634_v55, %s8109_s24  ;;  %v1506_v23 = vpop.permute.xlu1 %1505  ;;  %v8725_v25 = vld.sshfl [vmem:[#allocation1 + $0x8] sm:$0xff pattern:$0x75316420]  ;;  %v8727_v28 = vld.sshfl [vmem:[#allocation1] sm:$0xff pattern:$0x75316420] }
 0x18d   :  { %v1509_v35 = vsel %vm1419_vm3, %v1504_v51, %v1506_v23  ;;  %v8730_v30 = vpop.permute.xlu2 %1764  ;;  %2952 = vst [vmem:[#allocation1] ss:$2 sm:$0xff] %v8174_v13 }
 0x18e   :  { %v1589_v31 = vpop.permute.xlu0 %1588  ;;  %7680 = vmatpush.msk.msrb.mxu1 %vm105_vm1, %v1509_v35  ;;  %v7666_v35 = vld [vmem:[%s11578_s1 + $0xa0] sm:$0xff] }
 0x18f   :  { %7681 = vmatmul.msk.f32.vlgmr.msrb.gmra.mxu1 %vm101_vm2, %v7663_v7 }
 0x192   :  { %2579 = vrot.lane.b32.xlu1 %v2574_v27, %s8109_s24  ;;  %v8736_v4 = vld.sshfl [vmem:[#allocation1 + $0x18] sm:$0xff pattern:$0x75316420]  ;;  %v8738_v26 = vld.sshfl [vmem:[#allocation1 + $0x10] sm:$0xff pattern:$0x75316420] }
 0x193   :  { %2496 = vrot.lane.b32.xlu2 %v8628_v41, %s8109_s24  ;;  %3041 = vst [vmem:[#allocation1 + $0x10] ss:$2 sm:$0xff] %v8195_v24 }
 0x194   :  { %2577 = vrot.lane.b32.xlu0 %v8656_v50, %s8109_s24  ;;  %v1591_v46 = vpop.permute.xlu1 %1590  ;;  %v8748_v34 = vld.sshfl [vmem:[#allocation1 + $0x8] sm:$0xff pattern:$0x75316420]  ;;  %v8750_v38 = vld.sshfl [vmem:[#allocation1] sm:$0xff pattern:$0x75316420] }
 0x195   :  { %v1595_v44 = vsel %vm1419_vm3, %v1589_v31, %v1591_v46  ;;  %v8753_v47 = vpop.permute.xlu2 %1849  ;;  %3039 = vst [vmem:[#allocation1] ss:$2 sm:$0xff] %v8191_v21 }
 0x196   :  { %v1587_v58 = vpop.permute.xlu0 %1586  ;;  %7684 = vmatpush.msk.msrb.mxu3 %vm105_vm1, %v1595_v44 }
 0x197   :  { %v1594_v41 = vsel %vm1419_vm3, %v1587_v58, %v1589_v31  ;;  %7685 = vmatmul.msk.f32.vlgmr.msrb.gmra.mxu3 %vm101_vm2, %v7664_v36 }
 0x198   :  { %7682 = vmatpush.msk.msrb.mxu2 %vm105_vm1, %v1594_v41 }
 0x199   :  { %7683 = vmatmul.msk.f32.vlgmr.msrb.gmra.mxu2 %vm101_vm2, %v7664_v36 }
 0x19a   :  { %7690 = vmatpush.msk.msra.mxu2 %vm105_vm1, %v1682_v42  ;;  %2583 = vrot.lane.b32.xlu1 %v8649_v49, %s8109_s24  ;;  %v8767_v55 = vld.sshfl [vmem:[#allocation1 + $0x10] sm:$0xff pattern:$0x75316420]  ;;  %v8769_v57 = vld.sshfl [vmem:[#allocation1 + $0x18] sm:$0xff pattern:$0x75316420] }
 0x19b   :  { %2581 = vrot.lane.b32.xlu2 %v8647_v43, %s8109_s24  ;;  %3128 = vst [vmem:[#allocation1 + $0x10] ss:$2 sm:$0xff] %v8213_v32  ;;  %v7665_v43 = vld [vmem:[%s11578_s1 + $0x98] sm:$0xff] }
 0x19c   :  { %2666 = vrot.lane.b32.xlu0 %v8671_v60, %s8109_s24  ;;  %v1593_v39 = vpop.permute.xlu1 %1592  ;;  %v8776_v51 = vld.sshfl [vmem:[#allocation1 + $0x8] sm:$0xff pattern:$0x75316420]  ;;  %v8778_v27 = vld.sshfl [vmem:[#allocation1] sm:$0xff pattern:$0x75316420] }
 0x19d   :  { %v1596_v49 = vsel %vm1419_vm3, %v1591_v46, %v1593_v39  ;;  %v8781_v50 = vpop.permute.xlu2 %1853  ;;  %3126 = vst [vmem:[#allocation1] ss:$2 sm:$0xff] %v8209_v29 }
 0x19e   :  { %v1680_v59 = vpop.permute.xlu0 %1679  ;;  %7686 = vmatpush.msk.msra.mxu0 %vm105_vm1, %v1596_v49 }
 0x19f   :  { %v1683_v62 = vsel %vm1419_vm3, %v8677_v5, %v1680_v59  ;;  %7687 = vmatmul.msk.f32.vlgmr.msra.gmra.mxu0 %vm101_vm2, %v7664_v36 }
 0x1a0   :  { %7692 = vmatpush.msk.msra.mxu3 %vm105_vm1, %v1683_v62 }
 0x1a1   :  { %7693 = vmatmul.msk.f32.vlgmr.msra.gmra.mxu3 %vm101_vm2, %v7665_v43  ;;  %7691 = vmatmul.msk.f32.vlgmr.msra.gmra.mxu2 %vm101_vm2, %v7665_v43 }
 0x1a2   :  { %2668 = vrot.lane.b32.xlu1 %v8662_v52, %s8109_s24  ;;  %v8796_v1 = vld.sshfl [vmem:[#allocation1 + $0x10] sm:$0xff pattern:$0x75316420]  ;;  %v8798_v60 = vld.sshfl [vmem:[#allocation1 + $0x18] sm:$0xff pattern:$0x75316420] }
 0x1a3   :  { %2755 = vrot.lane.b32.xlu2 %v8690_v3, %s8109_s24  ;;  %3215 = vst [vmem:[#allocation1 + $0x10] ss:$2 sm:$0xff] %v8230_v40 }
 0x1a4   :  { %2664 = vrot.lane.b32.xlu0 %v8673_v63, %s8109_s24  ;;  %v1763_v12 = vpop.permute.xlu1 %1762  ;;  %v8805_v2 = vld.sshfl [vmem:[#allocation1 + $0x8] sm:$0xff pattern:$0x75316420]  ;;  %v8807_v5 = vld.sshfl [vmem:[#allocation1] sm:$0xff pattern:$0x75316420] }
 0x1a5   :  { %v8809_v52 = vpop.permute.xlu2 %1938  ;;  %3213 = vst [vmem:[#allocation1] ss:$2 sm:$0xff] %v8226_v37  ;;  %v1769_v7 = vsel %vm1419_vm3, %v1763_v12, %v8730_v30 }
 0x1a6   :  { %v1674_v6 = vpop.permute.xlu0 %1673 }
 0x1a7   :  { %v1681_v3 = vsel %vm1419_vm3, %v1674_v6, %v8707_v15 }
 0x1a8   :  { %7688 = vmatpush.msk.msra.mxu1 %vm105_vm1, %v1681_v3 }
 0x1a9   :  { %7689 = vmatmul.msk.f32.vlgmr.msra.gmra.mxu1 %vm101_vm2, %v7665_v43 }
 0x1aa   :  { %7696 = vmatpush.msk.msrb.mxu1 %vm105_vm1, %v1769_v7  ;;  %2670 = vrot.lane.b32.xlu1 %v8664_v54, %s8109_s24  ;;  %v8821_v63 = vld.sshfl [vmem:[#allocation1 + $0x10] sm:$0xff pattern:$0x75316420]  ;;  %v8823_v14 = vld.sshfl [vmem:[#allocation1 + $0x18] sm:$0xff pattern:$0x75316420] }
 0x1ab   :  { %2753 = vrot.lane.b32.xlu2 %v8701_v33, %s8109_s24  ;;  %3302 = vst [vmem:[#allocation1 + $0x10] ss:$2 sm:$0xff] %v8247_v48 }
 0x1ac   :  { %2757 = vrot.lane.b32.xlu0 %v8692_v20, %s8109_s24  ;;  %v1848_v11 = vpop.permute.xlu1 %1847  ;;  %v8833_v54 = vld.sshfl [vmem:[#allocation1 + $0x8] sm:$0xff pattern:$0x75316420]  ;;  %v8835_v19 = vld.sshfl [vmem:[#allocation1] sm:$0xff pattern:$0x75316420] }
 0x1ad   :  { %v1941_v15 = vpop.permute.xlu2 %1940  ;;  %v1855_v23 = vsel %vm1419_vm3, %v1848_v11, %v8753_v47  ;;  %3300 = vst [vmem:[#allocation1] ss:$2 sm:$0xff] %v8244_v45 }
 0x1ae   :  { %v1761_v33 = vpop.permute.xlu0 %1760  ;;  %7700 = vmatpush.msk.msrb.mxu3 %vm105_vm1, %v1855_v23  ;;  %v1944_v6 = vsel %vm1419_vm3, %v8809_v52, %v1941_v15 }
 0x1af   :  { %v1768_v20 = vsel %vm1419_vm3, %v1761_v33, %v1763_v12  ;;  %7701 = vmatmul.msk.f32.vlgmr.msrb.gmra.mxu3 %vm101_vm2, %v7667_v18 }
 0x1b0   :  { %7694 = vmatpush.msk.msrb.mxu0 %vm105_vm1, %v1768_v20 }
 0x1b1   :  { %7695 = vmatmul.msk.f32.vlgmr.msrb.gmra.mxu0 %vm101_vm2, %v7666_v35  ;;  %7697 = vmatmul.msk.f32.vlgmr.msrb.gmra.mxu1 %vm101_vm2, %v7666_v35 }
 0x1b2   :  { %2873 = vrot.lane.b32.xlu1 %v8725_v25, %s8110_s19  ;;  %v8851_v31 = vld.sshfl [vmem:[#allocation1 + $0x10] sm:$0xff pattern:$0x75316420]  ;;  %v8853_v36 = vld.sshfl [vmem:[#allocation1 + $0x18] sm:$0xff pattern:$0x75316420] }
 0x1b3   :  { %2875 = vrot.lane.b32.xlu2 %v8716_v17, %s8110_s19  ;;  %3389 = vst [vmem:[#allocation1 + $0x10] ss:$2 sm:$0xff] %v8265_v56 }
 0x1b4   :  { %2751 = vrot.lane.b32.xlu0 %v8703_v8, %s8109_s24  ;;  %v1937_v46 = vpop.permute.xlu1 %1936  ;;  %v8860_v44 = vld.sshfl [vmem:[#allocation1] sm:$0xff pattern:$0x75316420]  ;;  %v8862_v58 = vld.sshfl [vmem:[#allocation1 + $0x8] sm:$0xff pattern:$0x75316420] }
 0x1b5   :  { %v1943_v25 = vsel %vm1419_vm3, %v1937_v46, %v8809_v52  ;;  %v8866_v41 = vpop.permute.xlu2 %2143  ;;  %3387 = vst [vmem:[#allocation1] ss:$2 sm:$0xff] %v8261_v53  ;;  %v7668_v8 = vld [vmem:[%s11578_s1 + $0xb0] sm:$0xff] }
 0x1b6   :  { %v1767_v42 = vpop.permute.xlu0 %1766  ;;  %7708 = vmatpush.msk.msra.mxu3 %vm105_vm1, %v1943_v25 }
 0x1b7   :  { %v1770_v17 = vsel %vm1419_vm3, %v8730_v30, %v1767_v42  ;;  %7709 = vmatmul.msk.f32.vlgmr.msra.gmra.mxu3 %vm101_vm2, %v7668_v8 }
 0x1b8   :  { %7698 = vmatpush.msk.msrb.mxu2 %vm105_vm1, %v1770_v17 }
 0x1b9   :  { %7699 = vmatmul.msk.f32.vlgmr.msrb.gmra.mxu2 %vm101_vm2, %v7666_v35 }
 0x1ba   :  { %2959 = vrot.lane.b32.xlu1 %v8750_v38, %s8110_s19  ;;  %v8880_v39 = vld.sshfl [vmem:[#allocation1 + $0x10] sm:$0xff pattern:$0x75316420]  ;;  %v8882_v49 = vld.sshfl [vmem:[#allocation1 + $0x18] sm:$0xff pattern:$0x75316420] }
 0x1bb   :  { %2961 = vrot.lane.b32.xlu2 %v8748_v34, %s8110_s19  ;;  %3476 = vst [vmem:[#allocation1 + $0x10] ss:$2 sm:$0xff] %v8282_v0 }
 0x1bc   :  { %2871 = vrot.lane.b32.xlu0 %v8727_v28, %s8110_s19  ;;  %v1935_v30 = vpop.permute.xlu1 %1934  ;;  %v8889_v59 = vld.sshfl [vmem:[#allocation1 + $0x8] sm:$0xff pattern:$0x75316420]  ;;  %v8891_v43 = vld.sshfl [vmem:[#allocation1] sm:$0xff pattern:$0x75316420] }
 0x1bd   :  { %v1942_v62 = vsel %vm1419_vm3, %v1935_v30, %v1937_v46  ;;  %v8894_v38 = vpop.permute.xlu2 %2229  ;;  %3474 = vst [vmem:[#allocation1] ss:$2 sm:$0xff] %v8279_v61 }
 0x1be   :  { %v1852_v12 = vpop.permute.xlu0 %1851  ;;  %7706 = vmatpush.msk.msra.mxu2 %vm105_vm1, %v1942_v62 }
 0x1bf   :  { %v1856_v34 = vsel %vm1419_vm3, %v8753_v47, %v1852_v12  ;;  %v1857_v28 = vsel %vm1419_vm3, %v1852_v12, %v8781_v50 }
 0x1c0   :  { %7702 = vmatpush.msk.msra.mxu0 %vm105_vm1, %v1856_v34  ;;  %7704 = vmatpush.msk.msra.mxu1 %vm105_vm1, %v1857_v28 }
 0x1c1   :  { %7705 = vmatmul.msk.f32.vlgmr.msra.gmra.mxu1 %vm101_vm2, %v7667_v18  ;;  %7703 = vmatmul.msk.f32.vlgmr.msra.gmra.mxu0 %vm101_vm2, %v7667_v18 }
 0x1c2   :  { %7710 = vmatpush.msk.msrb.mxu0 %vm105_vm1, %v1944_v6  ;;  %3048 = vrot.lane.b32.xlu1 %v8776_v51, %s8110_s19  ;;  %v8911_v47 = vld.sshfl [vmem:[#allocation1 + $0x10] sm:$0xff pattern:$0x75316420]  ;;  %v8913_v7 = vld.sshfl [vmem:[#allocation1 + $0x18] sm:$0xff pattern:$0x75316420] }
 0x1c3   :  { %2965 = vrot.lane.b32.xlu2 %v8736_v4, %s8110_s19  ;;  %7707 = vmatmul.msk.f32.vlgmr.msra.gmra.mxu2 %vm101_vm2, %v7668_v8  ;;  %3596 = vst [vmem:[#allocation1 + $0x10] ss:$2 sm:$0xff] %v8163_v10  ;;  %v7669_v4 = vld [vmem:[%s11578_s1 + $0xb8] sm:$0xff] }
 0x1c4   :  { %2877 = vrot.lane.b32.xlu0 %v8718_v22, %s8110_s19  ;;  %v2028_v50 = vpop.permute.xlu1 %2027  ;;  %v8921_v52 = vld.sshfl [vmem:[#allocation1 + $0x8] sm:$0xff pattern:$0x75316420]  ;;  %v8923_v51 = vld.sshfl [vmem:[#allocation1] sm:$0xff pattern:$0x75316420] }
 0x1c5   :  { %v8925_v3 = vpop.permute.xlu2 %2318  ;;  %3594 = vst [vmem:[#allocation1] ss:$2 sm:$0xff] %v8160_v9 }
 0x1c6   :  { %v2026_v18 = vpop.permute.xlu0 %2025 }
 0x1c7   :  { %v2031_v11 = vsel %vm1419_vm3, %v2026_v18, %v2028_v50 }
 0x1c8   :  { %7716 = vmatpush.msk.msrb.mxu3 %vm105_vm1, %v2031_v11 }
 0x1c9   :  { %7717 = vmatmul.msk.f32.vlgmr.msrb.gmra.mxu3 %vm101_vm2, %v7669_v4  ;;  %7711 = vmatmul.msk.f32.vlgmr.msrb.gmra.mxu0 %vm101_vm2, %v7668_v8 }
 0x1ca   :  { %3046 = vrot.lane.b32.xlu1 %v8778_v27, %s8110_s19  ;;  %v8937_v22 = vld.sshfl [vmem:[#allocation1 + $0x10] sm:$0xff pattern:$0x75316420]  ;;  %v8939_v15 = vld.sshfl [vmem:[#allocation1 + $0x18] sm:$0xff pattern:$0x75316420] }
 0x1cb   :  { %3050 = vrot.lane.b32.xlu2 %v8767_v55, %s8110_s19  ;;  %3684 = vst [vmem:[#allocation1 + $0x10] ss:$2 sm:$0xff] %v8177_v16 }
 0x1cc   :  { %2963 = vrot.lane.b32.xlu0 %v8738_v26, %s8110_s19  ;;  %v2022_v23 = vpop.permute.xlu1 %2021  ;;  %v8946_v33 = vld.sshfl [vmem:[#allocation1 + $0x8] sm:$0xff pattern:$0x75316420]  ;;  %v8948_v35 = vld.sshfl [vmem:[#allocation1] sm:$0xff pattern:$0x75316420] }
 0x1cd   :  { %v2317_v27 = vpop.permute.xlu2 %2316  ;;  %3682 = vst [vmem:[#allocation1] ss:$2 sm:$0xff] %v8174_v13 }
 0x1ce   :  { %v2024_v20 = vpop.permute.xlu0 %2023 }
 0x1cf   :  { %v2030_v46 = vsel %vm1419_vm3, %v2024_v20, %v2026_v18  ;;  %v2029_v25 = vsel %vm1419_vm3, %v2022_v23, %v2024_v20  ;;  %v2324_v18 = vsel %vm2149_vm4, %v2317_v27, %v8925_v3 }
 0x1d0   :  { %7712 = vmatpush.msk.msrb.mxu1 %vm105_vm1, %v2029_v25  ;;  %7714 = vmatpush.msk.msrb.mxu2 %vm105_vm1, %v2030_v46  ;;  %v7720_v25 = vld [vmem:[%s11578_s1 + $0xd0] sm:$0xff] }
 0x1d1   :  { %7715 = vmatmul.msk.f32.vlgmr.msrb.gmra.mxu2 %vm101_vm2, %v7669_v4  ;;  %7713 = vmatmul.msk.f32.vlgmr.msrb.gmra.mxu1 %vm101_vm2, %v7669_v4 }
 0x1d2   :  { %3139 = vrot.lane.b32.xlu1 %v8798_v60, %s8110_s19  ;;  %v8959_v26 = vld.sshfl [vmem:[#allocation1 + $0x10] sm:$0xff pattern:$0x75316420]  ;;  %v8961_v55 = vld.sshfl [vmem:[#allocation1 + $0x18] sm:$0xff pattern:$0x75316420] }
 0x1d3   :  { %3052 = vrot.lane.b32.xlu2 %v8769_v57, %s8110_s19  ;;  %3771 = vst [vmem:[#allocation1 + $0x10] ss:$2 sm:$0xff] %v8195_v24 }
 0x1d4   :  { %3137 = vrot.lane.b32.xlu0 %v8796_v1, %s8110_s19  ;;  %v2142_v42 = vpop.permute.xlu1 %2141  ;;  %v8968_v17 = vld.sshfl [vmem:[#allocation1 + $0x8] sm:$0xff pattern:$0x75316420]  ;;  %v8970_v8 = vld.sshfl [vmem:[#allocation1] sm:$0xff pattern:$0x75316420] }
 0x1d5   :  { %v2150_v60 = vsel %vm2149_vm4, %v2142_v42, %v8866_v41  ;;  %v2410_v30 = vpop.permute.xlu2 %2409  ;;  %3769 = vst [vmem:[#allocation1] ss:$2 sm:$0xff] %v8191_v21  ;;  %v7718_v1 = vld [vmem:[%s11578_s1 + $0xc0] sm:$0xff] }
 0x1d6   :  { %v2146_v62 = vpop.permute.xlu0 %2145  ;;  %7726 = vmatpush.msk.msra.mxu0 %vm105_vm1, %v2150_v60 }
 0x1d7   :  { %v2151_v57 = vsel %vm2149_vm4, %v8866_v41, %v2146_v62  ;;  %7727 = vmatmul.msk.f32.vlgmr.msra.gmra.mxu0 %vm101_vm2, %v7718_v1 }
 0x1d8   :  { %7728 = vmatpush.msk.msra.mxu1 %vm105_vm1, %v2151_v57 }
 0x1d9   :  { %7729 = vmatmul.msk.f32.vlgmr.msra.gmra.mxu1 %vm101_vm2, %v7718_v1 }
 0x1da   :  { %3133 = vrot.lane.b32.xlu1 %v8807_v5, %s8110_s19  ;;  %v8986_v12 = vld.sshfl [vmem:[#allocation1 + $0x10] sm:$0xff pattern:$0x75316420]  ;;  %v8988_v34 = vld.sshfl [vmem:[#allocation1 + $0x18] sm:$0xff pattern:$0x75316420] }
 0x1db   :  { %3222 = vrot.lane.b32.xlu2 %v8833_v54, %s8110_s19  ;;  %3858 = vst [vmem:[#allocation1 + $0x10] ss:$2 sm:$0xff] %v8213_v32 }
 0x1dc   :  { %3135 = vrot.lane.b32.xlu0 %v8805_v2, %s8110_s19  ;;  %v2148_v41 = vpop.permute.xlu1 %2147  ;;  %v8995_v28 = vld.sshfl [vmem:[#allocation1 + $0x8] sm:$0xff pattern:$0x75316420]  ;;  %v8997_v6 = vld.sshfl [vmem:[#allocation1] sm:$0xff pattern:$0x75316420] }
 0x1dd   :  { %v2152_v50 = vsel %vm2149_vm4, %v2146_v62, %v2148_v41  ;;  %v2404_v5 = vpop.permute.xlu2 %2403  ;;  %3856 = vst [vmem:[#allocation1] ss:$2 sm:$0xff] %v8209_v29  ;;  %v7719_v2 = vld [vmem:[%s11578_s1 + $0xc8] sm:$0xff] }
 0x1de   :  { %v2232_v11 = vpop.permute.xlu0 %2231  ;;  %7730 = vmatpush.msk.msra.mxu2 %vm105_vm1, %v2152_v50 }
 0x1df   :  { %v2237_v54 = vsel %vm2149_vm4, %v8894_v38, %v2232_v11  ;;  %7731 = vmatmul.msk.f32.vlgmr.msra.gmra.mxu2 %vm101_vm2, %v7718_v1 }
 0x1e0   :  { %7738 = vmatpush.msk.msrb.mxu2 %vm105_vm1, %v2324_v18  ;;  %7732 = vmatpush.msk.msra.mxu3 %vm105_vm1, %v2237_v54 }
 0x1e1   :  { %7733 = vmatmul.msk.f32.vlgmr.msra.gmra.mxu3 %vm101_vm2, %v7719_v2 }
 0x1e2   :  { %3220 = vrot.lane.b32.xlu1 %v8835_v19, %s8110_s19  ;;  %v9015_v4 = vld.sshfl [vmem:[#allocation1 + $0x10] sm:$0xff pattern:$0x75316420]  ;;  %v9017_v23 = vld.sshfl [vmem:[#allocation1 + $0x18] sm:$0xff pattern:$0x75316420] }
 0x1e3   :  { %3307 = vrot.lane.b32.xlu2 %v8860_v44, %s8110_s19  ;;  %3945 = vst [vmem:[#allocation1 + $0x10] ss:$2 sm:$0xff] %v8230_v40 }
 0x1e4   :  { %3224 = vrot.lane.b32.xlu0 %v8821_v63, %s8110_s19  ;;  %v2234_v38 = vpop.permute.xlu1 %2233  ;;  %v9024_v27 = vld.sshfl [vmem:[#allocation1 + $0x8] sm:$0xff pattern:$0x75316420]  ;;  %v9026_v20 = vld.sshfl [vmem:[#allocation1] sm:$0xff pattern:$0x75316420] }
 0x1e5   :  { %v2238_v46 = vsel %vm2149_vm4, %v2232_v11, %v2234_v38  ;;  %v9029_v19 = vpop.permute.xlu2 %2490  ;;  %3943 = vst [vmem:[#allocation1] ss:$2 sm:$0xff] %v8226_v37 }
 0x1e6   :  { %v2236_v44 = vpop.permute.xlu0 %2235  ;;  %7734 = vmatpush.msk.msrb.mxu0 %vm105_vm1, %v2238_v46 }
 0x1e7   :  { %v2239_v63 = vsel %vm2149_vm4, %v2234_v38, %v2236_v44  ;;  %7735 = vmatmul.msk.f32.vlgmr.msrb.gmra.mxu0 %vm101_vm2, %v7719_v2  ;;  %7739 = vmatmul.msk.f32.vlgmr.msrb.gmra.mxu2 %vm101_vm2, %v7720_v25  ;;  %v7722_v44 = vld [vmem:[%s11578_s1 + $0xe0] sm:$0xff] }
 0x1e8   :  { %7736 = vmatpush.msk.msrb.mxu1 %vm105_vm1, %v2239_v63 }
 0x1e9   :  { %7737 = vmatmul.msk.f32.vlgmr.msrb.gmra.mxu1 %vm101_vm2, %v7719_v2 }
 0x1ea   :  { %3226 = vrot.lane.b32.xlu1 %v8823_v14, %s8110_s19  ;;  %v9043_v42 = vld.sshfl [vmem:[#allocation1 + $0x10] sm:$0xff pattern:$0x75316420]  ;;  %v9045_v60 = vld.sshfl [vmem:[#allocation1 + $0x18] sm:$0xff pattern:$0x75316420] }
 0x1eb   :  { %3396 = vrot.lane.b32.xlu2 %v8889_v59, %s8110_s19  ;;  %4032 = vst [vmem:[#allocation1 + $0x10] ss:$2 sm:$0xff] %v8247_v48 }
 0x1ec   :  { %3309 = vrot.lane.b32.xlu0 %v8862_v58, %s8110_s19  ;;  %v2408_v62 = vpop.permute.xlu1 %2407  ;;  %v9052_v57 = vld.sshfl [vmem:[#allocation1 + $0x8] sm:$0xff pattern:$0x75316420]  ;;  %v9054_v1 = vld.sshfl [vmem:[#allocation1] sm:$0xff pattern:$0x75316420] }
 0x1ed   :  { %v2497_v41 = vpop.permute.xlu2 %2496  ;;  %4030 = vst [vmem:[#allocation1] ss:$2 sm:$0xff] %v8244_v45  ;;  %v2413_v14 = vsel %vm2149_vm4, %v2408_v62, %v2410_v30 }
 0x1ee   :  { %v2321_v50 = vpop.permute.xlu0 %2320 }
 0x1ef   :  { %v2325_v18 = vsel %vm2149_vm4, %v8925_v3, %v2321_v50  ;;  %v7721_v3 = vld [vmem:[%s11578_s1 + $0xd8] sm:$0xff] }
 0x1f0   :  { %7740 = vmatpush.msk.msrb.mxu3 %vm105_vm1, %v2325_v18 }
 0x1f1   :  { %7741 = vmatmul.msk.f32.vlgmr.msrb.gmra.mxu3 %vm101_vm2, %v7720_v25 }
 0x1f2   :  { %7748 = vmatpush.msk.msra.mxu3 %vm105_vm1, %v2413_v14  ;;  %3311 = vrot.lane.b32.xlu1 %v8851_v31, %s8110_s19  ;;  %v9065_v58 = vld.sshfl [vmem:[#allocation1 + $0x18] sm:$0xff pattern:$0x75316420]  ;;  %v9067_v59 = vld.sshfl [vmem:[#allocation1 + $0x10] sm:$0xff pattern:$0x75316420] }
 0x1f3   :  { %3394 = vrot.lane.b32.xlu2 %v8891_v43, %s8110_s19  ;;  %4119 = vst [vmem:[#allocation1 + $0x10] ss:$2 sm:$0xff] %v8265_v56 }
 0x1f4   :  { %3313 = vrot.lane.b32.xlu0 %v8853_v36, %s8110_s19  ;;  %v2406_v30 = vpop.permute.xlu1 %2405  ;;  %v9077_v31 = vld.sshfl [vmem:[#allocation1 + $0x8] sm:$0xff pattern:$0x75316420]  ;;  %v9079_v11 = vld.sshfl [vmem:[#allocation1] sm:$0xff pattern:$0x75316420] }
 0x1f5   :  { %v2411_v2 = vsel %vm2149_vm4, %v2404_v5, %v2406_v30  ;;  %v2412_v54 = vsel %vm2149_vm4, %v2406_v30, %v2408_v62  ;;  %v9083_v38 = vpop.permute.xlu2 %2581  ;;  %4117 = vst [vmem:[#allocation1] ss:$2 sm:$0xff] %v8261_v53 }
 0x1f6   :  { %v2323_v43 = vpop.permute.xlu0 %2322  ;;  %7744 = vmatpush.msk.msra.mxu1 %vm105_vm1, %v2411_v2  ;;  %7746 = vmatpush.msk.msra.mxu2 %vm105_vm1, %v2412_v54 }
 0x1f7   :  { %v2326_v36 = vsel %vm2149_vm4, %v2321_v50, %v2323_v43  ;;  %7745 = vmatmul.msk.f32.vlgmr.msra.gmra.mxu1 %vm101_vm2, %v7721_v3  ;;  %7747 = vmatmul.msk.f32.vlgmr.msra.gmra.mxu2 %vm101_vm2, %v7721_v3 }
 0x1f8   :  { %7742 = vmatpush.msk.msra.mxu0 %vm105_vm1, %v2326_v36 }
 0x1f9   :  { %7743 = vmatmul.msk.f32.vlgmr.msra.gmra.mxu0 %vm101_vm2, %v7720_v25  ;;  %7749 = vmatmul.msk.f32.vlgmr.msra.gmra.mxu3 %vm101_vm2, %v7721_v3 }
 0x1fa   :  { %3485 = vrot.lane.b32.xlu1 %v8911_v47, %s8110_s19  ;;  %v9096_v5 = vld.sshfl [vmem:[#allocation1 + $0x10] sm:$0xff pattern:$0x75316420]  ;;  %v9098_v46 = vld.sshfl [vmem:[#allocation1 + $0x18] sm:$0xff pattern:$0x75316420] }
 0x1fb   :  { %3487 = vrot.lane.b32.xlu2 %v8913_v7, %s8110_s19  ;;  %4206 = vst [vmem:[#allocation1 + $0x10] ss:$2 sm:$0xff] %v8282_v0 }
 0x1fc   :  { %3398 = vrot.lane.b32.xlu0 %v8880_v39, %s8110_s19  ;;  %v2495_v25 = vpop.permute.xlu1 %2494  ;;  %v9108_v47 = vld.sshfl [vmem:[#allocation1 + $0x8] sm:$0xff pattern:$0x75316420]  ;;  %v9110_v63 = vld.sshfl [vmem:[#allocation1] sm:$0xff pattern:$0x75316420] }
 0x1fd   :  { %v2500_v62 = vsel %vm2149_vm4, %v2495_v25, %v2497_v41  ;;  %v9113_v14 = vpop.permute.xlu2 %2755  ;;  %4204 = vst [vmem:[#allocation1] ss:$2 sm:$0xff] %v8279_v61 }
 0x1fe   :  { %v2493_v7 = vpop.permute.xlu0 %2492  ;;  %7754 = vmatpush.msk.msrb.mxu2 %vm105_vm1, %v2500_v62 }
 0x1ff   :  { %v2498_v50 = vsel %vm2149_vm4, %v9029_v19, %v2493_v7  ;;  %v2499_v18 = vsel %vm2149_vm4, %v2493_v7, %v2495_v25  ;;  %7755 = vmatmul.msk.f32.vlgmr.msrb.gmra.mxu2 %vm101_vm2, %v7722_v44 }
 0x200   :  { %7750 = vmatpush.msk.msrb.mxu0 %vm105_vm1, %v2498_v50  ;;  %7752 = vmatpush.msk.msrb.mxu1 %vm105_vm1, %v2499_v18 }
 0x201   :  { %7751 = vmatmul.msk.f32.vlgmr.msrb.gmra.mxu0 %vm101_vm2, %v7722_v44  ;;  %7753 = vmatmul.msk.f32.vlgmr.msrb.gmra.mxu1 %vm101_vm2, %v7722_v44 }
 0x202   :  { %3483 = vrot.lane.b32.xlu1 %v8921_v52, %s8110_s19  ;;  %v9127_v39 = vld.sshfl [vmem:[#allocation1 + $0x10] sm:$0xff pattern:$0x75316420]  ;;  %v9129_v41 = vld.sshfl [vmem:[#allocation1 + $0x18] sm:$0xff pattern:$0x75316420] }
 0x203   :  { %3481 = vrot.lane.b32.xlu2 %v8923_v51, %s8110_s19  ;;  %4326 = vst [vmem:[#allocation1 + $0x10] ss:$2 sm:$0xff] %v8163_v10  ;;  %v7723_v51 = vld [vmem:[%s11578_s1 + $0xe8] sm:$0xff] }
 0x204   :  { %3400 = vrot.lane.b32.xlu0 %v8882_v49, %s8110_s19  ;;  %v2580_v19 = vpop.permute.xlu1 %2579  ;;  %v9136_v3 = vld.sshfl [vmem:[#allocation1 + $0x8] sm:$0xff pattern:$0x75316420]  ;;  %v9138_v30 = vld.sshfl [vmem:[#allocation1] sm:$0xff pattern:$0x75316420] }
 0x205   :  { %v2586_v52 = vsel %vm2149_vm4, %v2580_v19, %v9083_v38  ;;  %v9142_v2 = vpop.permute.xlu2 %2753  ;;  %4324 = vst [vmem:[#allocation1] ss:$2 sm:$0xff] %v8160_v9 }
 0x206   :  { %v2578_v54 = vpop.permute.xlu0 %2577  ;;  %7758 = vmatpush.msk.msra.mxu0 %vm105_vm1, %v2586_v52 }
 0x207   :  { %v2585_v49 = vsel %vm2149_vm4, %v2578_v54, %v2580_v19 }
 0x208   :  { %7756 = vmatpush.msk.msrb.mxu3 %vm105_vm1, %v2585_v49 }
 0x209   :  { %7757 = vmatmul.msk.f32.vlgmr.msrb.gmra.mxu3 %vm101_vm2, %v7723_v51  ;;  %7759 = vmatmul.msk.f32.vlgmr.msra.gmra.mxu0 %vm101_vm2, %v7723_v51 }
 0x20a   :  { %3605 = vrot.lane.b32.xlu1 %v8937_v22, %s8111_s9  ;;  %v9155_v43 = vld.sshfl [vmem:[#allocation1 + $0x10] sm:$0xff pattern:$0x75316420]  ;;  %v9157_v36 = vld.sshfl [vmem:[#allocation1 + $0x18] sm:$0xff pattern:$0x75316420] }
 0x20b   :  { %3601 = vrot.lane.b32.xlu2 %v8948_v35, %s8111_s9  ;;  %4414 = vst [vmem:[#allocation1 + $0x10] ss:$2 sm:$0xff] %v8177_v16 }
 0x20c   :  { %3603 = vrot.lane.b32.xlu0 %v8946_v33, %s8111_s9  ;;  %v2584_v44 = vpop.permute.xlu1 %2583  ;;  %v9164_v25 = vld.sshfl [vmem:[#allocation1 + $0x8] sm:$0xff pattern:$0x75316420]  ;;  %v9166_v62 = vld.sshfl [vmem:[#allocation1] sm:$0xff pattern:$0x75316420] }
 0x20d   :  { %v2587_v22 = vsel %vm2149_vm4, %v9083_v38, %v2584_v44  ;;  %v9170_v7 = vpop.permute.xlu2 %2875  ;;  %4412 = vst [vmem:[#allocation1] ss:$2 sm:$0xff] %v8174_v13  ;;  %v7724_v38 = vld [vmem:[%s11578_s1 + $0xf0] sm:$0xff] }
 0x20e   :  { %v2667_v50 = vpop.permute.xlu0 %2666  ;;  %7760 = vmatpush.msk.msra.mxu1 %vm105_vm1, %v2587_v22 }
 0x20f   :  { %7761 = vmatmul.msk.f32.vlgmr.msra.gmra.mxu1 %vm101_vm2, %v7723_v51 }
 0x212   :  { %3691 = vrot.lane.b32.xlu1 %v8968_v17, %s8111_s9  ;;  %v9177_v33 = vld.sshfl [vmem:[#allocation1 + $0x10] sm:$0xff pattern:$0x75316420]  ;;  %v9179_v35 = vld.sshfl [vmem:[#allocation1 + $0x18] sm:$0xff pattern:$0x75316420] }
 0x213   :  { %3607 = vrot.lane.b32.xlu2 %v8939_v15, %s8111_s9  ;;  %4501 = vst [vmem:[#allocation1 + $0x10] ss:$2 sm:$0xff] %v8195_v24 }
 0x214   :  { %3689 = vrot.lane.b32.xlu0 %v8970_v8, %s8111_s9  ;;  %v2669_v18 = vpop.permute.xlu1 %2668  ;;  %v9189_v19 = vld.sshfl [vmem:[#allocation1] sm:$0xff pattern:$0x75316420]  ;;  %v9191_v17 = vld.sshfl [vmem:[#allocation1 + $0x8] sm:$0xff pattern:$0x75316420]  ;;  %v2760_v8 = vsel %vm2149_vm4, %v9142_v2, %v9113_v14 }
 0x215   :  { %v2673_v52 = vsel %vm2149_vm4, %v2667_v50, %v2669_v18  ;;  %v9194_v54 = vpop.permute.xlu2 %2961  ;;  %4499 = vst [vmem:[#allocation1] ss:$2 sm:$0xff] %v8191_v21 }
 0x216   :  { %v2665_v15 = vpop.permute.xlu0 %2664  ;;  %7764 = vmatpush.msk.msra.mxu3 %vm105_vm1, %v2673_v52 }
 0x217   :  { %v2672_v51 = vsel %vm2149_vm4, %v2665_v15, %v2667_v50  ;;  %7765 = vmatmul.msk.f32.vlgmr.msra.gmra.mxu3 %vm101_vm2, %v7724_v38 }
 0x218   :  { %7762 = vmatpush.msk.msra.mxu2 %vm105_vm1, %v2672_v51 }
 0x219   :  { %7763 = vmatmul.msk.f32.vlgmr.msra.gmra.mxu2 %vm101_vm2, %v7724_v38 }
 0x21a   :  { %7770 = vmatpush.msk.msrb.mxu2 %vm105_vm1, %v2760_v8  ;;  %3695 = vrot.lane.b32.xlu1 %v8961_v55, %s8111_s9  ;;  %v9208_v49 = vld.sshfl [vmem:[#allocation1 + $0x10] sm:$0xff pattern:$0x75316420]  ;;  %v9210_v44 = vld.sshfl [vmem:[#allocation1 + $0x18] sm:$0xff pattern:$0x75316420]  ;;  %v9233_v8 = vpop.f32.mrf.mxu0 }
 0x21b   :  { %11593 = vst [vmem:[#allocation5_spill] sm:$0xff] %v9210_v44  ;;  %3693 = vrot.lane.b32.xlu2 %v8959_v26, %s8111_s9  ;;  %v7725_v26 = vld [vmem:[%s11578_s1 + $0xf8] sm:$0xff]  ;;  %v9263_v44 = vpop.f32.mrf.mxu2 }
 0x21c   :  { %4588 = vst [vmem:[#allocation1 + $0x10] ss:$2 sm:$0xff] %v8213_v32  ;;  %3778 = vrot.lane.b32.xlu0 %v8995_v28, %s8111_s9  ;;  %v2671_v22 = vpop.permute.xlu1 %2670  ;;  %v9217_v50 = vld.sshfl [vmem:[#allocation1 + $0x8] sm:$0xff pattern:$0x75316420] }
 0x21d   :  { %v9219_v52 = vld.sshfl [vmem:[#allocation1] sm:$0xff pattern:$0x75316420]  ;;  %v2674_v55 = vsel %vm2149_vm4, %v2669_v18, %v2671_v22  ;;  %v9222_v15 = vpop.permute.xlu2 %2965  ;;  %11594 = vst [vmem:[#allocation6_spill] sm:$0xff] %v9233_v8 }
 0x21e   :  { %4586 = vst [vmem:[#allocation1] ss:$2 sm:$0xff] %v8209_v29  ;;  %v2758_v51 = vpop.permute.xlu0 %2757  ;;  %7766 = vmatpush.msk.msrb.mxu0 %vm105_vm1, %v2674_v55 }
 0x21f   :  { %v2761_v28 = vsel %vm2149_vm4, %v9113_v14, %v2758_v51  ;;  %7767 = vmatmul.msk.f32.vlgmr.msrb.gmra.mxu0 %vm101_vm2, %v7724_v38  ;;  %11598 = vst [vmem:[#allocation10_spill] sm:$0xff] %v9263_v44 }
 0x220   :  { %7772 = vmatpush.msk.msrb.mxu3 %vm105_vm1, %v2761_v28  ;;  %v9257_v28 = vpop.f32.mrf.mxu3 }
 0x221   :  { %7773 = vmatmul.msk.f32.vlgmr.msrb.gmra.mxu3 %vm101_vm2, %v7725_v26  ;;  %7771 = vmatmul.msk.f32.vlgmr.msrb.gmra.mxu2 %vm101_vm2, %v7725_v26  ;;  %11597 = vst [vmem:[#allocation9_spill] sm:$0xff] %v9257_v28 }
 0x222   :  { %3780 = vrot.lane.b32.xlu1 %v8986_v12, %s8111_s9  ;;  %v9252_v12 = vpop.f32.mrf.mxu1 }
 0x223   :  { %v9239_v18 = vld.sshfl [vmem:[#allocation1 + $0x10] sm:$0xff pattern:$0x75316420]  ;;  %v9241_v22 = vld.sshfl [vmem:[#allocation1 + $0x18] sm:$0xff pattern:$0x75316420]  ;;  %3867 = vrot.lane.b32.xlu2 %v9015_v4, %s8111_s9 }
 0x224   :  { %4675 = vst [vmem:[#allocation1 + $0x10] ss:$2 sm:$0xff] %v8230_v40  ;;  %3776 = vrot.lane.b32.xlu0 %v8997_v6, %s8111_s9  ;;  %v2874_v14 = vpop.permute.xlu1 %2873 }
 0x225   :  { %v9248_v38 = vld.sshfl [vmem:[#allocation1 + $0x8] sm:$0xff pattern:$0x75316420]  ;;  %v9250_v55 = vld.sshfl [vmem:[#allocation1] sm:$0xff pattern:$0x75316420]  ;;  %v9254_v51 = vpop.permute.xlu2 %3050  ;;  %v2881_v8 = vsel %vm2879_vm5, %v2874_v14, %v9170_v7 }
 0x226   :  { %11595 = vst [vmem:[#allocation7_spill] sm:$0xff] %v9250_v55  ;;  %v2752_v4 = vpop.permute.xlu0 %2751  ;;  %v9274_v55 = vpop.f32.mrf.mxu0 }
 0x227   :  { %11596 = vst [vmem:[#allocation8_spill] sm:$0xff] %v9252_v12  ;;  %v2759_v6 = vsel %vm2149_vm4, %v2752_v4, %v9142_v2  ;;  %v9281_v2 = vld [vmem:[%s11578_s1 + $0x108] sm:$0xff] }
 0x228   :  { %4673 = vst [vmem:[#allocation1] ss:$2 sm:$0xff] %v8226_v37  ;;  %7768 = vmatpush.msk.msrb.mxu1 %vm105_vm1, %v2759_v6 }
 0x229   :  { %7769 = vmatmul.msk.f32.vlgmr.msrb.gmra.mxu1 %vm101_vm2, %v7725_v26  ;;  %11600 = vst [vmem:[#allocation12_spill] sm:$0xff] %v9274_v55  ;;  %v7774_v55 = vld [vmem:[%s11578_s1 + $0x100] sm:$0xff] }
 0x22a   :  { %7784 = vmatpush.msk.msra.mxu1 %vm105_vm1, %v2881_v8  ;;  %3782 = vrot.lane.b32.xlu1 %v8988_v34, %s8111_s9  ;;  %v9297_v44 = vpop.f32.mrf.mxu1 }
 0x22b   :  { %v9270_v12 = vld.sshfl [vmem:[#allocation1 + $0x10] sm:$0xff pattern:$0x75316420]  ;;  %v9272_v28 = vld.sshfl [vmem:[#allocation1 + $0x18] sm:$0xff pattern:$0x75316420]  ;;  %3865 = vrot.lane.b32.xlu2 %v9024_v27, %s8111_s9 }
 0x22c   :  { %11599 = vst [vmem:[#allocation11_spill] sm:$0xff] %v9272_v28  ;;  %3869 = vrot.lane.b32.xlu0 %v9017_v23, %s8111_s9  ;;  %v2960_v34 = vpop.permute.xlu1 %2959  ;;  %v9302_v28 = vpop.f32.mrf.mxu3 }
 0x22d   :  { %4762 = vst [vmem:[#allocation1 + $0x10] ss:$2 sm:$0xff] %v8247_v48  ;;  %v3053_v4 = vpop.permute.xlu2 %3052  ;;  %v2967_v6 = vsel %vm2879_vm5, %v2960_v34, %v9194_v54  ;;  %v9306_v34 = vpop.f32.mrf.mxu2 }
 0x22e   :  { %v2872_v27 = vpop.permute.xlu0 %2871  ;;  %7788 = vmatpush.msk.msra.mxu3 %vm105_vm1, %v2967_v6  ;;  %11601 = vst [vmem:[#allocation13_spill] sm:$0xff] %v9297_v44 }
 0x22f   :  { %v9286_v26 = vld.sshfl [vmem:[#allocation1 + $0x8] sm:$0xff pattern:$0x75316420]  ;;  %v9288_v8 = vld.sshfl [vmem:[#allocation1] sm:$0xff pattern:$0x75316420]  ;;  %v2880_v23 = vsel %vm2879_vm5, %v2872_v27, %v2874_v14  ;;  %7789 = vmatmul.msk.f32.vlgmr.msra.gmra.mxu3 %vm101_vm2, %v9281_v2 }
 0x230   :  { %4760 = vst [vmem:[#allocation1] ss:$2 sm:$0xff] %v8244_v45  ;;  %7782 = vmatpush.msk.msra.mxu0 %vm105_vm1, %v2880_v23  ;;  %v7776_v14 = vld [vmem:[%s11578_s1 + $0x110] sm:$0xff] }
 0x231   :  { %11602 = vst [vmem:[#allocation14_spill] sm:$0xff] %v9302_v28  ;;  %7783 = vmatmul.msk.f32.vlgmr.msra.gmra.mxu0 %vm101_vm2, %v7774_v55  ;;  %7785 = vmatmul.msk.f32.vlgmr.msra.gmra.mxu1 %vm101_vm2, %v7774_v55 }
 0x232   :  { %11603 = vst [vmem:[#allocation15_spill] sm:$0xff] %v9306_v34  ;;  %3952 = vrot.lane.b32.xlu1 %v9052_v57, %s8111_s9  ;;  %v9327_v34 = vpop.f32.mrf.mxu0 }
 0x233   :  { %3954 = vrot.lane.b32.xlu2 %v9043_v42, %s8111_s9  ;;  %11608 = vst [vmem:[#allocation20_spill] sm:$0xff] %v9327_v34 }
 0x234   :  { %v9311_v6 = vld.sshfl [vmem:[#allocation1 + $0x10] sm:$0xff pattern:$0x75316420]  ;;  %v9313_v44 = vld.sshfl [vmem:[#allocation1 + $0x18] sm:$0xff pattern:$0x75316420]  ;;  %3863 = vrot.lane.b32.xlu0 %v9026_v20, %s8111_s9  ;;  %v3049_v27 = vpop.permute.xlu1 %3048  ;;  %v9342_v34 = vpop.f32.mrf.mxu3 }
 0x235   :  { %11604 = vst [vmem:[#allocation16_spill] sm:$0xff] %v9311_v6  ;;  %v3055_v28 = vsel %vm2879_vm5, %v3049_v27, %v9254_v51  ;;  %v9331_v42 = vpop.permute.xlu2 %3222  ;;  %v9339_v6 = vpop.f32.mrf.mxu1 }
 0x236   :  { %11605 = vst [vmem:[#allocation17_spill] sm:$0xff] %v9313_v44  ;;  %v2878_v44 = vpop.permute.xlu0 %2877  ;;  %7796 = vmatpush.msk.msrb.mxu3 %vm105_vm1, %v3055_v28 }
 0x237   :  { %4849 = vst [vmem:[#allocation1 + $0x10] ss:$2 sm:$0xff] %v8265_v56  ;;  %v9323_v23 = vld.sshfl [vmem:[#allocation1 + $0x8] sm:$0xff pattern:$0x75316420]  ;;  %v2882_v20 = vsel %vm2879_vm5, %v9170_v7, %v2878_v44  ;;  %7797 = vmatmul.msk.f32.vlgmr.msrb.gmra.mxu3 %vm101_vm2, %v7776_v14  ;;  %v9353_v7 = vpop.f32.mrf.mxu2 }
 0x238   :  { %11606 = vst [vmem:[#allocation18_spill] sm:$0xff] %v9323_v23  ;;  %v9325_v57 = vld.sshfl [vmem:[#allocation1] sm:$0xff pattern:$0x75316420]  ;;  %7786 = vmatpush.msk.msra.mxu2 %vm105_vm1, %v2882_v20 }
 0x239   :  { %11607 = vst [vmem:[#allocation19_spill] sm:$0xff] %v9325_v57  ;;  %7787 = vmatmul.msk.f32.vlgmr.msra.gmra.mxu2 %vm101_vm2, %v7774_v55 }
 0x23a   :  { %4847 = vst [vmem:[#allocation1] ss:$2 sm:$0xff] %v8261_v53  ;;  %4037 = vrot.lane.b32.xlu1 %v9079_v11, %s8111_s9 }
 0x23b   :  { %11609 = vst [vmem:[#allocation21_spill] sm:$0xff] %v9339_v6  ;;  %4039 = vrot.lane.b32.xlu2 %v9077_v31, %s8111_s9  ;;  %v9366_v31 = vpop.f32.mrf.mxu0 }
 0x23c   :  { %11610 = vst [vmem:[#allocation22_spill] sm:$0xff] %v9342_v34  ;;  %3950 = vrot.lane.b32.xlu0 %v9054_v1, %s8111_s9  ;;  %v3047_v44 = vpop.permute.xlu1 %3046 }
 0x23d   :  { %11611 = vst [vmem:[#allocation23_spill] sm:$0xff] %v9353_v7  ;;  %v3054_v11 = vsel %vm2879_vm5, %v3047_v44, %v3049_v27  ;;  %v9362_v20 = vpop.permute.xlu2 %3307  ;;  %v3056_v27 = vsel %vm2879_vm5, %v9254_v51, %v3053_v4  ;;  %v9393_v51 = vpop.f32.mrf.mxu3 }
 0x23e   :  { %v9346_v57 = vld.sshfl [vmem:[#allocation1 + $0x10] sm:$0xff pattern:$0x75316420]  ;;  %v9348_v23 = vld.sshfl [vmem:[#allocation1 + $0x18] sm:$0xff pattern:$0x75316420]  ;;  %v2964_v6 = vpop.permute.xlu0 %2963  ;;  %7794 = vmatpush.msk.msrb.mxu2 %vm105_vm1, %v3054_v11 }
 0x23f   :  { %4936 = vst [vmem:[#allocation1 + $0x10] ss:$2 sm:$0xff] %v8282_v0  ;;  %v2968_v7 = vsel %vm2879_vm5, %v9194_v54, %v2964_v6  ;;  %v2969_v1 = vsel %vm2879_vm5, %v2964_v6, %v9222_v15  ;;  %v9386_v6 = vpop.f32.mrf.mxu1 }
 0x240   :  { %11612 = vst [vmem:[#allocation24_spill] sm:$0xff] %v9366_v31  ;;  %7790 = vmatpush.msk.msrb.mxu0 %vm105_vm1, %v2968_v7  ;;  %7792 = vmatpush.msk.msrb.mxu1 %vm105_vm1, %v2969_v1 }
 0x241   :  { %v9357_v55 = vld.sshfl [vmem:[#allocation1 + $0x8] sm:$0xff pattern:$0x75316420]  ;;  %v9359_v28 = vld.sshfl [vmem:[#allocation1] sm:$0xff pattern:$0x75316420]  ;;  %7791 = vmatmul.msk.f32.vlgmr.msrb.gmra.mxu0 %vm101_vm2, %v9281_v2  ;;  %7793 = vmatmul.msk.f32.vlgmr.msrb.gmra.mxu1 %vm101_vm2, %v9281_v2 }
 0x242   :  { %4934 = vst [vmem:[#allocation1] ss:$2 sm:$0xff] %v8279_v61  ;;  %7795 = vmatmul.msk.f32.vlgmr.msrb.gmra.mxu2 %vm101_vm2, %v7776_v14  ;;  %7798 = vmatpush.msk.msra.mxu0 %vm105_vm1, %v3056_v27 }
 0x243   :  { %11613 = vst [vmem:[#allocation25_spill] sm:$0xff] %v9386_v6  ;;  %4043 = vrot.lane.b32.xlu2 %v9065_v58, %s8111_s9  ;;  %4126 = vrot.lane.b32.xlu1 %v9108_v47, %s8111_s9  ;;  %v9404_v58 = vpop.f32.mrf.mxu2  ;;  %v7777_v47 = vld [vmem:[%s11578_s1 + $0x118] sm:$0xff] }
 0x244   :  { %11614 = vst [vmem:[#allocation26_spill] sm:$0xff] %v9393_v51  ;;  %3956 = vrot.lane.b32.xlu0 %v9045_v60, %s8111_s9  ;;  %v3140_v2 = vpop.permute.xlu1 %3139  ;;  %v9411_v60 = vpop.f32.mrf.mxu0 }
 0x245   :  { %v9401_v44 = vpop.permute.xlu2 %3396  ;;  %11615 = vst [vmem:[#allocation27_spill] sm:$0xff] %v9404_v58  ;;  %v9433_v31 = vpop.f32.mrf.mxu3 }
 0x246   :  { %v9382_v54 = vld.sshfl [vmem:[#allocation1 + $0x10] sm:$0xff pattern:$0x75316420]  ;;  %v9384_v15 = vld.sshfl [vmem:[#allocation1 + $0x18] sm:$0xff pattern:$0x75316420]  ;;  %v3138_v11 = vpop.permute.xlu0 %3137 }
 0x247   :  { %5056 = vst [vmem:[#allocation1 + $0x10] ss:$2 sm:$0xff] %v8163_v10  ;;  %v3143_v1 = vsel %vm2879_vm5, %v3138_v11, %v3140_v2  ;;  %v9430_v58 = vpop.f32.mrf.mxu1 }
 0x248   :  { %7804 = vmatpush.msk.msra.mxu3 %vm105_vm1, %v3143_v1  ;;  %11616 = vst [vmem:[#allocation28_spill] sm:$0xff] %v9411_v60 }
 0x249   :  { %v9397_v4 = vld.sshfl [vmem:[#allocation1 + $0x8] sm:$0xff pattern:$0x75316420]  ;;  %v9399_v7 = vld.sshfl [vmem:[#allocation1] sm:$0xff pattern:$0x75316420]  ;;  %7799 = vmatmul.msk.f32.vlgmr.msra.gmra.mxu0 %vm101_vm2, %v7776_v14  ;;  %7805 = vmatmul.msk.f32.vlgmr.msra.gmra.mxu3 %vm101_vm2, %v7777_v47 }
 0x24a   :  { %5054 = vst [vmem:[#allocation1] ss:$2 sm:$0xff] %v8160_v9 }
 0x24b   :  { %4128 = vrot.lane.b32.xlu2 %v9096_v5, %s8111_s9  ;;  %4124 = vrot.lane.b32.xlu1 %v9110_v63, %s8111_s9  ;;  %11617 = vst [vmem:[#allocation29_spill] sm:$0xff] %v9430_v58  ;;  %v9437_v34 = vpop.f32.mrf.mxu2 }
 0x24c   :  { %4041 = vrot.lane.b32.xlu0 %v9067_v59, %s8111_s9  ;;  %v3134_v2 = vpop.permute.xlu1 %3133  ;;  %11618 = vst [vmem:[#allocation30_spill] sm:$0xff] %v9433_v31  ;;  %v9447_v31 = vpop.f32.mrf.mxu0 }
 0x24d   :  { %v3395_v60 = vpop.permute.xlu2 %3394  ;;  %11619 = vst [vmem:[#allocation31_spill] sm:$0xff] %v9437_v34  ;;  %v9474_v34 = vpop.f32.mrf.mxu3 }
 0x24e   :  { %v9415_v27 = vld.sshfl [vmem:[#allocation1 + $0x10] sm:$0xff pattern:$0x75316420]  ;;  %v9417_v51 = vld.sshfl [vmem:[#allocation1 + $0x18] sm:$0xff pattern:$0x75316420]  ;;  %v3136_v5 = vpop.permute.xlu0 %3135 }
 0x24f   :  { %5144 = vst [vmem:[#allocation1 + $0x10] ss:$2 sm:$0xff] %v8177_v16  ;;  %v3142_v63 = vsel %vm2879_vm5, %v3136_v5, %v3138_v11  ;;  %v3141_v6 = vsel %vm2879_vm5, %v3134_v2, %v3136_v5 }
 0x250   :  { %7800 = vmatpush.msk.msra.mxu1 %vm105_vm1, %v3141_v6  ;;  %7802 = vmatpush.msk.msra.mxu2 %vm105_vm1, %v3142_v63  ;;  %11621 = vst [vmem:[#allocation33_spill] sm:$0xff] %v9447_v31  ;;  %v7778_v6 = vld [vmem:[%s11578_s1 + $0x120] sm:$0xff]  ;;  %v9469_v63 = vpop.f32.mrf.mxu1 }
 0x251   :  { %v9426_v1 = vld.sshfl [vmem:[#allocation1 + $0x8] sm:$0xff pattern:$0x75316420]  ;;  %v9428_v14 = vld.sshfl [vmem:[#allocation1] sm:$0xff pattern:$0x75316420]  ;;  %7801 = vmatmul.msk.f32.vlgmr.msra.gmra.mxu1 %vm101_vm2, %v7777_v47  ;;  %7803 = vmatmul.msk.f32.vlgmr.msra.gmra.mxu2 %vm101_vm2, %v7777_v47 }
 0x252   :  { %5142 = vst [vmem:[#allocation1] ss:$2 sm:$0xff] %v8174_v13 }
 0x253   :  { %4130 = vrot.lane.b32.xlu2 %v9098_v46, %s8111_s9  ;;  %4217 = vrot.lane.b32.xlu1 %v9129_v41, %s8111_s9  ;;  %11622 = vst [vmem:[#allocation34_spill] sm:$0xff] %v9469_v63 }
 0x254   :  { %4215 = vrot.lane.b32.xlu0 %v9127_v39, %s8111_s9  ;;  %v3221_v11 = vpop.permute.xlu1 %3220  ;;  %11623 = vst [vmem:[#allocation35_spill] sm:$0xff] %v9474_v34 }
 0x255   :  { %v3228_v46 = vsel %vm2879_vm5, %v3221_v11, %v9331_v42  ;;  %v9465_v5 = vpop.permute.xlu2 %3487  ;;  %v9478_v11 = vpop.f32.mrf.mxu2 }
 0x256   :  { %v9443_v59 = vld.sshfl [vmem:[#allocation1 + $0x18] sm:$0xff pattern:$0x75316420]  ;;  %v9445_v58 = vld.sshfl [vmem:[#allocation1 + $0x10] sm:$0xff pattern:$0x75316420]  ;;  %v3225_v41 = vpop.permute.xlu0 %3224  ;;  %7806 = vmatpush.msk.msrb.mxu0 %vm105_vm1, %v3228_v46 }
 0x257   :  { %11620 = vst [vmem:[#allocation32_spill] sm:$0xff] %v9445_v58  ;;  %v3229_v39 = vsel %vm2879_vm5, %v9331_v42, %v3225_v41  ;;  %7807 = vmatmul.msk.f32.vlgmr.msrb.gmra.mxu0 %vm101_vm2, %v7778_v6 }
 0x258   :  { %5231 = vst [vmem:[#allocation1 + $0x10] ss:$2 sm:$0xff] %v8195_v24  ;;  %7808 = vmatpush.msk.msrb.mxu1 %vm105_vm1, %v3229_v39  ;;  %v9493_v39 = vpop.f32.mrf.mxu0 }
 0x259   :  { %v9459_v47 = vld.sshfl [vmem:[#allocation1 + $0x8] sm:$0xff pattern:$0x75316420]  ;;  %v9461_v2 = vld.sshfl [vmem:[#allocation1] sm:$0xff pattern:$0x75316420]  ;;  %7809 = vmatmul.msk.f32.vlgmr.msrb.gmra.mxu1 %vm101_vm2, %v7778_v6 }
 0x25a   :  { %5229 = vst [vmem:[#allocation1] ss:$2 sm:$0xff] %v8191_v21 }
 0x25b   :  { %11624 = vst [vmem:[#allocation36_spill] sm:$0xff] %v9478_v11  ;;  %4211 = vrot.lane.b32.xlu1 %v9138_v30, %s8111_s9  ;;  %4333 = vrot.lane.b32.xlu2 %v9164_v25, %s8112_s2  ;;  %v7779_v25 = vld [vmem:[%s11578_s1 + $0x128] sm:$0xff] }
 0x25c   :  { %4213 = vrot.lane.b32.xlu0 %v9136_v3, %s8111_s9  ;;  %v3227_v42 = vpop.permute.xlu1 %3226  ;;  %11626 = vst [vmem:[#allocation38_spill] sm:$0xff] %v9493_v39  ;;  %v3402_v3 = vsel %vm2879_vm5, %v3395_v60, %v9401_v44 }
 0x25d   :  { %v3230_v11 = vsel %vm2879_vm5, %v3225_v41, %v3227_v42  ;;  %v9496_v34 = vpop.permute.xlu2 %3481  ;;  %v9512_v41 = vpop.f32.mrf.mxu1 }
 0x25e   :  { %v3310_v30 = vpop.permute.xlu0 %3309  ;;  %7810 = vmatpush.msk.msrb.mxu2 %vm105_vm1, %v3230_v11  ;;  %11627 = vst [vmem:[#allocation39_spill] sm:$0xff] %v9512_v41  ;;  %v9515_v11 = vpop.f32.mrf.mxu3 }
 0x25f   :  { %v9480_v31 = vld.sshfl [vmem:[#allocation1 + $0x10] sm:$0xff pattern:$0x75316420]  ;;  %v9482_v58 = vld.sshfl [vmem:[#allocation1 + $0x18] sm:$0xff pattern:$0x75316420]  ;;  %v3315_v39 = vsel %vm2879_vm5, %v9362_v20, %v3310_v30  ;;  %7811 = vmatmul.msk.f32.vlgmr.msrb.gmra.mxu2 %vm101_vm2, %v7778_v6  ;;  %v9526_v20 = vpop.f32.mrf.mxu2 }
 0x260   :  { %11625 = vst [vmem:[#allocation37_spill] sm:$0xff] %v9482_v58  ;;  %7812 = vmatpush.msk.msrb.mxu3 %vm105_vm1, %v3315_v39  ;;  %7818 = vmatpush.msk.msra.mxu2 %vm105_vm1, %v3402_v3  ;;  %v7780_v6 = vld [vmem:[%s11578_s1 + $0x130] sm:$0xff] }
 0x261   :  { %5318 = vst [vmem:[#allocation1 + $0x10] ss:$2 sm:$0xff] %v8213_v32  ;;  %v9491_v46 = vld.sshfl [vmem:[#allocation1 + $0x8] sm:$0xff pattern:$0x75316420]  ;;  %7813 = vmatmul.msk.f32.vlgmr.msrb.gmra.mxu3 %vm101_vm2, %v7779_v25 }
 0x262   :  { %v9498_v63 = vld.sshfl [vmem:[#allocation1] sm:$0xff pattern:$0x75316420]  ;;  %11628 = vst [vmem:[#allocation40_spill] sm:$0xff] %v9515_v11 }
 0x263   :  { %5316 = vst [vmem:[#allocation1] ss:$2 sm:$0xff] %v8209_v29  ;;  %4331 = vrot.lane.b32.xlu1 %v9166_v62, %s8112_s2  ;;  %4419 = vrot.lane.b32.xlu2 %v9189_v19, %s8112_s2 }
 0x264   :  { %11629 = vst [vmem:[#allocation41_spill] sm:$0xff] %v9526_v20  ;;  %4335 = vrot.lane.b32.xlu0 %v9155_v43, %s8112_s2  ;;  %v3312_v60 = vpop.permute.xlu1 %3311  ;;  %v9542_v20 = vpop.f32.mrf.mxu0 }
 0x265   :  { %v3316_v39 = vsel %vm2879_vm5, %v3310_v30, %v3312_v60  ;;  %v9534_v3 = vpop.permute.xlu2 %3601  ;;  %11631 = vst [vmem:[#allocation43_spill] sm:$0xff] %v9542_v20 }
 0x266   :  { %v3314_v19 = vpop.permute.xlu0 %3313  ;;  %7814 = vmatpush.msk.msra.mxu0 %vm105_vm1, %v3316_v39 }
 0x267   :  { %v3317_v43 = vsel %vm2879_vm5, %v3312_v60, %v3314_v19  ;;  %7815 = vmatmul.msk.f32.vlgmr.msra.gmra.mxu0 %vm101_vm2, %v7779_v25  ;;  %7819 = vmatmul.msk.f32.vlgmr.msra.gmra.mxu2 %vm101_vm2, %v7780_v6  ;;  %v9560_v60 = vpop.f32.mrf.mxu3 }
 0x268   :  { %v9517_v42 = vld.sshfl [vmem:[#allocation1 + $0x10] sm:$0xff pattern:$0x75316420]  ;;  %v9519_v58 = vld.sshfl [vmem:[#allocation1 + $0x18] sm:$0xff pattern:$0x75316420]  ;;  %7816 = vmatpush.msk.msra.mxu1 %vm105_vm1, %v3317_v43 }
 0x269   :  { %5405 = vst [vmem:[#allocation1 + $0x10] ss:$2 sm:$0xff] %v8230_v40  ;;  %7817 = vmatmul.msk.f32.vlgmr.msra.gmra.mxu1 %vm101_vm2, %v7779_v25 }
 0x26a   :  { %v9536_v62 = vld.sshfl [vmem:[#allocation1 + $0x8] sm:$0xff pattern:$0x75316420]  ;;  %v9538_v11 = vld.sshfl [vmem:[#allocation1] sm:$0xff pattern:$0x75316420] }
 0x26b   :  { %11630 = vst [vmem:[#allocation42_spill] sm:$0xff] %v9536_v62  ;;  %v9553_v62 = vpop.f32.mrf.mxu1  ;;  %4337 = vrot.lane.b32.xlu1 %v9157_v36, %s8112_s2  ;;  %4508 = vrot.lane.b32.xlu2 %v9217_v50, %s8112_s2 }
 0x26c   :  { %5403 = vst [vmem:[#allocation1] ss:$2 sm:$0xff] %v8226_v37  ;;  %4421 = vrot.lane.b32.xlu0 %v9191_v17, %s8112_s2  ;;  %v3486_v25 = vpop.permute.xlu1 %3485  ;;  %v9576_v17 = vpop.f32.mrf.mxu0 }
 0x26d   :  { %11632 = vst [vmem:[#allocation44_spill] sm:$0xff] %v9553_v62  ;;  %v3608_v39 = vpop.permute.xlu2 %3607  ;;  %v9568_v62 = vpop.f32.mrf.mxu2  ;;  %v3491_v36 = vsel %vm2879_vm5, %v3486_v25, %v9465_v5  ;;  %v7781_v5 = vld [vmem:[%s11578_s1 + $0x138] sm:$0xff] }
 0x26e   :  { %11633 = vst [vmem:[#allocation45_spill] sm:$0xff] %v9560_v60  ;;  %v3399_v20 = vpop.permute.xlu0 %3398 }
 0x26f   :  { %11634 = vst [vmem:[#allocation46_spill] sm:$0xff] %v9568_v62  ;;  %v3403_v50 = vsel %vm2879_vm5, %v9401_v44, %v3399_v20 }
 0x270   :  { %v9549_v30 = vld.sshfl [vmem:[#allocation1 + $0x10] sm:$0xff pattern:$0x75316420]  ;;  %v9551_v41 = vld.sshfl [vmem:[#allocation1 + $0x18] sm:$0xff pattern:$0x75316420]  ;;  %7820 = vmatpush.msk.msra.mxu3 %vm105_vm1, %v3403_v50 }
 0x271   :  { %5492 = vst [vmem:[#allocation1 + $0x10] ss:$2 sm:$0xff] %v8247_v48  ;;  %7821 = vmatmul.msk.f32.vlgmr.msra.gmra.mxu3 %vm101_vm2, %v7780_v6 }
 0x272   :  { %11635 = vst [vmem:[#allocation47_spill] sm:$0xff] %v9576_v17  ;;  %7828 = vmatpush.msk.msrb.mxu3 %vm105_vm1, %v3491_v36 }
 0x273   :  { %v9564_v19 = vld.sshfl [vmem:[#allocation1 + $0x8] sm:$0xff pattern:$0x75316420]  ;;  %v9566_v43 = vld.sshfl [vmem:[#allocation1] sm:$0xff pattern:$0x75316420]  ;;  %4423 = vrot.lane.b32.xlu1 %v9177_v33, %s8112_s2  ;;  %4506 = vrot.lane.b32.xlu2 %v9219_v52, %s8112_s2  ;;  %v9594_v36 = vpop.f32.mrf.mxu1 }
 0x274   :  { %5490 = vst [vmem:[#allocation1] ss:$2 sm:$0xff] %v8244_v45  ;;  %4425 = vrot.lane.b32.xlu0 %v9179_v35, %s8112_s2  ;;  %v3484_v44 = vpop.permute.xlu1 %3483 }
 0x275   :  { %11638 = vst [vmem:[#allocation50_spill] sm:$0xff] %v9594_v36  ;;  %v3489_v50 = vsel %vm2879_vm5, %v9496_v34, %v3484_v44  ;;  %v3490_v33 = vsel %vm2879_vm5, %v3484_v44, %v3486_v25  ;;  %v9599_v17 = vpop.permute.xlu2 %3693  ;;  %v9613_v34 = vpop.f32.mrf.mxu2 }
 0x276   :  { %v3401_v35 = vpop.permute.xlu0 %3400  ;;  %7824 = vmatpush.msk.msrb.mxu1 %vm105_vm1, %v3489_v50  ;;  %7826 = vmatpush.msk.msrb.mxu2 %vm105_vm1, %v3490_v33  ;;  %11640 = vst [vmem:[#allocation52_spill] sm:$0xff] %v9613_v34  ;;  %v9622_v50 = vpop.f32.mrf.mxu0 }
 0x277   :  { %v3404_v36 = vsel %vm2879_vm5, %v3399_v20, %v3401_v35  ;;  %7825 = vmatmul.msk.f32.vlgmr.msrb.gmra.mxu1 %vm101_vm2, %v7781_v5  ;;  %7827 = vmatmul.msk.f32.vlgmr.msrb.gmra.mxu2 %vm101_vm2, %v7781_v5  ;;  %11641 = vst [vmem:[#allocation53_spill] sm:$0xff] %v9622_v50 }
 0x278   :  { %v9580_v60 = vld.sshfl [vmem:[#allocation1 + $0x10] sm:$0xff pattern:$0x75316420]  ;;  %v9582_v62 = vld.sshfl [vmem:[#allocation1 + $0x18] sm:$0xff pattern:$0x75316420]  ;;  %7822 = vmatpush.msk.msrb.mxu0 %vm105_vm1, %v3404_v36 }
 0x279   :  { %11636 = vst [vmem:[#allocation48_spill] sm:$0xff] %v9580_v60  ;;  %v9605_v60 = vpop.f32.mrf.mxu3  ;;  %7823 = vmatmul.msk.f32.vlgmr.msrb.gmra.mxu0 %vm101_vm2, %v7780_v6  ;;  %7829 = vmatmul.msk.f32.vlgmr.msrb.gmra.mxu3 %vm101_vm2, %v7781_v5  ;;  %v7830_v6 = vld [vmem:[%s11578_s1 + $0x140] sm:$0xff] }
 0x27a   :  { %11637 = vst [vmem:[#allocation49_spill] sm:$0xff] %v9582_v62 }
 0x27b   :  { %5579 = vst [vmem:[#allocation1 + $0x10] ss:$2 sm:$0xff] %v8265_v56  ;;  %v9601_v52 = vld.sshfl [vmem:[#allocation1] sm:$0xff pattern:$0x75316420]  ;;  %4597 = vrot.lane.b32.xlu1 %v9239_v18, %s8112_s2  ;;  %4599 = vrot.lane.b32.xlu2 %v9241_v22, %s8112_s2  ;;  %v9643_v22 = vpop.f32.mrf.mxu1 }
 0x27c   :  { %v9603_v62 = vld.sshfl [vmem:[#allocation1 + $0x8] sm:$0xff pattern:$0x75316420]  ;;  %11639 = vst [vmem:[#allocation51_spill] sm:$0xff] %v9605_v60  ;;  %4510 = vrot.lane.b32.xlu0 %v9208_v49, %s8112_s2  ;;  %v3606_v20 = vpop.permute.xlu1 %3605 }
 0x27d   :  { %5577 = vst [vmem:[#allocation1] ss:$2 sm:$0xff] %v8261_v53  ;;  %v3612_v5 = vsel %vm3609_vm6, %v3606_v20, %v3608_v39  ;;  %v9635_v36 = vpop.permute.xlu2 %3867 }
 0x27e   :  { %v3604_v35 = vpop.permute.xlu0 %3603  ;;  %7842 = vmatpush.msk.msra.mxu2 %vm105_vm1, %v3612_v5  ;;  %11642 = vst [vmem:[#allocation54_spill] sm:$0xff] %v9643_v22  ;;  %v9655_v5 = vpop.f32.mrf.mxu2 }
 0x27f   :  { %v3610_v49 = vsel %vm3609_vm6, %v9534_v3, %v3604_v35  ;;  %v3611_v50 = vsel %vm3609_vm6, %v3604_v35, %v3606_v20  ;;  %7843 = vmatmul.msk.f32.vlgmr.msra.gmra.mxu2 %vm101_vm2, %v7830_v6  ;;  %11644 = vst [vmem:[#allocation56_spill] sm:$0xff] %v9655_v5  ;;  %v11645_v3 = vld [vmem:[#allocation7_spill] sm:$0xff]  ;;  %v9668_v35 = vpop.f32.mrf.mxu0 }
 0x280   :  { %7838 = vmatpush.msk.msra.mxu0 %vm105_vm1, %v3610_v49  ;;  %7840 = vmatpush.msk.msra.mxu1 %vm105_vm1, %v3611_v50  ;;  %v11646_v50 = vld [vmem:[#allocation5_spill] sm:$0xff]  ;;  %11647 = vst [vmem:[#allocation7_spill] sm:$0xff] %v9668_v35 }
 0x281   :  { %v9649_v39 = vpop.f32.mrf.mxu3  ;;  %7839 = vmatmul.msk.f32.vlgmr.msra.gmra.mxu0 %vm101_vm2, %v7830_v6  ;;  %7841 = vmatmul.msk.f32.vlgmr.msra.gmra.mxu1 %vm101_vm2, %v7830_v6 }
 0x282   :  { %v9618_v25 = vld.sshfl [vmem:[#allocation1 + $0x10] sm:$0xff pattern:$0x75316420]  ;;  %v9620_v44 = vld.sshfl [vmem:[#allocation1 + $0x18] sm:$0xff pattern:$0x75316420] }
 0x283   :  { %5666 = vst [vmem:[#allocation1 + $0x10] ss:$2 sm:$0xff] %v8282_v0  ;;  %4595 = vrot.lane.b32.xlu1 %v9248_v38, %s8112_s2  ;;  %4593 = vrot.lane.b32.xlu2 %v11645_v3, %s8112_s2 }
 0x284   :  { %v9637_v33 = vld.sshfl [vmem:[#allocation1 + $0x8] sm:$0xff pattern:$0x75316420]  ;;  %v9639_v18 = vld.sshfl [vmem:[#allocation1] sm:$0xff pattern:$0x75316420]  ;;  %4512 = vrot.lane.b32.xlu0 %v11646_v50, %s8112_s2  ;;  %v3692_v20 = vpop.permute.xlu1 %3691  ;;  %v9685_v50 = vpop.f32.mrf.mxu1 }
 0x285   :  { %5664 = vst [vmem:[#allocation1] ss:$2 sm:$0xff] %v8279_v61  ;;  %v3698_v6 = vsel %vm3609_vm6, %v3692_v20, %v9599_v17  ;;  %v9672_v49 = vpop.permute.xlu2 %3865 }
 0x286   :  { %11643 = vst [vmem:[#allocation55_spill] sm:$0xff] %v9649_v39  ;;  %v3690_v38 = vpop.permute.xlu0 %3689  ;;  %7846 = vmatpush.msk.msrb.mxu0 %vm105_vm1, %v3698_v6 }
 0x287   :  { %v3697_v3 = vsel %vm3609_vm6, %v3690_v38, %v3692_v20  ;;  %11648 = vst [vmem:[#allocation5_spill] sm:$0xff] %v9685_v50 }
 0x288   :  { %7844 = vmatpush.msk.msra.mxu3 %vm105_vm1, %v3697_v3 }
 0x289   :  { %v9689_v35 = vpop.f32.mrf.mxu3 }
 0x28a   :  { %v9657_v22 = vld.sshfl [vmem:[#allocation1 + $0x10] sm:$0xff pattern:$0x75316420]  ;;  %v9659_v34 = vld.sshfl [vmem:[#allocation1 + $0x18] sm:$0xff pattern:$0x75316420] }
 0x28b   :  { %5786 = vst [vmem:[#allocation1 + $0x10] ss:$2 sm:$0xff] %v8163_v10  ;;  %v7831_v10 = vld [vmem:[%s11578_s1 + $0x148] sm:$0xff]  ;;  %4684 = vrot.lane.b32.xlu1 %v9270_v12, %s8112_s2  ;;  %4680 = vrot.lane.b32.xlu2 %v9288_v8, %s8112_s2 }
 0x28c   :  { %v9674_v5 = vld.sshfl [vmem:[#allocation1 + $0x8] sm:$0xff pattern:$0x75316420]  ;;  %v9676_v39 = vld.sshfl [vmem:[#allocation1] sm:$0xff pattern:$0x75316420]  ;;  %7845 = vmatmul.msk.f32.vlgmr.msra.gmra.mxu3 %vm101_vm2, %v7831_v10  ;;  %7847 = vmatmul.msk.f32.vlgmr.msrb.gmra.mxu0 %vm101_vm2, %v7831_v10  ;;  %v3696_v20 = vpop.permute.xlu1 %3695 }
 0x28d   :  { %5784 = vst [vmem:[#allocation1] ss:$2 sm:$0xff] %v8160_v9  ;;  %v9700_v9 = vpop.f32.mrf.mxu2  ;;  %4682 = vrot.lane.b32.xlu0 %v9286_v26, %s8112_s2  ;;  %v3699_v38 = vsel %vm3609_vm6, %v9599_v17, %v3696_v20  ;;  %v9706_v3 = vpop.permute.xlu2 %3954  ;;  %v11655_v20 = vld [vmem:[#allocation11_spill] sm:$0xff] }
 0x28e   :  { %11649 = vst [vmem:[#allocation57_spill] sm:$0xff] %v9689_v35  ;;  %v3779_v12 = vpop.permute.xlu0 %3778  ;;  %7848 = vmatpush.msk.msrb.mxu1 %vm105_vm1, %v3699_v38  ;;  %v9721_v17 = vpop.f32.mrf.mxu1 }
 0x28f   :  { %11650 = vst [vmem:[#allocation58_spill] sm:$0xff] %v9700_v9  ;;  %7849 = vmatmul.msk.f32.vlgmr.msrb.gmra.mxu1 %vm101_vm2, %v7831_v10  ;;  %v11656_v9 = vld [vmem:[#allocation18_spill] sm:$0xff] }
 0x290   :  { %11654 = vst [vmem:[#allocation62_spill] sm:$0xff] %v9721_v17 }
 0x291   :  { %v9728_v38 = vpop.f32.mrf.mxu3 }
 0x292   :  { %v9691_v60 = vld.sshfl [vmem:[#allocation1 + $0x10] sm:$0xff pattern:$0x75316420]  ;;  %v9693_v6 = vld.sshfl [vmem:[#allocation1 + $0x18] sm:$0xff pattern:$0x75316420] }
 0x293   :  { %5874 = vst [vmem:[#allocation1 + $0x10] ss:$2 sm:$0xff] %v8177_v16  ;;  %v9714_v16 = vpop.f32.mrf.mxu0  ;;  %4686 = vrot.lane.b32.xlu2 %v11655_v20, %s8112_s2  ;;  %4769 = vrot.lane.b32.xlu1 %v11656_v9, %s8112_s2 }
 0x294   :  { %v9708_v35 = vld.sshfl [vmem:[#allocation1 + $0x8] sm:$0xff pattern:$0x75316420]  ;;  %v9710_v50 = vld.sshfl [vmem:[#allocation1] sm:$0xff pattern:$0x75316420]  ;;  %v3781_v10 = vpop.permute.xlu1 %3780 }
 0x295   :  { %5872 = vst [vmem:[#allocation1] ss:$2 sm:$0xff] %v8174_v13  ;;  %v11658_v13 = vld [vmem:[#allocation19_spill] sm:$0xff]  ;;  %v3785_v17 = vsel %vm3609_vm6, %v3779_v12, %v3781_v10  ;;  %v9742_v9 = vpop.f32.mrf.mxu2 }
 0x296   :  { %11651 = vst [vmem:[#allocation59_spill] sm:$0xff] %v9714_v16  ;;  %4767 = vrot.lane.b32.xlu0 %v11658_v13, %s8112_s2  ;;  %v7832_v16 = vld [vmem:[%s11578_s1 + $0x150] sm:$0xff]  ;;  %7852 = vmatpush.msk.msrb.mxu3 %vm105_vm1, %v3785_v17 }
 0x297   :  { %11657 = vst [vmem:[#allocation11_spill] sm:$0xff] %v9728_v38  ;;  %7853 = vmatmul.msk.f32.vlgmr.msrb.gmra.mxu3 %vm101_vm2, %v7832_v16 }
 0x298   :  { %11661 = vst [vmem:[#allocation63_spill] sm:$0xff] %v9742_v9 }
 0x29a   :  { %v9717_v26 = vld.sshfl [vmem:[#allocation1 + $0x10] sm:$0xff pattern:$0x75316420]  ;;  %v9719_v8 = vld.sshfl [vmem:[#allocation1 + $0x18] sm:$0xff pattern:$0x75316420] }
 0x29b   :  { %11652 = vst [vmem:[#allocation60_spill] sm:$0xff] %v9717_v26  ;;  %v9749_v38 = vpop.f32.mrf.mxu0 }
 0x29c   :  { %11653 = vst [vmem:[#allocation61_spill] sm:$0xff] %v9719_v8  ;;  %v9736_v8 = vpop.permute.xlu2 %4039  ;;  %v9738_v20 = vld.sshfl [vmem:[#allocation1 + $0x8] sm:$0xff pattern:$0x75316420] }
 0x29d   :  { %5961 = vst [vmem:[#allocation1 + $0x10] ss:$2 sm:$0xff] %v8195_v24  ;;  %v9740_v26 = vld.sshfl [vmem:[#allocation1] sm:$0xff pattern:$0x75316420]  ;;  %v3777_v24 = vpop.permute.xlu0 %3776 }
 0x29e   :  { %11659 = vst [vmem:[#allocation18_spill] sm:$0xff] %v9738_v20  ;;  %v3784_v13 = vsel %vm3609_vm6, %v3777_v24, %v3779_v12  ;;  %v3872_v20 = vsel %vm3609_vm6, %v9672_v49, %v9635_v36  ;;  %v11666_v12 = vld [vmem:[#allocation17_spill] sm:$0xff]  ;;  %4856 = vrot.lane.b32.xlu0 %v9357_v55, %s8112_s2  ;;  %v3783_v24 = vpop.permute.xlu1 %3782 }
 0x29f   :  { %11660 = vst [vmem:[#allocation19_spill] sm:$0xff] %v9740_v26  ;;  %7850 = vmatpush.msk.msrb.mxu2 %vm105_vm1, %v3784_v13  ;;  %4773 = vrot.lane.b32.xlu1 %v11666_v12, %s8112_s2  ;;  %v9767_v13 = vpop.f32.mrf.mxu1 }
 0x2a0   :  { %5959 = vst [vmem:[#allocation1] ss:$2 sm:$0xff] %v8191_v21  ;;  %7851 = vmatmul.msk.f32.vlgmr.msrb.gmra.mxu2 %vm101_vm2, %v7832_v16  ;;  %v11665_v21 = vld [vmem:[#allocation16_spill] sm:$0xff] }
 0x2a1   :  { %11662 = vst [vmem:[#allocation64_spill] sm:$0xff] %v9749_v38  ;;  %7858 = vmatpush.msk.msra.mxu2 %vm105_vm1, %v3872_v20  ;;  %4771 = vrot.lane.b32.xlu2 %v11665_v21, %s8112_s2  ;;  %v3786_v20 = vsel %vm3609_vm6, %v3781_v10, %v3783_v24  ;;  %v9776_v21 = vpop.f32.mrf.mxu3  ;;  %v9786_v10 = vpop.f32.mrf.mxu2 }
 0x2a2   :  { %11667 = vst [vmem:[#allocation16_spill] sm:$0xff] %v9776_v21  ;;  %7854 = vmatpush.msk.msra.mxu0 %vm105_vm1, %v3786_v20 }
 0x2a3   :  { %7855 = vmatmul.msk.f32.vlgmr.msra.gmra.mxu0 %vm101_vm2, %v7832_v16  ;;  %11668 = vst [vmem:[#allocation17_spill] sm:$0xff] %v9786_v10  ;;  %v9795_v20 = vpop.f32.mrf.mxu0 }
 0x2a4   :  { %v9756_v9 = vld.sshfl [vmem:[#allocation1 + $0x10] sm:$0xff pattern:$0x75316420]  ;;  %v9758_v17 = vld.sshfl [vmem:[#allocation1 + $0x18] sm:$0xff pattern:$0x75316420]  ;;  %v9770_v38 = vpop.permute.xlu2 %4043 }
 0x2a5   :  { %11663 = vst [vmem:[#allocation65_spill] sm:$0xff] %v9756_v9  ;;  %v3870_v26 = vpop.permute.xlu0 %3869 }
 0x2a6   :  { %11664 = vst [vmem:[#allocation66_spill] sm:$0xff] %v9758_v17  ;;  %v3873_v55 = vsel %vm3609_vm6, %v9635_v36, %v3870_v26  ;;  %4854 = vrot.lane.b32.xlu0 %v9359_v28, %s8112_s2 }
 0x2a7   :  { %6048 = vst [vmem:[#allocation1 + $0x10] ss:$2 sm:$0xff] %v8213_v32  ;;  %v9772_v9 = vld.sshfl [vmem:[#allocation1 + $0x8] sm:$0xff pattern:$0x75316420]  ;;  %v7833_v32 = vld [vmem:[%s11578_s1 + $0x158] sm:$0xff]  ;;  %7860 = vmatpush.msk.msra.mxu3 %vm105_vm1, %v3873_v55  ;;  %4858 = vrot.lane.b32.xlu1 %v9346_v57, %s8112_s2 }
 0x2a8   :  { %v9774_v17 = vld.sshfl [vmem:[#allocation1] sm:$0xff pattern:$0x75316420]  ;;  %7859 = vmatmul.msk.f32.vlgmr.msra.gmra.mxu2 %vm101_vm2, %v7833_v32  ;;  %7861 = vmatmul.msk.f32.vlgmr.msra.gmra.mxu3 %vm101_vm2, %v7833_v32  ;;  %11669 = vst [vmem:[#allocation67_spill] sm:$0xff] %v9795_v20  ;;  %v9811_v20 = vpop.f32.mrf.mxu1 }
 0x2a9   :  { %6046 = vst [vmem:[#allocation1] ss:$2 sm:$0xff] %v8209_v29  ;;  %4945 = vrot.lane.b32.xlu2 %v9382_v54, %s8112_s2  ;;  %v3953_v29 = vpop.permute.xlu1 %3952  ;;  %v9817_v54 = vpop.f32.mrf.mxu3 }
 0x2aa   :  { %11670 = vst [vmem:[#allocation68_spill] sm:$0xff] %v9811_v20  ;;  %v9821_v28 = vpop.f32.mrf.mxu2 }
 0x2ab   :  { %11671 = vst [vmem:[#allocation69_spill] sm:$0xff] %v9817_v54 }
 0x2ac   :  { %v9804_v36 = vpop.permute.xlu2 %4128  ;;  %11672 = vst [vmem:[#allocation70_spill] sm:$0xff] %v9821_v28 }
 0x2ad   :  { %v3864_v55 = vpop.permute.xlu0 %3863 }
 0x2ae   :  { %v9791_v12 = vld.sshfl [vmem:[#allocation1 + $0x10] sm:$0xff pattern:$0x75316420]  ;;  %v9793_v24 = vld.sshfl [vmem:[#allocation1 + $0x18] sm:$0xff pattern:$0x75316420]  ;;  %v3871_v57 = vsel %vm3609_vm6, %v3864_v55, %v9672_v49  ;;  %4947 = vrot.lane.b32.xlu0 %v9384_v15, %s8112_s2  ;;  %v9840_v55 = vpop.f32.mrf.mxu0 }
 0x2af   :  { %6135 = vst [vmem:[#allocation1 + $0x10] ss:$2 sm:$0xff] %v8230_v40  ;;  %v3959_v40 = vsel %vm3609_vm6, %v3953_v29, %v9706_v3  ;;  %7856 = vmatpush.msk.msra.mxu1 %vm105_vm1, %v3871_v57  ;;  %4860 = vrot.lane.b32.xlu1 %v9348_v23, %s8112_s2  ;;  %v7834_v15 = vld [vmem:[%s11578_s1 + $0x160] sm:$0xff] }
 0x2b0   :  { %v9806_v16 = vld.sshfl [vmem:[#allocation1 + $0x8] sm:$0xff pattern:$0x75316420]  ;;  %v9808_v26 = vld.sshfl [vmem:[#allocation1] sm:$0xff pattern:$0x75316420]  ;;  %7857 = vmatmul.msk.f32.vlgmr.msra.gmra.mxu1 %vm101_vm2, %v7833_v32 }
 0x2b1   :  { %6133 = vst [vmem:[#allocation1] ss:$2 sm:$0xff] %v8226_v37  ;;  %7864 = vmatpush.msk.msrb.mxu1 %vm105_vm1, %v3959_v40  ;;  %4943 = vrot.lane.b32.xlu2 %v9397_v4, %s8112_s2  ;;  %v4038_v49 = vpop.permute.xlu1 %4037  ;;  %v9838_v32 = vld [vmem:[%s11578_s1 + $0x168] sm:$0xff] }
 0x2b2   :  { %11673 = vst [vmem:[#allocation71_spill] sm:$0xff] %v9840_v55  ;;  %v4045_v23 = vsel %vm3609_vm6, %v4038_v49, %v9736_v8  ;;  %v9857_v49 = vpop.f32.mrf.mxu1 }
 0x2b3   :  { %7868 = vmatpush.msk.msrb.mxu3 %vm105_vm1, %v4045_v23  ;;  %11674 = vst [vmem:[#allocation72_spill] sm:$0xff] %v9857_v49  ;;  %v9861_v23 = vpop.f32.mrf.mxu3 }
 0x2b4   :  { %v4131_v57 = vpop.permute.xlu2 %4130  ;;  %7869 = vmatmul.msk.f32.vlgmr.msrb.gmra.mxu3 %vm101_vm2, %v9838_v32  ;;  %11675 = vst [vmem:[#allocation73_spill] sm:$0xff] %v9861_v23 }
 0x2b6   :  { %v9824_v10 = vld.sshfl [vmem:[#allocation1 + $0x10] sm:$0xff pattern:$0x75316420]  ;;  %v9826_v37 = vld.sshfl [vmem:[#allocation1 + $0x18] sm:$0xff pattern:$0x75316420]  ;;  %4941 = vrot.lane.b32.xlu0 %v9399_v7, %s8112_s2 }
 0x2b7   :  { %6222 = vst [vmem:[#allocation1 + $0x10] ss:$2 sm:$0xff] %v8247_v48  ;;  %v3951_v48 = vpop.permute.xlu0 %3950  ;;  %5063 = vrot.lane.b32.xlu1 %v9426_v1, %s8113_s16  ;;  %v9888_v1 = vpop.f32.mrf.mxu0  ;;  %s7549_s2 = sshll.u32 %s11582_s5, 4  ;;  %s7550_s2 = int_to_ptr.hbm [resolvable:$true] %s7549_s2 }
 0x2b8   :  { %v9844_v40 = vld.sshfl [vmem:[#allocation1 + $0x8] sm:$0xff pattern:$0x75316420]  ;;  %v9846_v4 = vld.sshfl [vmem:[#allocation1] sm:$0xff pattern:$0x75316420]  ;;  %v3958_v28 = vsel %vm3609_vm6, %v3951_v48, %v3953_v29  ;;  %7865 = vmatmul.msk.f32.vlgmr.msrb.gmra.mxu1 %vm101_vm2, %v7834_v15 }
 0x2b9   :  { %6220 = vst [vmem:[#allocation1] ss:$2 sm:$0xff] %v8244_v45  ;;  %7862 = vmatpush.msk.msrb.mxu0 %vm105_vm1, %v3958_v28  ;;  %5065 = vrot.lane.b32.xlu2 %v9415_v27, %s8113_s16  ;;  %v9872_v45 = vpop.f32.mrf.mxu2  ;;  %v7836_v29 = vld [vmem:[%s11578_s1 + $0x170] sm:$0xff]  ;;  %v4127_v28 = vpop.permute.xlu1 %4126 }
 0x2ba   :  { %7863 = vmatmul.msk.f32.vlgmr.msrb.gmra.mxu0 %vm101_vm2, %v7834_v15  ;;  %11676 = vst [vmem:[#allocation74_spill] sm:$0xff] %v9872_v45  ;;  %v9900_v21 = vpop.f32.mrf.mxu1 }
 0x2bb   :  { %11677 = vst [vmem:[#allocation75_spill] sm:$0xff] %v9888_v1 }
 0x2bc   :  { %v9879_v48 = vpop.permute.xlu2 %4333 }
 0x2be   :  { %v9863_v55 = vld.sshfl [vmem:[#allocation1 + $0x10] sm:$0xff pattern:$0x75316420]  ;;  %v9865_v20 = vld.sshfl [vmem:[#allocation1 + $0x18] sm:$0xff pattern:$0x75316420]  ;;  %5061 = vrot.lane.b32.xlu0 %v9428_v14, %s8113_s16 }
 0x2bf   :  { %6309 = vst [vmem:[#allocation1 + $0x10] ss:$2 sm:$0xff] %v8265_v56  ;;  %v3957_v23 = vpop.permute.xlu0 %3956  ;;  %v4133_v56 = vsel %vm3609_vm6, %v4127_v28, %v9804_v36  ;;  %5149 = vrot.lane.b32.xlu1 %v9461_v2, %s8113_s16 }
 0x2c0   :  { %v9881_v49 = vld.sshfl [vmem:[#allocation1 + $0x8] sm:$0xff pattern:$0x75316420]  ;;  %v9883_v27 = vld.sshfl [vmem:[#allocation1] sm:$0xff pattern:$0x75316420]  ;;  %v3960_v7 = vsel %vm3609_vm6, %v9706_v3, %v3957_v23  ;;  %7876 = vmatpush.msk.msra.mxu3 %vm105_vm1, %v4133_v56 }
 0x2c1   :  { %6307 = vst [vmem:[#allocation1] ss:$2 sm:$0xff] %v8261_v53  ;;  %7866 = vmatpush.msk.msrb.mxu2 %vm105_vm1, %v3960_v7  ;;  %7877 = vmatmul.msk.f32.vlgmr.msra.gmra.mxu3 %vm101_vm2, %v7836_v29  ;;  %v9907_v53 = vpop.f32.mrf.mxu3  ;;  %v4125_v3 = vpop.permute.xlu1 %4124 }
 0x2c2   :  { %7867 = vmatmul.msk.f32.vlgmr.msrb.gmra.mxu2 %vm101_vm2, %v7834_v15  ;;  %5151 = vrot.lane.b32.xlu2 %v9459_v47, %s8113_s16  ;;  %11678 = vst [vmem:[#allocation76_spill] sm:$0xff] %v9907_v53  ;;  %v4132_v47 = vsel %vm3609_vm6, %v4125_v3, %v4127_v28  ;;  %v9919_v2 = vpop.f32.mrf.mxu2  ;;  %v9928_v53 = vpop.f32.mrf.mxu0  ;;  %v4134_v28 = vsel %vm3609_vm6, %v9804_v36, %v4131_v57  ;;  %v11685_v3 = vld [vmem:[#allocation32_spill] sm:$0xff] }
 0x2c3   :  { %11679 = vst [vmem:[#allocation77_spill] sm:$0xff] %v9919_v2  ;;  %7874 = vmatpush.msk.msra.mxu2 %vm105_vm1, %v4132_v47 }
 0x2c4   :  { %v9911_v15 = vpop.permute.xlu2 %4419  ;;  %11680 = vst [vmem:[#allocation78_spill] sm:$0xff] %v9928_v53  ;;  %v8000_v53 = vld [vmem:[%s11578_s1 + $0x210] sm:$0xff] }
 0x2c6   :  { %v9896_v45 = vld.sshfl [vmem:[#allocation1 + $0x10] sm:$0xff pattern:$0x75316420]  ;;  %v9898_v54 = vld.sshfl [vmem:[#allocation1 + $0x18] sm:$0xff pattern:$0x75316420]  ;;  %5067 = vrot.lane.b32.xlu0 %v9417_v51, %s8113_s16 }
 0x2c7   :  { %6396 = vst [vmem:[#allocation1 + $0x10] ss:$2 sm:$0xff] %v8282_v0  ;;  %v4042_v7 = vpop.permute.xlu0 %4041  ;;  %5238 = vrot.lane.b32.xlu1 %v9491_v46, %s8113_s16 }
 0x2c8   :  { %v9913_v23 = vld.sshfl [vmem:[#allocation1 + $0x8] sm:$0xff pattern:$0x75316420]  ;;  %v9915_v56 = vld.sshfl [vmem:[#allocation1] sm:$0xff pattern:$0x75316420]  ;;  %v4046_v0 = vsel %vm3609_vm6, %v9736_v8, %v4042_v7  ;;  %v4047_v14 = vsel %vm3609_vm6, %v4042_v7, %v9770_v38 }
 0x2c9   :  { %6394 = vst [vmem:[#allocation1] ss:$2 sm:$0xff] %v8279_v61  ;;  %7870 = vmatpush.msk.msra.mxu0 %vm105_vm1, %v4046_v0  ;;  %7872 = vmatpush.msk.msra.mxu1 %vm105_vm1, %v4047_v14  ;;  %v9944_v61 = vpop.f32.mrf.mxu1  ;;  %v4218_v8 = vpop.permute.xlu1 %4217 }
 0x2ca   :  { %7871 = vmatmul.msk.f32.vlgmr.msra.gmra.mxu0 %vm101_vm2, %v9838_v32  ;;  %7873 = vmatmul.msk.f32.vlgmr.msra.gmra.mxu1 %vm101_vm2, %v9838_v32  ;;  %11681 = vst [vmem:[#allocation79_spill] sm:$0xff] %v9944_v61  ;;  %v7837_v32 = vld [vmem:[%s11578_s1 + $0x178] sm:$0xff]  ;;  %v9951_v57 = vpop.f32.mrf.mxu3  ;;  %v9955_v46 = vpop.f32.mrf.mxu2 }
 0x2cb   :  { %7875 = vmatmul.msk.f32.vlgmr.msra.gmra.mxu2 %vm101_vm2, %v7836_v29  ;;  %7878 = vmatpush.msk.msrb.mxu0 %vm105_vm1, %v4134_v28  ;;  %11682 = vst [vmem:[#allocation80_spill] sm:$0xff] %v9951_v57  ;;  %v9959_v51 = vpop.f32.mrf.mxu0 }
 0x2cc   :  { %5155 = vrot.lane.b32.xlu2 %v9443_v59, %s8113_s16  ;;  %v9946_v36 = vpop.permute.xlu2 %4508  ;;  %11683 = vst [vmem:[#allocation81_spill] sm:$0xff] %v9955_v46 }
 0x2cd   :  { %11684 = vst [vmem:[#allocation82_spill] sm:$0xff] %v9959_v51 }
 0x2ce   :  { %5153 = vrot.lane.b32.xlu0 %v11685_v3, %s8113_s16  ;;  %v7886_v3 = vld [vmem:[%s11578_s1 + $0x180] sm:$0xff] }
 0x2cf   :  { %v4216_v38 = vpop.permute.xlu0 %4215  ;;  %5236 = vrot.lane.b32.xlu1 %v9498_v63, %s8113_s16 }
 0x2d0   :  { %v4221_v59 = vsel %vm3609_vm6, %v4216_v38, %v4218_v8  ;;  %v11689_v8 = vld [vmem:[#allocation37_spill] sm:$0xff] }
 0x2d1   :  { %7884 = vmatpush.msk.msrb.mxu3 %vm105_vm1, %v4221_v59  ;;  %v4212_v7 = vpop.permute.xlu1 %4211  ;;  %v9967_v14 = vpop.f32.mrf.mxu1 }
 0x2d2   :  { %7879 = vmatmul.msk.f32.vlgmr.msrb.gmra.mxu0 %vm101_vm2, %v7836_v29  ;;  %7885 = vmatmul.msk.f32.vlgmr.msrb.gmra.mxu3 %vm101_vm2, %v7837_v32  ;;  %11686 = vst [vmem:[#allocation32_spill] sm:$0xff] %v9967_v14  ;;  %v9977_v63 = vpop.f32.mrf.mxu2 }
 0x2d3   :  { %11688 = vst [vmem:[#allocation84_spill] sm:$0xff] %v9977_v63  ;;  %v7887_v63 = vld [vmem:[%s11578_s1 + $0x188] sm:$0xff] }
 0x2d4   :  { %5240 = vrot.lane.b32.xlu2 %v9480_v31, %s8113_s16  ;;  %v4507_v0 = vpop.permute.xlu2 %4506  ;;  %v9973_v31 = vpop.f32.mrf.mxu3 }
 0x2d5   :  { %11687 = vst [vmem:[#allocation83_spill] sm:$0xff] %v9973_v31 }
 0x2d6   :  { %5327 = vrot.lane.b32.xlu0 %v9517_v42, %s8113_s16 }
 0x2d7   :  { %v4214_v47 = vpop.permute.xlu0 %4213  ;;  %5329 = vrot.lane.b32.xlu1 %v9519_v58, %s8113_s16 }
 0x2d8   :  { %v4220_v29 = vsel %vm3609_vm6, %v4214_v47, %v4216_v38  ;;  %v4219_v28 = vsel %vm3609_vm6, %v4212_v7, %v4214_v47  ;;  %v9985_v38 = vpop.f32.mrf.mxu0 }
 0x2d9   :  { %7880 = vmatpush.msk.msrb.mxu1 %vm105_vm1, %v4219_v28  ;;  %7882 = vmatpush.msk.msrb.mxu2 %vm105_vm1, %v4220_v29  ;;  %v4332_v59 = vpop.permute.xlu1 %4331  ;;  %v9997_v58 = vpop.f32.mrf.mxu1 }
 0x2da   :  { %7881 = vmatmul.msk.f32.vlgmr.msrb.gmra.mxu1 %vm101_vm2, %v7837_v32  ;;  %7883 = vmatmul.msk.f32.vlgmr.msrb.gmra.mxu2 %vm101_vm2, %v7837_v32  ;;  %v4340_v7 = vsel %vm4339_vm7, %v4332_v59, %v9879_v48  ;;  %v10008_v28 = vpop.f32.mrf.mxu2 }
 0x2db   :  { %7894 = vmatpush.msk.msra.mxu0 %vm105_vm1, %v4340_v7 }
 0x2dc   :  { %5242 = vrot.lane.b32.xlu2 %v11689_v8, %s8113_s16  ;;  %v4600_v47 = vpop.permute.xlu2 %4599  ;;  %7895 = vmatmul.msk.f32.vlgmr.msra.gmra.mxu0 %vm101_vm2, %v7886_v3  ;;  %v10000_v42 = vpop.f32.mrf.mxu3 }
 0x2df   :  { %v4336_v32 = vpop.permute.xlu0 %4335  ;;  %5323 = vrot.lane.b32.xlu1 %v9538_v11, %s8113_s16 }
 0x2e0   :  { %v4341_v29 = vsel %vm4339_vm7, %v9879_v48, %v4336_v32  ;;  %v11690_v48 = vld [vmem:[#allocation42_spill] sm:$0xff]  ;;  %v10014_v31 = vpop.f32.mrf.mxu0 }
 0x2e1   :  { %7896 = vmatpush.msk.msra.mxu1 %vm105_vm1, %v4341_v29  ;;  %5325 = vrot.lane.b32.xlu0 %v11690_v48, %s8113_s16  ;;  %v4338_v8 = vpop.permute.xlu1 %4337 }
 0x2e2   :  { %7897 = vmatmul.msk.f32.vlgmr.msra.gmra.mxu1 %vm101_vm2, %v7886_v3  ;;  %v4342_v59 = vsel %vm4339_vm7, %v4336_v32, %v4338_v8  ;;  %v10025_v32 = vpop.f32.mrf.mxu1 }
 0x2e3   :  { %7898 = vmatpush.msk.msra.mxu2 %vm105_vm1, %v4342_v59  ;;  %v7888_v59 = vld [vmem:[%s11578_s1 + $0x190] sm:$0xff] }
 0x2e4   :  { %5412 = vrot.lane.b32.xlu2 %v9564_v19, %s8113_s16  ;;  %v4594_v29 = vpop.permute.xlu2 %4593  ;;  %v4514_v19 = vsel %vm4339_vm7, %v4507_v0, %v9946_v36  ;;  %7899 = vmatmul.msk.f32.vlgmr.msra.gmra.mxu2 %vm101_vm2, %v7886_v3 }
 0x2e5   :  { %7906 = vmatpush.msk.msrb.mxu2 %vm105_vm1, %v4514_v19 }
 0x2e7   :  { %v4422_v7 = vpop.permute.xlu0 %4421  ;;  %5410 = vrot.lane.b32.xlu1 %v9566_v43, %s8113_s16 }
 0x2e8   :  { %v4427_v11 = vsel %vm4339_vm7, %v9911_v15, %v4422_v7  ;;  %v10033_v15 = vpop.f32.mrf.mxu3 }
 0x2e9   :  { %7900 = vmatpush.msk.msra.mxu3 %vm105_vm1, %v4427_v11  ;;  %5414 = vrot.lane.b32.xlu0 %v9549_v30, %s8113_s16  ;;  %v4424_v0 = vpop.permute.xlu1 %4423  ;;  %v10039_v11 = vpop.f32.mrf.mxu2 }
 0x2ea   :  { %7901 = vmatmul.msk.f32.vlgmr.msra.gmra.mxu3 %vm101_vm2, %v7887_v63  ;;  %v4428_v3 = vsel %vm4339_vm7, %v4422_v7, %v4424_v0  ;;  %v10045_v30 = vpop.f32.mrf.mxu0 }
 0x2eb   :  { %7902 = vmatpush.msk.msrb.mxu0 %vm105_vm1, %v4428_v3 }
 0x2ec   :  { %5497 = vrot.lane.b32.xlu2 %v9601_v52, %s8113_s16  ;;  %v4681_v8 = vpop.permute.xlu2 %4680  ;;  %7903 = vmatmul.msk.f32.vlgmr.msrb.gmra.mxu0 %vm101_vm2, %v7887_v63  ;;  %v10055_v52 = vpop.f32.mrf.mxu1 }
 0x2ed   :  { %7907 = vmatmul.msk.f32.vlgmr.msrb.gmra.mxu2 %vm101_vm2, %v7888_v59 }
 0x2ef   :  { %v4426_v48 = vpop.permute.xlu0 %4425  ;;  %5416 = vrot.lane.b32.xlu1 %v9551_v41, %s8113_s16 }
 0x2f0   :  { %v4429_v43 = vsel %vm4339_vm7, %v4424_v0, %v4426_v48  ;;  %v10057_v3 = vpop.f32.mrf.mxu3 }
 0x2f1   :  { %7904 = vmatpush.msk.msrb.mxu1 %vm105_vm1, %v4429_v43  ;;  %5499 = vrot.lane.b32.xlu0 %v9603_v62, %s8113_s16  ;;  %v4598_v7 = vpop.permute.xlu1 %4597  ;;  %v10063_v41 = vpop.f32.mrf.mxu2  ;;  %v7889_v43 = vld [vmem:[%s11578_s1 + $0x198] sm:$0xff] }
 0x2f2   :  { %7905 = vmatmul.msk.f32.vlgmr.msrb.gmra.mxu1 %vm101_vm2, %v7887_v63  ;;  %v4603_v63 = vsel %vm4339_vm7, %v4598_v7, %v4600_v47  ;;  %11691 = vst [vmem:[#allocation37_spill] sm:$0xff] %v10063_v41  ;;  %v10067_v62 = vpop.f32.mrf.mxu0  ;;  %v11694_v47 = vld [vmem:[#allocation49_spill] sm:$0xff] }
 0x2f3   :  { %11692 = vst [vmem:[#allocation42_spill] sm:$0xff] %v10067_v62 }
 0x2f4   :  { %5586 = vrot.lane.b32.xlu2 %v9637_v33, %s8113_s16  ;;  %v4687_v0 = vpop.permute.xlu2 %4686  ;;  %v11693_v33 = vld [vmem:[#allocation48_spill] sm:$0xff]  ;;  %v10080_v14 = vpop.f32.mrf.mxu1 }
 0x2f5   :  { %11695 = vst [vmem:[#allocation48_spill] sm:$0xff] %v10080_v14 }
 0x2f7   :  { %v4511_v19 = vpop.permute.xlu0 %4510  ;;  %5501 = vrot.lane.b32.xlu1 %v11693_v33, %s8113_s16 }
 0x2f8   :  { %v4515_v48 = vsel %vm4339_vm7, %v9946_v36, %v4511_v19 }
 0x2f9   :  { %7908 = vmatpush.msk.msrb.mxu3 %vm105_vm1, %v4515_v48  ;;  %5503 = vrot.lane.b32.xlu0 %v11694_v47, %s8113_s16  ;;  %v4596_v36 = vpop.permute.xlu1 %4595 }
 0x2fa   :  { %7909 = vmatmul.msk.f32.vlgmr.msrb.gmra.mxu3 %vm101_vm2, %v7888_v59  ;;  %v4601_v46 = vsel %vm4339_vm7, %v4594_v29, %v4596_v36  ;;  %v10092_v29 = vpop.f32.mrf.mxu2 }
 0x2fb   :  { %7916 = vmatpush.msk.msra.mxu3 %vm105_vm1, %v4603_v63  ;;  %v4602_v63 = vsel %vm4339_vm7, %v4596_v36, %v4598_v7  ;;  %7912 = vmatpush.msk.msra.mxu1 %vm105_vm1, %v4601_v46  ;;  %11697 = vst [vmem:[#allocation85_spill] sm:$0xff] %v10092_v29  ;;  %v10100_v46 = vpop.f32.mrf.mxu0  ;;  %v7890_v36 = vld [vmem:[%s11578_s1 + $0x1a0] sm:$0xff] }
 0x2fc   :  { %5584 = vrot.lane.b32.xlu2 %v9639_v18, %s8113_s16  ;;  %v4772_v62 = vpop.permute.xlu2 %4771  ;;  %7914 = vmatpush.msk.msra.mxu2 %vm105_vm1, %v4602_v63  ;;  %v10087_v18 = vpop.f32.mrf.mxu3  ;;  %11698 = vst [vmem:[#allocation86_spill] sm:$0xff] %v10100_v46 }
 0x2fd   :  { %7913 = vmatmul.msk.f32.vlgmr.msra.gmra.mxu1 %vm101_vm2, %v7889_v43  ;;  %11696 = vst [vmem:[#allocation49_spill] sm:$0xff] %v10087_v18  ;;  %7915 = vmatmul.msk.f32.vlgmr.msra.gmra.mxu2 %vm101_vm2, %v7889_v43 }
 0x2ff   :  { %v4513_v48 = vpop.permute.xlu0 %4512  ;;  %5675 = vrot.lane.b32.xlu1 %v9657_v22, %s8113_s16 }
 0x300   :  { %v4516_v33 = vsel %vm4339_vm7, %v4511_v19, %v4513_v48 }
 0x301   :  { %7910 = vmatpush.msk.msra.mxu0 %vm105_vm1, %v4516_v33  ;;  %5588 = vrot.lane.b32.xlu0 %v9618_v25, %s8113_s16  ;;  %v4685_v7 = vpop.permute.xlu1 %4684 }
 0x302   :  { %7911 = vmatmul.msk.f32.vlgmr.msra.gmra.mxu0 %vm101_vm2, %v7888_v59  ;;  %7917 = vmatmul.msk.f32.vlgmr.msra.gmra.mxu3 %vm101_vm2, %v7889_v43  ;;  %v4690_v59 = vsel %vm4339_vm7, %v4685_v7, %v4687_v0 }
 0x303   :  { %7922 = vmatpush.msk.msrb.mxu2 %vm105_vm1, %v4690_v59  ;;  %v10134_v59 = vpop.f32.mrf.mxu0 }
 0x304   :  { %5677 = vrot.lane.b32.xlu2 %v9659_v34, %s8113_s16  ;;  %v10103_v47 = vpop.permute.xlu2 %4945  ;;  %v10113_v34 = vpop.f32.mrf.mxu1  ;;  %11702 = vst [vmem:[#allocation90_spill] sm:$0xff] %v10134_v59  ;;  %v11712_v59 = vld [vmem:[#allocation66_spill] sm:$0xff] }
 0x305   :  { %11699 = vst [vmem:[#allocation87_spill] sm:$0xff] %v10113_v34  ;;  %7923 = vmatmul.msk.f32.vlgmr.msrb.gmra.mxu2 %vm101_vm2, %v7890_v36  ;;  %v10118_v25 = vpop.f32.mrf.mxu3 }
 0x306   :  { %11700 = vst [vmem:[#allocation88_spill] sm:$0xff] %v10118_v25 }
 0x307   :  { %v4683_v19 = vpop.permute.xlu0 %4682  ;;  %5673 = vrot.lane.b32.xlu1 %v9674_v5, %s8113_s16 }
 0x308   :  { %v4688_v22 = vsel %vm4339_vm7, %v4681_v8, %v4683_v19  ;;  %v4689_v43 = vsel %vm4339_vm7, %v4683_v19, %v4685_v7  ;;  %v10126_v8 = vpop.f32.mrf.mxu2  ;;  %v7891_v7 = vld [vmem:[%s11578_s1 + $0x1a8] sm:$0xff] }
 0x309   :  { %7918 = vmatpush.msk.msrb.mxu0 %vm105_vm1, %v4688_v22  ;;  %7920 = vmatpush.msk.msrb.mxu1 %vm105_vm1, %v4689_v43  ;;  %11701 = vst [vmem:[#allocation89_spill] sm:$0xff] %v10126_v8  ;;  %v4770_v0 = vpop.permute.xlu1 %4769 }
 0x30a   :  { %7919 = vmatmul.msk.f32.vlgmr.msrb.gmra.mxu0 %vm101_vm2, %v7890_v36  ;;  %7921 = vmatmul.msk.f32.vlgmr.msrb.gmra.mxu1 %vm101_vm2, %v7890_v36  ;;  %v4776_v48 = vsel %vm4339_vm7, %v4770_v0, %v4772_v62 }
 0x30b   :  { %5590 = vrot.lane.b32.xlu0 %v9620_v44, %s8113_s16  ;;  %7926 = vmatpush.msk.msra.mxu0 %vm105_vm1, %v4776_v48 }
 0x30c   :  { %5671 = vrot.lane.b32.xlu2 %v9676_v39, %s8113_s16  ;;  %v10129_v33 = vpop.permute.xlu2 %4943  ;;  %v10141_v44 = vpop.f32.mrf.mxu1 }
 0x30d   :  { %11703 = vst [vmem:[#allocation91_spill] sm:$0xff] %v10141_v44  ;;  %v10149_v39 = vpop.f32.mrf.mxu3 }
 0x30e   :  { %11704 = vst [vmem:[#allocation92_spill] sm:$0xff] %v10149_v39 }
 0x30f   :  { %v4768_v63 = vpop.permute.xlu0 %4767  ;;  %5795 = vrot.lane.b32.xlu1 %v9691_v60, %s8114_s6  ;;  %v10158_v60 = vpop.f32.mrf.mxu0 }
 0x310   :  { %v4775_v5 = vsel %vm4339_vm7, %v4768_v63, %v4770_v0  ;;  %v10155_v0 = vpop.f32.mrf.mxu2  ;;  %v7892_v63 = vld [vmem:[%s11578_s1 + $0x1b0] sm:$0xff] }
 0x311   :  { %7924 = vmatpush.msk.msrb.mxu3 %vm105_vm1, %v4775_v5  ;;  %v4774_v19 = vpop.permute.xlu1 %4773  ;;  %11705 = vst [vmem:[#allocation93_spill] sm:$0xff] %v10155_v0 }
 0x312   :  { %7925 = vmatmul.msk.f32.vlgmr.msrb.gmra.mxu3 %vm101_vm2, %v7891_v7  ;;  %7927 = vmatmul.msk.f32.vlgmr.msra.gmra.mxu0 %vm101_vm2, %v7891_v7  ;;  %v4777_v36 = vsel %vm4339_vm7, %v4772_v62, %v4774_v19 }
 0x313   :  { %5793 = vrot.lane.b32.xlu0 %v9708_v35, %s8114_s6  ;;  %7928 = vmatpush.msk.msra.mxu1 %vm105_vm1, %v4777_v36  ;;  %v11706_v35 = vld [vmem:[#allocation18_spill] sm:$0xff] }
 0x314   :  { %5791 = vrot.lane.b32.xlu2 %v9710_v50, %s8114_s6  ;;  %v10152_v43 = vpop.permute.xlu2 %5065  ;;  %7929 = vmatmul.msk.f32.vlgmr.msra.gmra.mxu1 %vm101_vm2, %v7891_v7  ;;  %v11707_v50 = vld [vmem:[#allocation19_spill] sm:$0xff]  ;;  %v10166_v62 = vpop.f32.mrf.mxu1 }
 0x315   :  { %v10174_v36 = vpop.f32.mrf.mxu3 }
 0x317   :  { %v4857_v22 = vpop.permute.xlu0 %4856  ;;  %5881 = vrot.lane.b32.xlu1 %v11706_v35, %s8114_s6  ;;  %v10180_v35 = vpop.f32.mrf.mxu0 }
 0x318   :  { %v10186_v0 = vpop.f32.mrf.mxu2 }
 0x319   :  { %v4859_v48 = vpop.permute.xlu1 %4858 }
 0x31a   :  { %v4863_v7 = vsel %vm4339_vm7, %v4857_v22, %v4859_v48 }
 0x31b   :  { %5879 = vrot.lane.b32.xlu0 %v11707_v50, %s8114_s6  ;;  %7932 = vmatpush.msk.msra.mxu3 %vm105_vm1, %v4863_v7  ;;  %v4950_v50 = vsel %vm4339_vm7, %v10129_v33, %v10103_v47  ;;  %v11709_v7 = vld [vmem:[#allocation61_spill] sm:$0xff] }
 0x31c   :  { %5797 = vrot.lane.b32.xlu2 %v9693_v6, %s8114_s6  ;;  %v10172_v19 = vpop.permute.xlu2 %5151  ;;  %7933 = vmatmul.msk.f32.vlgmr.msra.gmra.mxu3 %vm101_vm2, %v7892_v63 }
 0x31f   :  { %v4855_v5 = vpop.permute.xlu0 %4854  ;;  %5885 = vrot.lane.b32.xlu1 %v11709_v7, %s8114_s6  ;;  %v11710_v7 = vld [vmem:[#allocation65_spill] sm:$0xff] }
 0x320   :  { %v4862_v6 = vsel %vm4339_vm7, %v4855_v5, %v4857_v22  ;;  %v11708_v22 = vld [vmem:[#allocation60_spill] sm:$0xff]  ;;  %v10195_v5 = vpop.f32.mrf.mxu1 }
 0x321   :  { %7930 = vmatpush.msk.msra.mxu2 %vm105_vm1, %v4862_v6  ;;  %v4861_v6 = vpop.permute.xlu1 %4860 }
 0x322   :  { %7931 = vmatmul.msk.f32.vlgmr.msra.gmra.mxu2 %vm101_vm2, %v7892_v63  ;;  %v4864_v39 = vsel %vm4339_vm7, %v4859_v48, %v4861_v6  ;;  %v10212_v48 = vpop.f32.mrf.mxu0 }
 0x323   :  { %7938 = vmatpush.msk.msrb.mxu2 %vm105_vm1, %v4950_v50  ;;  %5968 = vrot.lane.b32.xlu0 %v9772_v9, %s8114_s6  ;;  %v7893_v50 = vld [vmem:[%s11578_s1 + $0x1b8] sm:$0xff]  ;;  %v10208_v9 = vpop.f32.mrf.mxu3 }
 0x324   :  { %5883 = vrot.lane.b32.xlu2 %v11708_v22, %s8114_s6  ;;  %7934 = vmatpush.msk.msrb.mxu0 %vm105_vm1, %v4864_v39 }
 0x325   :  { %7935 = vmatmul.msk.f32.vlgmr.msrb.gmra.mxu0 %vm101_vm2, %v7892_v63 }
 0x326   :  { %v10198_v44 = vpop.permute.xlu2 %5155 }
 0x327   :  { %v4948_v8 = vpop.permute.xlu0 %4947  ;;  %5970 = vrot.lane.b32.xlu1 %v11710_v7, %s8114_s6 }
 0x328   :  { %v4951_v22 = vsel %vm4339_vm7, %v10103_v47, %v4948_v8  ;;  %v10218_v47 = vpop.f32.mrf.mxu2  ;;  %v10222_v8 = vpop.f32.mrf.mxu1 }
 0x329   :  { %7940 = vmatpush.msk.msrb.mxu3 %vm105_vm1, %v4951_v22  ;;  %v5064_v39 = vpop.permute.xlu1 %5063 }
 0x32a   :  { %7939 = vmatmul.msk.f32.vlgmr.msrb.gmra.mxu2 %vm101_vm2, %v7893_v50  ;;  %7941 = vmatmul.msk.f32.vlgmr.msrb.gmra.mxu3 %vm101_vm2, %v7893_v50 }
 0x32b   :  { %5966 = vrot.lane.b32.xlu0 %v9774_v17, %s8114_s6  ;;  %v10229_v7 = vpop.f32.mrf.mxu3  ;;  %v10233_v17 = vpop.f32.mrf.mxu0 }
 0x32c   :  { %6057 = vrot.lane.b32.xlu2 %v9791_v12, %s8114_s6  ;;  %v5071_v12 = vsel %vm5069_vm8, %v5064_v39, %v10152_v43  ;;  %11711 = vst [vmem:[#allocation18_spill] sm:$0xff] %v10233_v17 }
 0x32e   :  { %v5241_v6 = vpop.permute.xlu2 %5240 }
 0x32f   :  { %v4942_v63 = vpop.permute.xlu0 %4941  ;;  %5972 = vrot.lane.b32.xlu1 %v11712_v59, %s8114_s6  ;;  %v7942_v59 = vld [vmem:[%s11578_s1 + $0x1c0] sm:$0xff] }
 0x330   :  { %v4949_v22 = vsel %vm4339_vm7, %v4942_v63, %v10129_v33  ;;  %v10241_v33 = vpop.f32.mrf.mxu2 }
 0x331   :  { %7936 = vmatpush.msk.msrb.mxu1 %vm105_vm1, %v4949_v22  ;;  %11713 = vst [vmem:[#allocation19_spill] sm:$0xff] %v10241_v33  ;;  %v5150_v63 = vpop.permute.xlu1 %5149 }
 0x332   :  { %7937 = vmatmul.msk.f32.vlgmr.msrb.gmra.mxu1 %vm101_vm2, %v7893_v50  ;;  %v7943_v50 = vld [vmem:[%s11578_s1 + $0x1c8] sm:$0xff]  ;;  %v5157_v17 = vsel %vm5069_vm8, %v5150_v63, %v10172_v19 }
 0x333   :  { %7952 = vmatpush.msk.msra.mxu1 %vm105_vm1, %v5071_v12  ;;  %6059 = vrot.lane.b32.xlu0 %v9793_v24, %s8114_s6  ;;  %v10257_v25 = vpop.f32.mrf.mxu3  ;;  %v10261_v63 = vpop.f32.mrf.mxu0 }
 0x334   :  { %6055 = vrot.lane.b32.xlu2 %v9806_v16, %s8114_s6  ;;  %v10251_v16 = vpop.f32.mrf.mxu1  ;;  %7956 = vmatpush.msk.msra.mxu3 %vm105_vm1, %v5157_v17  ;;  %11715 = vst [vmem:[#allocation61_spill] sm:$0xff] %v10257_v25 }
 0x335   :  { %11714 = vst [vmem:[#allocation60_spill] sm:$0xff] %v10251_v16  ;;  %7957 = vmatmul.msk.f32.vlgmr.msra.gmra.mxu3 %vm101_vm2, %v7943_v50  ;;  %v11745_v16 = vld [vmem:[#allocation39_spill] sm:$0xff] }
 0x336   :  { %v5243_v12 = vpop.permute.xlu2 %5242  ;;  %11716 = vst [vmem:[#allocation65_spill] sm:$0xff] %v10261_v63 }
 0x337   :  { %v5062_v22 = vpop.permute.xlu0 %5061  ;;  %6142 = vrot.lane.b32.xlu1 %v9844_v40, %s8114_s6 }
 0x338   :  { %v5070_v24 = vsel %vm5069_vm8, %v5062_v22, %v5064_v39  ;;  %v10269_v39 = vpop.f32.mrf.mxu2  ;;  %v7944_v22 = vld [vmem:[%s11578_s1 + $0x1d0] sm:$0xff] }
 0x339   :  { %7950 = vmatpush.msk.msra.mxu0 %vm105_vm1, %v5070_v24  ;;  %11717 = vst [vmem:[#allocation66_spill] sm:$0xff] %v10269_v39  ;;  %v5239_v17 = vpop.permute.xlu1 %5238 }
 0x33a   :  { %7951 = vmatmul.msk.f32.vlgmr.msra.gmra.mxu0 %vm101_vm2, %v7942_v59  ;;  %7953 = vmatmul.msk.f32.vlgmr.msra.gmra.mxu1 %vm101_vm2, %v7942_v59  ;;  %v5245_v25 = vsel %vm5069_vm8, %v5239_v17, %v5241_v6 }
 0x33b   :  { %6053 = vrot.lane.b32.xlu0 %v9808_v26, %s8114_s6  ;;  %7964 = vmatpush.msk.msrb.mxu3 %vm105_vm1, %v5245_v25  ;;  %v10284_v26 = vpop.f32.mrf.mxu3  ;;  %v10287_v40 = vpop.f32.mrf.mxu0 }
 0x33c   :  { %6144 = vrot.lane.b32.xlu2 %v9824_v10, %s8114_s6  ;;  %v10277_v34 = vpop.f32.mrf.mxu1  ;;  %11719 = vst [vmem:[#allocation95_spill] sm:$0xff] %v10284_v26 }
 0x33d   :  { %11718 = vst [vmem:[#allocation94_spill] sm:$0xff] %v10277_v34  ;;  %7965 = vmatmul.msk.f32.vlgmr.msrb.gmra.mxu3 %vm101_vm2, %v7944_v22 }
 0x33e   :  { %v10275_v63 = vpop.permute.xlu2 %5412  ;;  %11720 = vst [vmem:[#allocation96_spill] sm:$0xff] %v10287_v40  ;;  %v7947_v40 = vld [vmem:[%s11578_s1 + $0x1e8] sm:$0xff] }
 0x33f   :  { %v5068_v24 = vpop.permute.xlu0 %5067  ;;  %6227 = vrot.lane.b32.xlu1 %v9883_v27, %s8114_s6 }
 0x340   :  { %v5072_v10 = vsel %vm5069_vm8, %v10152_v43, %v5068_v24  ;;  %v10305_v27 = vpop.f32.mrf.mxu2 }
 0x341   :  { %7954 = vmatpush.msk.msra.mxu2 %vm105_vm1, %v5072_v10  ;;  %v5237_v25 = vpop.permute.xlu1 %5236  ;;  %11722 = vst [vmem:[#allocation98_spill] sm:$0xff] %v10305_v27 }
 0x342   :  { %7955 = vmatmul.msk.f32.vlgmr.msra.gmra.mxu2 %vm101_vm2, %v7942_v59  ;;  %v5244_v24 = vsel %vm5069_vm8, %v5237_v25, %v5239_v17  ;;  %v7945_v17 = vld [vmem:[%s11578_s1 + $0x1d8] sm:$0xff] }
 0x343   :  { %6140 = vrot.lane.b32.xlu0 %v9846_v4, %s8114_s6  ;;  %7962 = vmatpush.msk.msrb.mxu2 %vm105_vm1, %v5244_v24  ;;  %v5246_v4 = vsel %vm5069_vm8, %v5241_v6, %v5243_v12 }
 0x344   :  { %6229 = vrot.lane.b32.xlu2 %v9881_v49, %s8114_s6  ;;  %v10298_v26 = vpop.f32.mrf.mxu1 }
 0x345   :  { %11721 = vst [vmem:[#allocation97_spill] sm:$0xff] %v10298_v26 }
 0x346   :  { %v10296_v10 = vpop.permute.xlu2 %5497 }
 0x347   :  { %v5154_v43 = vpop.permute.xlu0 %5153  ;;  %6316 = vrot.lane.b32.xlu1 %v9913_v23, %s8114_s6 }
 0x348   :  { %v5158_v59 = vsel %vm5069_vm8, %v10172_v19, %v5154_v43  ;;  %v5159_v49 = vsel %vm5069_vm8, %v5154_v43, %v10198_v44  ;;  %v10314_v19 = vpop.f32.mrf.mxu3  ;;  %v10322_v44 = vpop.f32.mrf.mxu0 }
 0x349   :  { %7958 = vmatpush.msk.msrb.mxu0 %vm105_vm1, %v5158_v59  ;;  %7960 = vmatpush.msk.msrb.mxu1 %vm105_vm1, %v5159_v49  ;;  %11723 = vst [vmem:[#allocation99_spill] sm:$0xff] %v10314_v19  ;;  %v5330_v6 = vpop.permute.xlu1 %5329  ;;  %v10330_v43 = vpop.f32.mrf.mxu2  ;;  %v6397_v19 = vld.sshfl [vmem:[#allocation1] sm:$0xff pattern:$0x75316420] }
 0x34a   :  { %7959 = vmatmul.msk.f32.vlgmr.msrb.gmra.mxu0 %vm101_vm2, %v7943_v50  ;;  %7961 = vmatmul.msk.f32.vlgmr.msrb.gmra.mxu1 %vm101_vm2, %v7943_v50  ;;  %11724 = vst [vmem:[#allocation100_spill] sm:$0xff] %v10330_v43 }
 0x34b   :  { %7963 = vmatmul.msk.f32.vlgmr.msrb.gmra.mxu2 %vm101_vm2, %v7944_v22  ;;  %7966 = vmatpush.msk.msra.mxu0 %vm105_vm1, %v5246_v4 }
 0x34c   :  { %6318 = vrot.lane.b32.xlu2 %v9896_v45, %s8114_s6  ;;  %6146 = vrot.lane.b32.xlu0 %v9826_v37, %s8114_s6  ;;  %v10333_v45 = vpop.f32.mrf.mxu1 }
 0x34e   :  { %v10324_v50 = vpop.permute.xlu2 %5586 }
 0x34f   :  { %v5328_v12 = vpop.permute.xlu0 %5327  ;;  %6314 = vrot.lane.b32.xlu1 %v9915_v56, %s8114_s6  ;;  %v6400_v56 = vld.sshfl [vmem:[#allocation1 + $0x18] sm:$0xff pattern:$0x75316420] }
 0x350   :  { %v5333_v25 = vsel %vm5069_vm8, %v5328_v12, %v5330_v6  ;;  %v10337_v37 = vpop.f32.mrf.mxu3  ;;  %v10347_v4 = vpop.f32.mrf.mxu0 }
 0x351   :  { %7972 = vmatpush.msk.msra.mxu3 %vm105_vm1, %v5333_v25  ;;  %v5324_v23 = vpop.permute.xlu1 %5323 }
 0x352   :  { %7967 = vmatmul.msk.f32.vlgmr.msra.gmra.mxu0 %vm101_vm2, %v7944_v22  ;;  %7973 = vmatmul.msk.f32.vlgmr.msra.gmra.mxu3 %vm101_vm2, %v7945_v17 }
 0x354   :  { %6233 = vrot.lane.b32.xlu2 %v9865_v20, %s8114_s6  ;;  %6231 = vrot.lane.b32.xlu0 %v9863_v55, %s8114_s6  ;;  %v10351_v20 = vpop.f32.mrf.mxu1  ;;  %v10355_v55 = vpop.f32.mrf.mxu2 }
 0x356   :  { %v5585_v59 = vpop.permute.xlu2 %5584 }
 0x357   :  { %v5326_v24 = vpop.permute.xlu0 %5325  ;;  %6407 = vrot.lane.b32.xlu1 %v6400_v56, %s8114_s6 }
 0x358   :  { %v5332_v49 = vsel %vm5069_vm8, %v5326_v24, %v5328_v12  ;;  %v5331_v22 = vsel %vm5069_vm8, %v5324_v23, %v5326_v24  ;;  %v10357_v6 = vpop.f32.mrf.mxu3  ;;  %v6399_v12 = vld.sshfl [vmem:[#allocation1 + $0x10] sm:$0xff pattern:$0x75316420]  ;;  %v7946_v23 = vld [vmem:[%s11578_s1 + $0x1e0] sm:$0xff] }
 0x359   :  { %7968 = vmatpush.msk.msra.mxu1 %vm105_vm1, %v5331_v22  ;;  %7970 = vmatpush.msk.msra.mxu2 %vm105_vm1, %v5332_v49  ;;  %v5411_v25 = vpop.permute.xlu1 %5410 }
 0x35a   :  { %7969 = vmatmul.msk.f32.vlgmr.msra.gmra.mxu1 %vm101_vm2, %v7945_v17  ;;  %7971 = vmatmul.msk.f32.vlgmr.msra.gmra.mxu2 %vm101_vm2, %v7945_v17  ;;  %v5418_v17 = vsel %vm5069_vm8, %v5411_v25, %v10275_v63  ;;  %v6398_v25 = vld.sshfl [vmem:[#allocation1 + $0x8] sm:$0xff pattern:$0x75316420] }
 0x35b   :  { %7974 = vmatpush.msk.msrb.mxu0 %vm105_vm1, %v5418_v17 }
 0x35c   :  { %6320 = vrot.lane.b32.xlu2 %v9898_v54, %s8114_s6  ;;  %6405 = vrot.lane.b32.xlu0 %v6399_v12, %s8114_s6  ;;  %v10371_v54 = vpop.f32.mrf.mxu0  ;;  %v10375_v56 = vpop.f32.mrf.mxu1 }
 0x35d   :  { %7975 = vmatmul.msk.f32.vlgmr.msrb.gmra.mxu0 %vm101_vm2, %v7946_v23  ;;  %v10378_v12 = vpop.f32.mrf.mxu2 }
 0x35e   :  { %v5678_v49 = vpop.permute.xlu2 %5677 }
 0x35f   :  { %v5415_v24 = vpop.permute.xlu0 %5414  ;;  %6401 = vrot.lane.b32.xlu1 %v6397_v19, %s8114_s6  ;;  %v5592_v19 = vsel %vm5069_vm8, %v5585_v59, %v10324_v50 }
 0x360   :  { %v5419_v22 = vsel %vm5069_vm8, %v10275_v63, %v5415_v24  ;;  %v10382_v63 = vpop.f32.mrf.mxu3 }
 0x361   :  { %7976 = vmatpush.msk.msrb.mxu1 %vm105_vm1, %v5419_v22  ;;  %v5417_v17 = vpop.permute.xlu1 %5416 }
 0x362   :  { %7977 = vmatmul.msk.f32.vlgmr.msrb.gmra.mxu1 %vm101_vm2, %v7946_v23  ;;  %v5420_v43 = vsel %vm5069_vm8, %v5415_v24, %v5417_v17 }
 0x363   :  { %7978 = vmatpush.msk.msrb.mxu2 %vm105_vm1, %v5420_v43 }
 0x364   :  { %6403 = vrot.lane.b32.xlu0 %v6398_v25, %s8114_s6  ;;  %v10391_v34 = vpop.f32.mrf.mxu0  ;;  %7979 = vmatmul.msk.f32.vlgmr.msrb.gmra.mxu2 %vm101_vm2, %v7946_v23  ;;  %v10399_v24 = vpop.f32.mrf.mxu1 }
 0x365   :  { %11725 = vst [vmem:[#allocation101_spill] sm:$0xff] %v10391_v34  ;;  %7986 = vmatpush.msk.msra.mxu2 %vm105_vm1, %v5592_v19  ;;  %v10401_v25 = vpop.f32.mrf.mxu2 }
 0x366   :  { %v5672_v26 = vpop.permute.xlu2 %5671  ;;  %11726 = vst [vmem:[#allocation102_spill] sm:$0xff] %v10399_v24 }
 0x367   :  { %v5500_v22 = vpop.permute.xlu0 %5499  ;;  %11727 = vst [vmem:[#allocation103_spill] sm:$0xff] %v10401_v25 }
 0x368   :  { %v5505_v27 = vsel %vm5069_vm8, %v10296_v10, %v5500_v22  ;;  %v10403_v10 = vpop.f32.mrf.mxu3 }
 0x369   :  { %7980 = vmatpush.msk.msrb.mxu3 %vm105_vm1, %v5505_v27  ;;  %11728 = vst [vmem:[#allocation104_spill] sm:$0xff] %v10403_v10  ;;  %v5502_v43 = vpop.permute.xlu1 %5501  ;;  %v7948_v27 = vld [vmem:[%s11578_s1 + $0x1f0] sm:$0xff] }
 0x36a   :  { %7981 = vmatmul.msk.f32.vlgmr.msrb.gmra.mxu3 %vm101_vm2, %v7947_v40  ;;  %v5506_v17 = vsel %vm5069_vm8, %v5500_v22, %v5502_v43 }
 0x36b   :  { %7982 = vmatpush.msk.msra.mxu0 %vm105_vm1, %v5506_v17 }
 0x36c   :  { %v10411_v23 = vpop.f32.mrf.mxu0  ;;  %7983 = vmatmul.msk.f32.vlgmr.msra.gmra.mxu0 %vm101_vm2, %v7947_v40  ;;  %7987 = vmatmul.msk.f32.vlgmr.msra.gmra.mxu2 %vm101_vm2, %v7948_v27  ;;  %v10417_v22 = vpop.f32.mrf.mxu1 }
 0x36d   :  { %11729 = vst [vmem:[#allocation105_spill] sm:$0xff] %v10411_v23  ;;  %v10419_v19 = vpop.f32.mrf.mxu2  ;;  %v7949_v23 = vld [vmem:[%s11578_s1 + $0x1f8] sm:$0xff] }
 0x36e   :  { %v5792_v39 = vpop.permute.xlu2 %5791  ;;  %11730 = vst [vmem:[#allocation106_spill] sm:$0xff] %v10417_v22 }
 0x36f   :  { %v5504_v34 = vpop.permute.xlu0 %5503  ;;  %11731 = vst [vmem:[#allocation107_spill] sm:$0xff] %v10419_v19 }
 0x370   :  { %v5507_v59 = vsel %vm5069_vm8, %v5502_v43, %v5504_v34  ;;  %v10421_v34 = vpop.f32.mrf.mxu3 }
 0x371   :  { %7984 = vmatpush.msk.msra.mxu1 %vm105_vm1, %v5507_v59  ;;  %v5676_v10 = vpop.permute.xlu1 %5675  ;;  %11732 = vst [vmem:[#allocation108_spill] sm:$0xff] %v10421_v34 }
 0x372   :  { %7985 = vmatmul.msk.f32.vlgmr.msra.gmra.mxu1 %vm101_vm2, %v7947_v40  ;;  %v5681_v43 = vsel %vm5069_vm8, %v5676_v10, %v5678_v49 }
 0x374   :  { %v10428_v40 = vpop.f32.mrf.mxu0  ;;  %v10431_v59 = vpop.f32.mrf.mxu1 }
 0x375   :  { %11733 = vst [vmem:[#allocation109_spill] sm:$0xff] %v10428_v40  ;;  %v10436_v34 = vpop.f32.mrf.mxu2 }
 0x376   :  { %v5798_v29 = vpop.permute.xlu2 %5797  ;;  %11734 = vst [vmem:[#allocation110_spill] sm:$0xff] %v10431_v59 }
 0x377   :  { %v5589_v18 = vpop.permute.xlu0 %5588  ;;  %11735 = vst [vmem:[#allocation111_spill] sm:$0xff] %v10436_v34 }
 0x378   :  { %v5593_v17 = vsel %vm5069_vm8, %v10324_v50, %v5589_v18  ;;  %v10440_v19 = vpop.f32.mrf.mxu3 }
 0x379   :  { %7988 = vmatpush.msk.msra.mxu3 %vm105_vm1, %v5593_v17  ;;  %v5674_v22 = vpop.permute.xlu1 %5673  ;;  %11736 = vst [vmem:[#allocation112_spill] sm:$0xff] %v10440_v19 }
 0x37a   :  { %7989 = vmatmul.msk.f32.vlgmr.msra.gmra.mxu3 %vm101_vm2, %v7948_v27  ;;  %v5679_v50 = vsel %vm5069_vm8, %v5672_v26, %v5674_v22  ;;  %v5680_v17 = vsel %vm5069_vm8, %v5674_v22, %v5676_v10 }
 0x37b   :  { %7996 = vmatpush.msk.msrb.mxu3 %vm105_vm1, %v5681_v43  ;;  %7992 = vmatpush.msk.msrb.mxu1 %vm105_vm1, %v5679_v50 }
 0x37c   :  { %7994 = vmatpush.msk.msrb.mxu2 %vm105_vm1, %v5680_v17  ;;  %7993 = vmatmul.msk.f32.vlgmr.msrb.gmra.mxu1 %vm101_vm2, %v7949_v23  ;;  %v10449_v26 = vpop.f32.mrf.mxu0  ;;  %v10452_v10 = vpop.f32.mrf.mxu1 }
 0x37d   :  { %7995 = vmatmul.msk.f32.vlgmr.msrb.gmra.mxu2 %vm101_vm2, %v7949_v23  ;;  %v10454_v22 = vpop.f32.mrf.mxu2 }
 0x37e   :  { %v5884_v46 = vpop.permute.xlu2 %5883  ;;  %11737 = vst [vmem:[#allocation113_spill] sm:$0xff] %v10454_v22 }
 0x37f   :  { %v5591_v49 = vpop.permute.xlu0 %5590 }
 0x380   :  { %v5594_v40 = vsel %vm5069_vm8, %v5589_v18, %v5591_v49 }
 0x381   :  { %7990 = vmatpush.msk.msrb.mxu0 %vm105_vm1, %v5594_v40  ;;  %v5796_v18 = vpop.permute.xlu1 %5795  ;;  %v7998_v40 = vld [vmem:[%s11578_s1 + $0x200] sm:$0xff] }
 0x382   :  { %7991 = vmatmul.msk.f32.vlgmr.msrb.gmra.mxu0 %vm101_vm2, %v7948_v27  ;;  %7997 = vmatmul.msk.f32.vlgmr.msrb.gmra.mxu3 %vm101_vm2, %v7949_v23  ;;  %v5802_v43 = vsel %vm5799_vm9, %v5796_v18, %v5798_v29  ;;  %v10460_v27 = vpop.f32.mrf.mxu3 }
 0x383   :  { %8010 = vmatpush.msk.msra.mxu2 %vm105_vm1, %v5802_v43 }
 0x384   :  { %v10469_v29 = vpop.f32.mrf.mxu0  ;;  %v10472_v22 = vpop.f32.mrf.mxu1 }
 0x385   :  { %8011 = vmatmul.msk.f32.vlgmr.msra.gmra.mxu2 %vm101_vm2, %v7998_v40  ;;  %v10474_v59 = vpop.f32.mrf.mxu2 }
 0x386   :  { %v6058_v23 = vpop.permute.xlu2 %6057 }
 0x387   :  { %v5794_v49 = vpop.permute.xlu0 %5793 }
 0x388   :  { %v5800_v50 = vsel %vm5799_vm9, %v5792_v39, %v5794_v49  ;;  %v5801_v17 = vsel %vm5799_vm9, %v5794_v49, %v5796_v18  ;;  %v7999_v49 = vld [vmem:[%s11578_s1 + $0x208] sm:$0xff] }
 0x389   :  { %8006 = vmatpush.msk.msra.mxu0 %vm105_vm1, %v5800_v50  ;;  %8008 = vmatpush.msk.msra.mxu1 %vm105_vm1, %v5801_v17  ;;  %v5882_v39 = vpop.permute.xlu1 %5881 }
 0x38a   :  { %8007 = vmatmul.msk.f32.vlgmr.msra.gmra.mxu0 %vm101_vm2, %v7998_v40  ;;  %8009 = vmatmul.msk.f32.vlgmr.msra.gmra.mxu1 %vm101_vm2, %v7998_v40  ;;  %v5888_v18 = vsel %vm5799_vm9, %v5882_v39, %v5884_v46  ;;  %v10480_v50 = vpop.f32.mrf.mxu3  ;;  %v6505_v40 = vld [vmem:[%s11580_s3] sm:$0xff] }
 0x38b   :  { %8014 = vmatpush.msk.msrb.mxu0 %vm105_vm1, %v5888_v18  ;;  %6508 = vperm.xlu2 %8072, %v6505_v40  }
 0x38c   :  { %v10490_v19 = vpop.f32.mrf.mxu0  ;;  %v10492_v51 = vpop.f32.mrf.mxu1 }
 0x38d   :  { %11738 = vst [vmem:[#allocation114_spill] sm:$0xff] %v10492_v51  ;;  %v11749_v51 = vld [vmem:[#allocation38_spill] sm:$0xff] }
 0x38e   :  { %v6056_v34 = vpop.permute.xlu2 %6055 }
 0x38f   :  { %v5880_v43 = vpop.permute.xlu0 %5879 }
 0x390   :  { %v5887_v17 = vsel %vm5799_vm9, %v5880_v43, %v5882_v39  ;;  %v10496_v43 = vpop.f32.mrf.mxu2 }
 0x391   :  { %8012 = vmatpush.msk.msra.mxu3 %vm105_vm1, %v5887_v17  ;;  %v5886_v57 = vpop.permute.xlu1 %5885 }
 0x392   :  { %8013 = vmatmul.msk.f32.vlgmr.msra.gmra.mxu3 %vm101_vm2, %v7999_v49  ;;  %8015 = vmatmul.msk.f32.vlgmr.msrb.gmra.mxu0 %vm101_vm2, %v7999_v49  ;;  %v5889_v39 = vsel %vm5799_vm9, %v5884_v46, %v5886_v57  ;;  %v10499_v17 = vpop.f32.mrf.mxu3 }
 0x393   :  { %8016 = vmatpush.msk.msrb.mxu1 %vm105_vm1, %v5889_v39  ;;  %11739 = vst [vmem:[#allocation115_spill] sm:$0xff] %v10499_v17 }
 0x394   :  { %8017 = vmatmul.msk.f32.vlgmr.msrb.gmra.mxu1 %vm101_vm2, %v7999_v49  ;;  %v10501_v40 = vpop.f32.mrf.mxu0  ;;  %v10509_v1 = vpop.f32.mrf.mxu1 }
 0x395   :  { %11740 = vst [vmem:[#allocation116_spill] sm:$0xff] %v10501_v40  ;;  %v6062_v40 = vsel %vm5799_vm9, %v6056_v34, %v6058_v23 }
 0x396   :  { %v10503_v61 = vpop.permute.xlu2 %6144  ;;  %11741 = vst [vmem:[#allocation117_spill] sm:$0xff] %v10509_v1  ;;  %v11744_v1 = vld [vmem:[#allocation8_spill] sm:$0xff] }
 0x397   :  { %v5969_v18 = vpop.permute.xlu0 %5968 }
 0x398   :  { %v10513_v49 = vpop.f32.mrf.mxu2 }
 0x399   :  { %v5971_v2 = vpop.permute.xlu1 %5970  ;;  %11742 = vst [vmem:[#allocation118_spill] sm:$0xff] %v10513_v49 }
 0x39a   :  { %v5975_v57 = vsel %vm5799_vm9, %v5969_v18, %v5971_v2  ;;  %v10518_v24 = vpop.f32.mrf.mxu3 }
 0x39b   :  { %8020 = vmatpush.msk.msrb.mxu3 %vm105_vm1, %v5975_v57  ;;  %11743 = vst [vmem:[#allocation119_spill] sm:$0xff] %v10518_v24 }
 0x39c   :  { %8021 = vmatmul.msk.f32.vlgmr.msrb.gmra.mxu3 %vm101_vm2, %v8000_v53  ;;  %v10530_v33 = vpop.f32.mrf.mxu1 }
 0x39d   :  { %11747 = vst [vmem:[#allocation39_spill] sm:$0xff] %v10530_v33  ;;  %v11754_v33 = vld [vmem:[#allocation64_spill] sm:$0xff] }
 0x39e   :  { %v10532_v24 = vpop.permute.xlu2 %6229 }
 0x39f   :  { %v5967_v46 = vpop.permute.xlu0 %5966 }
 0x3a0   :  { %v5974_v39 = vsel %vm5799_vm9, %v5967_v46, %v5969_v18  ;;  %v848_v18 = vadd.f32 %v11745_v16, %v11744_v1  ;;  %v10524_v46 = vpop.f32.mrf.mxu0 }
 0x3a1   :  { %8018 = vmatpush.msk.msrb.mxu2 %vm105_vm1, %v5974_v39  ;;  %v5973_v25 = vpop.permute.xlu1 %5972  ;;  %11746 = vst [vmem:[#allocation8_spill] sm:$0xff] %v10524_v46  ;;  %v8001_v39 = vld [vmem:[%s11578_s1 + $0x218] sm:$0xff] }
 0x3a2   :  { %8019 = vmatmul.msk.f32.vlgmr.msrb.gmra.mxu2 %vm101_vm2, %v8000_v53  ;;  %v5976_v57 = vsel %vm5799_vm9, %v5971_v2, %v5973_v25  ;;  %v10540_v2 = vpop.f32.mrf.mxu3  ;;  %v2102_v16 = vadd.f32 %v9767_v13, %v848_v18  ;;  %v10545_v25 = vpop.f32.mrf.mxu2  ;;  %v11755_v13 = vld [vmem:[#allocation16_spill] sm:$0xff] }
 0x3a3   :  { %8026 = vmatpush.msk.msra.mxu2 %vm105_vm1, %v6062_v40  ;;  %8022 = vmatpush.msk.msra.mxu0 %vm105_vm1, %v5976_v57  ;;  %v11748_v40 = vld [vmem:[#allocation6_spill] sm:$0xff]  ;;  %11751 = vst [vmem:[#allocation38_spill] sm:$0xff] %v10545_v25 }
 0x3a4   :  { %v828_v1 = vadd.f32 %v11749_v51, %v11748_v40  ;;  %8023 = vmatmul.msk.f32.vlgmr.msra.gmra.mxu0 %vm101_vm2, %v8000_v53  ;;  %11750 = vst [vmem:[#allocation6_spill] sm:$0xff] %v10540_v2 }
 0x3a6   :  { %v2101_v46 = vadd.f32 %v11754_v33, %v828_v1  ;;  %v10561_v33 = vpop.permute.xlu2 %6318 }
 0x3a7   :  { %v6060_v49 = vpop.permute.xlu0 %6059 }
 0x3a8   :  { %v6063_v14 = vsel %vm5799_vm9, %v6058_v23, %v6060_v49  ;;  %v11752_v23 = vld [vmem:[#allocation9_spill] sm:$0xff]  ;;  %v11753_v49 = vld [vmem:[#allocation40_spill] sm:$0xff]  ;;  %v10551_v53 = vpop.f32.mrf.mxu0  ;;  %v2831_v25 = vadd.f32 %v9985_v38, %v2101_v46 }
 0x3a9   :  { %8028 = vmatpush.msk.msra.mxu3 %vm105_vm1, %v6063_v14  ;;  %v903_v57 = vadd.f32 %v11753_v49, %v11752_v23  ;;  %v6143_v51 = vpop.permute.xlu1 %6142  ;;  %v2832_v14 = vadd.f32 %v9997_v58, %v2102_v16  ;;  %v11756_v16 = vld [vmem:[#allocation14_spill] sm:$0xff]  ;;  %v11757_v23 = vld [vmem:[#allocation45_spill] sm:$0xff] }
 0x3aa   :  { %8027 = vmatmul.msk.f32.vlgmr.msra.gmra.mxu2 %vm101_vm2, %v8001_v39  ;;  %8029 = vmatmul.msk.f32.vlgmr.msra.gmra.mxu3 %vm101_vm2, %v8001_v39  ;;  %v6149_v41 = vsel %vm5799_vm9, %v6143_v51, %v10503_v61  ;;  %v3561_v58 = vadd.f32 %v10158_v60, %v2831_v25  ;;  %v998_v49 = vadd.f32 %v11757_v23, %v11756_v16  ;;  %v11762_v16 = vld [vmem:[#allocation13_spill] sm:$0xff]  ;;  %v11763_v23 = vld [vmem:[#allocation44_spill] sm:$0xff] }
 0x3ab   :  { %v2104_v18 = vadd.f32 %v11755_v13, %v903_v57  ;;  %v3562_v1 = vadd.f32 %v10166_v62, %v2832_v14  ;;  %v10581_v62 = vld [vmem:[%s11578_s1 + $0x228] sm:$0xff] }
 0x3ac   :  { %v4291_v46 = vadd.f32 %v10322_v44, %v3561_v58  ;;  %v11761_v58 = vld [vmem:[#allocation43_spill] sm:$0xff] }
 0x3ad   :  { %v10571_v57 = vpop.f32.mrf.mxu3  ;;  %v2834_v38 = vadd.f32 %v10000_v42, %v2104_v18  ;;  %v11760_v18 = vld [vmem:[#allocation12_spill] sm:$0xff] }
 0x3ae   :  { %v5021_v14 = vadd.f32 %v10449_v26, %v4291_v46 }
 0x3af   :  { %v6054_v40 = vpop.permute.xlu0 %6053  ;;  %v10556_v17 = vpop.f32.mrf.mxu1 }
 0x3b0   :  { %v6061_v2 = vsel %vm5799_vm9, %v6054_v40, %v6056_v34  ;;  %v10566_v34 = vpop.f32.mrf.mxu2  ;;  %v11759_v40 = vld [vmem:[#allocation41_spill] sm:$0xff] }
 0x3b1   :  { %8024 = vmatpush.msk.msra.mxu1 %vm105_vm1, %v6061_v2  ;;  %v4292_v2 = vadd.f32 %v10333_v45, %v3562_v1  ;;  %v6228_v25 = vpop.permute.xlu1 %6227  ;;  %v8002_v45 = vld [vmem:[%s11578_s1 + $0x220] sm:$0xff]  ;;  %v923_v1 = vadd.f32 %v11761_v58, %v11760_v18  ;;  %v11765_v18 = vld [vmem:[#allocation17_spill] sm:$0xff] }
 0x3b2   :  { %8025 = vmatmul.msk.f32.vlgmr.msra.gmra.mxu1 %vm101_vm2, %v8001_v39  ;;  %v11758_v39 = vld [vmem:[#allocation10_spill] sm:$0xff]  ;;  %v6235_v44 = vsel %vm5799_vm9, %v6228_v25, %v10532_v24 }
 0x3b3   :  { %8032 = vmatpush.msk.msrb.mxu1 %vm105_vm1, %v6149_v41  ;;  %v868_v60 = vadd.f32 %v11759_v40, %v11758_v39  ;;  %v3564_v41 = vadd.f32 %v10174_v36, %v2834_v38  ;;  %v5022_v13 = vadd.f32 %v10452_v10, %v4292_v2  ;;  %v943_v39 = vadd.f32 %v11763_v23, %v11762_v16  ;;  %v11764_v40 = vld [vmem:[#allocation69_spill] sm:$0xff] }
 0x3b4   :  { %v2108_v36 = vadd.f32 %v11764_v40, %v998_v49  ;;  %8036 = vmatpush.msk.msrb.mxu3 %vm105_vm1, %v6235_v44  ;;  %v11766_v49 = vld [vmem:[#allocation67_spill] sm:$0xff] }
 0x3b5   :  { %v4294_v46 = vadd.f32 %v10337_v37, %v3564_v41  ;;  %8037 = vmatmul.msk.f32.vlgmr.msrb.gmra.mxu3 %vm101_vm2, %v10581_v62  ;;  %v2103_v58 = vadd.f32 %v11765_v18, %v868_v60  ;;  %v6234_v37 = vpop.permute.xlu2 %6233 }
 0x3b6   :  { %v2838_v44 = vadd.f32 %v10033_v15, %v2108_v36  ;;  %v11770_v36 = vld [vmem:[#allocation20_spill] sm:$0xff] }
 0x3b7   :  { %v6141_v42 = vpop.permute.xlu0 %6140  ;;  %v5099_v38 = vpop.f32.mrf.mxu0  ;;  %v2833_v60 = vadd.f32 %v10008_v28, %v2103_v58 }
 0x3b8   :  { %v6148_v26 = vsel %vm5799_vm9, %v6141_v42, %v6143_v51  ;;  %v5119_v10 = vpop.f32.mrf.mxu1  ;;  %v10599_v2 = vadd.f32 %v5099_v38, %v5021_v14  ;;  %v5024_v51 = vadd.f32 %v10460_v27, %v4294_v46  ;;  %v2105_v42 = vadd.f32 %v11766_v49, %v923_v1  ;;  %v5186_v41 = vpop.f32.mrf.mxu3  ;;  %v11767_v14 = vld [vmem:[#allocation68_spill] sm:$0xff]  ;;  %v11768_v27 = vld [vmem:[#allocation15_spill] sm:$0xff]  ;;  %v11769_v1 = vld [vmem:[#allocation46_spill] sm:$0xff] }
 0x3b9   :  { %v10601_v25 = vadd.f32 %v5119_v10, %v5022_v13  ;;  %8030 = vmatpush.msk.msrb.mxu0 %vm105_vm1, %v6148_v26  ;;  %v2106_v13 = vadd.f32 %v11767_v14, %v943_v39  ;;  %v10613_v16 = vpop.f32.mrf.mxu2  ;;  %v6317_v40 = vpop.permute.xlu1 %6316  ;;  %v10621_v26 = vld [vmem:[%s11578_s1 + $0x230] sm:$0xff]  ;;  %v978_v38 = vadd.f32 %v11769_v1, %v11768_v27  ;;  %v3568_v10 = vadd.f32 %v10208_v9, %v2838_v44  ;;  %v11771_v46 = vld [vmem:[#allocation47_spill] sm:$0xff] }
 0x3ba   :  { %8031 = vmatmul.msk.f32.vlgmr.msrb.gmra.mxu0 %vm101_vm2, %v8002_v45  ;;  %8033 = vmatmul.msk.f32.vlgmr.msrb.gmra.mxu1 %vm101_vm2, %v8002_v45  ;;  %v10615_v23 = vadd.f32 %v5186_v41, %v5024_v51  ;;  %v6323_v15 = vsel %vm5799_vm9, %v6317_v40, %v10561_v33  ;;  %v1018_v18 = vadd.f32 %v11771_v46, %v11770_v36  ;;  %v11777_v36 = vld [vmem:[#allocation50_spill] sm:$0xff] }
 0x3bb   :  { %v2835_v28 = vadd.f32 %v10014_v31, %v2105_v42  ;;  %v3563_v58 = vadd.f32 %v10186_v0, %v2833_v60  ;;  %8044 = vmatpush.msk.msra.mxu3 %vm105_vm1, %v6323_v15  ;;  %v2836_v49 = vadd.f32 %v10025_v32, %v2106_v13  ;;  %v4298_v9 = vadd.f32 %v10357_v6, %v3568_v10  ;;  %v11772_v0 = vld [vmem:[#allocation70_spill] sm:$0xff]  ;;  %v11773_v32 = vld [vmem:[#allocation71_spill] sm:$0xff]  ;;  %v11776_v15 = vld [vmem:[#allocation21_spill] sm:$0xff] }
 0x3bc   :  { %v2107_v42 = vadd.f32 %v11772_v0, %v978_v38  ;;  %v2109_v13 = vadd.f32 %v11773_v32, %v1018_v18 }
 0x3bd   :  { %8045 = vmatmul.msk.f32.vlgmr.msra.gmra.mxu3 %vm101_vm2, %v10621_v26  ;;  %v3565_v41 = vadd.f32 %v10180_v35, %v2835_v28  ;;  %v4293_v31 = vadd.f32 %v10355_v55, %v3563_v58  ;;  %v5028_v14 = vadd.f32 %v10480_v50, %v4298_v9  ;;  %v11774_v55 = vld [vmem:[#allocation22_spill] sm:$0xff] }
 0x3be   :  { %v2839_v58 = vadd.f32 %v10045_v30, %v2109_v13  ;;  %v11782_v13 = vld [vmem:[#allocation25_spill] sm:$0xff] }
 0x3bf   :  { %v6147_v39 = vpop.permute.xlu0 %6146  ;;  %v4295_v6 = vadd.f32 %v10347_v4, %v3565_v41  ;;  %v5023_v44 = vadd.f32 %v10474_v59, %v4293_v31  ;;  %v1053_v4 = vadd.f32 %v11777_v36, %v11776_v15  ;;  %v2837_v59 = vadd.f32 %v10039_v11, %v2107_v42  ;;  %v11781_v42 = vld [vmem:[#allocation52_spill] sm:$0xff] }
 0x3c0   :  { %v6150_v51 = vsel %vm5799_vm9, %v10503_v61, %v6147_v39  ;;  %v3566_v61 = vadd.f32 %v10195_v5, %v2836_v49  ;;  %v5293_v60 = vpop.f32.mrf.mxu3  ;;  %v6321_v5 = vpop.permute.xlu2 %6320 }
 0x3c1   :  { %8034 = vmatpush.msk.msrb.mxu2 %vm105_vm1, %v6150_v51  ;;  %v10650_v1 = vadd.f32 %v5293_v60, %v5028_v14  ;;  %v5025_v38 = vadd.f32 %v10469_v29, %v4295_v6  ;;  %v6315_v50 = vpop.permute.xlu1 %6314  ;;  %v3567_v11 = vadd.f32 %v10218_v47, %v2837_v59  ;;  %v11783_v6 = vld [vmem:[#allocation54_spill] sm:$0xff] }
 0x3c2   :  { %8035 = vmatmul.msk.f32.vlgmr.msrb.gmra.mxu2 %vm101_vm2, %v8002_v45  ;;  %v4296_v27 = vadd.f32 %v10351_v20, %v3566_v61  ;;  %v11775_v45 = vld [vmem:[#allocation51_spill] sm:$0xff]  ;;  %v6322_v18 = vsel %vm5799_vm9, %v6315_v50, %v6317_v40  ;;  %v3569_v40 = vadd.f32 %v10212_v48, %v2839_v58 }
 0x3c3   :  { %v1093_v10 = vadd.f32 %v11775_v45, %v11774_v55  ;;  %8042 = vmatpush.msk.msra.mxu2 %vm105_vm1, %v6322_v18  ;;  %v4297_v47 = vadd.f32 %v10378_v12, %v3567_v11  ;;  %v11784_v45 = vld [vmem:[#allocation74_spill] sm:$0xff]  ;;  %v11785_v50 = vld [vmem:[#allocation115_spill] sm:$0xff]  ;;  %v11790_v11 = vld [vmem:[#allocation60_spill] sm:$0xff] }
 0x3c4   :  { %v5026_v46 = vadd.f32 %v10472_v22, %v4296_v27  ;;  %v11778_v22 = vld [vmem:[#allocation73_spill] sm:$0xff]  ;;  %v4299_v48 = vadd.f32 %v10371_v54, %v3569_v40  ;;  %v8005_v54 = vld [vmem:[%s11578_s1 + $0x238] sm:$0xff] }
 0x3c5   :  { %v5139_v35 = vpop.f32.mrf.mxu2  ;;  %v2112_v30 = vadd.f32 %v11778_v22, %v1093_v10  ;;  %v5027_v0 = vadd.f32 %v10496_v43, %v4297_v47 }
 0x3c6   :  { %v10655_v39 = vadd.f32 %v5139_v35, %v5023_v44  ;;  %v1148_v44 = vadd.f32 %v11783_v6, %v11782_v13 }
 0x3c7   :  { %v6232_v20 = vpop.permute.xlu0 %6231  ;;  %v5206_v28 = vpop.f32.mrf.mxu0  ;;  %v2842_v14 = vadd.f32 %v10057_v3, %v2112_v30  ;;  %v11791_v30 = vld [vmem:[#allocation103_spill] sm:$0xff] }
 0x3c8   :  { %v6236_v29 = vsel %vm5799_vm9, %v10532_v24, %v6232_v20  ;;  %v6237_v51 = vsel %vm5799_vm9, %v6232_v20, %v6234_v37  ;;  %v10666_v49 = vadd.f32 %v5206_v28, %v5025_v38  ;;  %v5226_v9 = vpop.f32.mrf.mxu1  ;;  %v6324_v24 = vsel %vm5799_vm9, %v10561_v33, %v6321_v5  ;;  %v11779_v37 = vld [vmem:[#allocation72_spill] sm:$0xff]  ;;  %v11780_v33 = vld [vmem:[#allocation23_spill] sm:$0xff] }
 0x3c9   :  { %v10670_v41 = vadd.f32 %v5226_v9, %v5026_v46  ;;  %8038 = vmatpush.msk.msra.mxu0 %vm105_vm1, %v6236_v29  ;;  %8040 = vmatpush.msk.msra.mxu1 %vm105_vm1, %v6237_v51  ;;  %v2110_v31 = vadd.f32 %v11779_v37, %v1053_v4  ;;  %v1073_v61 = vadd.f32 %v11781_v42, %v11780_v33  ;;  %v6408_v12 = vpop.permute.xlu1 %6407  ;;  %v11786_v4 = vld [vmem:[#allocation37_spill] sm:$0xff]  ;;  %v11787_v46 = vld [vmem:[#allocation114_spill] sm:$0xff]  ;;  %v11789_v29 = vld [vmem:[#allocation19_spill] sm:$0xff] }
 0x3ca   :  { %8039 = vmatmul.msk.f32.vlgmr.msra.gmra.mxu0 %vm101_vm2, %v10581_v62  ;;  %8041 = vmatmul.msk.f32.vlgmr.msra.gmra.mxu1 %vm101_vm2, %v10581_v62  ;;  %v5029_v62 = vadd.f32 %v10490_v19, %v4299_v48  ;;  %v3572_v55 = vadd.f32 %v10229_v7, %v2842_v14  ;;  %v11793_v37 = vld [vmem:[#allocation118_spill] sm:$0xff] }
 0x3cb   :  { %8043 = vmatmul.msk.f32.vlgmr.msra.gmra.mxu2 %vm101_vm2, %v10621_v26  ;;  %8046 = vmatpush.msk.msrb.mxu0 %vm105_vm1, %v6324_v24  ;;  %v2840_v43 = vadd.f32 %v10055_v52, %v2110_v31  ;;  %v2111_v10 = vadd.f32 %v11784_v45, %v1073_v61  ;;  %v2114_v52 = vadd.f32 %v9900_v21, %v1148_v44  ;;  %v11792_v24 = vld [vmem:[#allocation102_spill] sm:$0xff]  ;;  %v11799_v45 = vld [vmem:[#allocation55_spill] sm:$0xff] }
 0x3cc   :  { %v4302_v5 = vadd.f32 %v10382_v63, %v3572_v55  ;;  %v11788_v63 = vld [vmem:[#allocation48_spill] sm:$0xff] }
 0x3cd   :  { %v3570_v38 = vadd.f32 %v10222_v8, %v2840_v43  ;;  %v2841_v59 = vadd.f32 %v11786_v4, %v2111_v10  ;;  %v2844_v28 = vadd.f32 %v11788_v63, %v2114_v52  ;;  %v11797_v43 = vld [vmem:[#allocation53_spill] sm:$0xff] }
 0x3ce   :  { %v5273_v32 = vpop.f32.mrf.mxu2  ;;  %v5032_v15 = vadd.f32 %v11785_v50, %v4302_v5  ;;  %v11801_v5 = vld [vmem:[#allocation7_spill] sm:$0xff]  ;;  %v11803_v50 = vld [vmem:[#allocation56_spill] sm:$0xff]  ;;  %v11804_v4 = vld [vmem:[#allocation29_spill] sm:$0xff] }
 0x3cf   :  { %v10695_v60 = vadd.f32 %v5273_v32, %v5027_v0  ;;  %v6406_v27 = vpop.permute.xlu0 %6405  ;;  %v5313_v35 = vpop.f32.mrf.mxu0  ;;  %v4300_v7 = vadd.f32 %v10375_v56, %v3570_v38  ;;  %v3571_v51 = vadd.f32 %v11789_v29, %v2841_v59  ;;  %v3574_v22 = vadd.f32 %v11790_v11, %v2844_v28  ;;  %v11794_v0 = vld [vmem:[#allocation117_spill] sm:$0xff]  ;;  %v11800_v38 = vld [vmem:[#allocation28_spill] sm:$0xff]  ;;  %v11810_v29 = vld [vmem:[#allocation34_spill] sm:$0xff] }
 0x3d0   :  { %v6411_v3 = vsel %vm5799_vm9, %v6406_v27, %v6408_v12  ;;  %v10703_v19 = vadd.f32 %v5313_v35, %v5029_v62  ;;  %v1223_v52 = vadd.f32 %v11801_v5, %v11800_v38  ;;  %v11805_v59 = vld [vmem:[#allocation5_spill] sm:$0xff]  ;;  %v11813_v11 = vld [vmem:[#allocation58_spill] sm:$0xff] }
 0x3d1   :  { %8052 = vmatpush.msk.msrb.mxu3 %vm105_vm1, %v6411_v3  ;;  %v5030_v20 = vadd.f32 %v11787_v46, %v4300_v7  ;;  %v6402_v8 = vpop.permute.xlu1 %6401  ;;  %v4301_v40 = vadd.f32 %v11791_v30, %v3571_v51  ;;  %v4304_v47 = vadd.f32 %v11792_v24, %v3574_v22  ;;  %v11798_v3 = vld [vmem:[#allocation26_spill] sm:$0xff]  ;;  %v11802_v7 = vld [vmem:[#allocation27_spill] sm:$0xff]  ;;  %v1243_v46 = vadd.f32 %v11805_v59, %v11804_v4  ;;  %v11808_v28 = vld [vmem:[#allocation33_spill] sm:$0xff] }
 0x3d2   :  { %8047 = vmatmul.msk.f32.vlgmr.msrb.gmra.mxu0 %vm101_vm2, %v10621_v26  ;;  %8053 = vmatmul.msk.f32.vlgmr.msrb.gmra.mxu3 %vm101_vm2, %v8005_v54  ;;  %v1203_v10 = vadd.f32 %v11799_v45, %v11798_v3  ;;  %v11811_v51 = vld [vmem:[#allocation62_spill] sm:$0xff]  ;;  %v11814_v30 = vld [vmem:[#allocation35_spill] sm:$0xff]  ;;  %v11821_v38 = vld [vmem:[#allocation77_spill] sm:$0xff] }
 0x3d3   :  { %v5031_v31 = vadd.f32 %v11793_v37, %v4301_v40  ;;  %v5034_v33 = vadd.f32 %v11794_v0, %v4304_v47  ;;  %v11815_v40 = vld [vmem:[#allocation11_spill] sm:$0xff]  ;;  %v11816_v47 = vld [vmem:[#allocation36_spill] sm:$0xff]  ;;  %v11820_v3 = vld [vmem:[#allocation78_spill] sm:$0xff] }
 0x3d4   :  { %v1393_v24 = vadd.f32 %v11815_v40, %v11814_v30  ;;  %v11817_v37 = vld [vmem:[#allocation63_spill] sm:$0xff]  ;;  %v2117_v45 = vadd.f32 %v11820_v3, %v1223_v52  ;;  %v11828_v40 = vld [vmem:[#allocation84_spill] sm:$0xff] }
 0x3d5   :  { %v5400_v36 = vpop.f32.mrf.mxu3  ;;  %v11822_v4 = vld [vmem:[#allocation79_spill] sm:$0xff] }
 0x3d6   :  { %v10717_v18 = vadd.f32 %v5400_v36, %v5032_v15  ;;  %v1168_v15 = vadd.f32 %v11803_v50, %v11802_v7  ;;  %v2118_v59 = vadd.f32 %v11822_v4, %v1243_v46  ;;  %v11827_v30 = vld [vmem:[#allocation83_spill] sm:$0xff] }
 0x3d7   :  { %v6404_v58 = vpop.permute.xlu0 %6403  ;;  %v5360_v26 = vpop.f32.mrf.mxu1  ;;  %v11833_v3 = vld [vmem:[#allocation87_spill] sm:$0xff] }
 0x3d8   :  { %v6410_v21 = vsel %vm5799_vm9, %v6404_v58, %v6406_v27  ;;  %v6409_v56 = vsel %vm5799_vm9, %v6402_v8, %v6404_v58  ;;  %v10723_v9 = vadd.f32 %v5360_v26, %v5030_v20  ;;  %v11806_v20 = vld [vmem:[#allocation30_spill] sm:$0xff]  ;;  %v11807_v8 = vld [vmem:[#allocation57_spill] sm:$0xff]  ;;  %v11809_v58 = vld [vmem:[#allocation59_spill] sm:$0xff]  ;;  %v2115_v5 = vadd.f32 %v11821_v38, %v1168_v15 }
 0x3d9   :  { %8048 = vmatpush.msk.msrb.mxu1 %vm105_vm1, %v6409_v56  ;;  %8050 = vmatpush.msk.msrb.mxu2 %vm105_vm1, %v6410_v21  ;;  %v1298_v63 = vadd.f32 %v11807_v8, %v11806_v20  ;;  %v1318_v26 = vadd.f32 %v11809_v58, %v11808_v28  ;;  %v1353_v21 = vadd.f32 %v11811_v51, %v11810_v29  ;;  %v11812_v56 = vld [vmem:[#allocation31_spill] sm:$0xff]  ;;  %v11823_v20 = vld [vmem:[#allocation80_spill] sm:$0xff]  ;;  %v11824_v28 = vld [vmem:[#allocation82_spill] sm:$0xff] }
 0x3da   :  { %8049 = vmatmul.msk.f32.vlgmr.msrb.gmra.mxu1 %vm101_vm2, %v8005_v54  ;;  %8051 = vmatmul.msk.f32.vlgmr.msrb.gmra.mxu2 %vm101_vm2, %v8005_v54  ;;  %v10738_v62 = vpop.f32.mrf.mxu0  ;;  %v11796_v54 = vld [vmem:[#allocation24_spill] sm:$0xff]  ;;  %v1278_v22 = vadd.f32 %v11813_v11, %v11812_v56  ;;  %v11826_v11 = vld [vmem:[#allocation81_spill] sm:$0xff]  ;;  %vm7474_vm2 = vcmask 64512  }
 0x3db   :  { %v1128_v55 = vadd.f32 %v11797_v43, %v11796_v54  ;;  %v11819_v54 = vld [vmem:[#allocation76_spill] sm:$0xff]  ;;  %v2120_v8 = vadd.f32 %v11823_v20, %v1298_v63  ;;  %v2121_v58 = vadd.f32 %v11824_v28, %v1318_v26  ;;  %v11836_v20 = vld [vmem:[#allocation91_spill] sm:$0xff]  ;;  %v11837_v28 = vld [vmem:[#allocation89_spill] sm:$0xff] }
 0x3dc   :  { %v2116_v43 = vadd.f32 %v11819_v54, %v1203_v10  ;;  %v11825_v51 = vld [vmem:[#allocation32_spill] sm:$0xff]  ;;  %v2124_v10 = vadd.f32 %v11827_v30, %v1393_v24  ;;  %v11831_v54 = vld [vmem:[#allocation85_spill] sm:$0xff]  ;;  %v2848_v24 = vadd.f32 %v11833_v3, %v2118_v59 }
 0x3dd   :  { %v5380_v48 = vpop.f32.mrf.mxu2  ;;  %v2122_v56 = vadd.f32 %v11825_v51, %v1353_v21  ;;  %v2845_v63 = vadd.f32 %v11831_v54, %v2115_v5  ;;  %v11832_v21 = vld [vmem:[#allocation49_spill] sm:$0xff]  ;;  %v11834_v38 = vld [vmem:[#allocation88_spill] sm:$0xff] }
 0x3de   :  { %v10734_v42 = vadd.f32 %v5380_v48, %v5031_v31  ;;  %v1373_v31 = vadd.f32 %v11817_v37, %v11816_v47  ;;  %v11829_v47 = vld [vmem:[#allocation42_spill] sm:$0xff]  ;;  %v11839_v51 = vld [vmem:[#allocation93_spill] sm:$0xff] }
 0x3df   :  { %v5467_v61 = vpop.f32.mrf.mxu1  ;;  %v11843_v54 = vld [vmem:[#allocation65_spill] sm:$0xff] }
 0x3e0   :  { %v10736_v14 = vadd.f32 %v5467_v61, %v5034_v33  ;;  %v11818_v33 = vld [vmem:[#allocation75_spill] sm:$0xff]  ;;  %v2123_v52 = vadd.f32 %v11828_v40, %v1373_v31  ;;  %v2850_v31 = vadd.f32 %v11834_v38, %v2120_v8  ;;  %v11841_v40 = vld [vmem:[#allocation66_spill] sm:$0xff] }
 0x3e1   :  { %v2113_v61 = vadd.f32 %v11818_v33, %v1128_v55  ;;  %v2119_v55 = vadd.f32 %v11826_v11, %v1278_v22  ;;  %v11830_v33 = vld [vmem:[#allocation86_spill] sm:$0xff]  ;;  %v2846_v22 = vadd.f32 %v11832_v21, %v2116_v43  ;;  %v3575_v43 = vadd.f32 %v11841_v40, %v2845_v63 }
 0x3e2   :  { %11795 = vst [vmem:[#allocation9_spill] sm:$0xff] %v10736_v14  ;;  %v2847_v46 = vadd.f32 %v11830_v33, %v2117_v45  ;;  %v11840_v11 = vld [vmem:[#allocation18_spill] sm:$0xff]  ;;  %v11842_v33 = vld [vmem:[#allocation61_spill] sm:$0xff] }
 0x3e3   :  { %v2843_v37 = vadd.f32 %v11829_v47, %v2113_v61  ;;  %v2852_v61 = vadd.f32 %v11836_v20, %v2122_v56  ;;  %v2849_v45 = vadd.f32 %v11837_v28, %v2119_v55  ;;  %v11845_v38 = vld [vmem:[#allocation98_spill] sm:$0xff]  ;;  %v11847_v28 = vld [vmem:[#allocation96_spill] sm:$0xff] }
 0x3e4   :  { %v3577_v56 = vadd.f32 %v11843_v54, %v2847_v46  ;;  %v11854_v54 = vld [vmem:[#allocation107_spill] sm:$0xff] }
 0x3e5   :  { %v10780_v0 = vpop.permute.xlu2 %6508  ;;  %v3573_v30 = vadd.f32 %v11840_v11, %v2843_v37  ;;  %v11846_v37 = vld [vmem:[#allocation95_spill] sm:$0xff] }
 0x3e6   :  { %v3580_v20 = vadd.f32 %v11846_v37, %v2850_v31  ;;  %v11850_v11 = vld [vmem:[#allocation99_spill] sm:$0xff] }
 0x3e7   :  { %v10740_v32 = vpop.f32.mrf.mxu2 }
 0x3e9   :  { %v10744_v13 = vpop.f32.mrf.mxu0 }
 0x3ed   :  { %v10746_v6 = vpop.f32.mrf.mxu3 }
 0x3ef   :  { %v10742_v12 = vpop.f32.mrf.mxu1  ;;  %v10748_v44 = vpop.f32.mrf.mxu2 }
 0x3f9   :  { %v10750_v27 = vpop.f32.mrf.mxu1 }
 0x3fd   :  { %v10762_v36 = vpop.f32.mrf.mxu3 }
 0x3ff   :  { %v10752_v35 = vpop.f32.mrf.mxu0 }
 0x400   :  { %v10778_v48 = vpop.f32.mrf.mxu2 }
 0x407   :  { %v5829_v7 = vpop.f32.mrf.mxu0  ;;  %v5849_v50 = vpop.f32.mrf.mxu1 }
 0x408   :  { %v6482_v29 = vadd.f32 %v5849_v50, %v10601_v25  ;;  %v6481_v26 = vadd.f32 %v5829_v7, %v10599_v2  ;;  %v6559_v25 = vld [vmem:[%s11581_s4] sm:$0x7]  ;;  %v11835_v50 = vld [vmem:[#allocation90_spill] sm:$0xff]  ;;  %v2853_v2 = vadd.f32 %v11839_v51, %v2123_v52  ;;  %v10810_v7 = vpop.f32.mrf.mxu3  ;;  %v5869_v47 = vpop.f32.mrf.mxu2 }
 0x409   :  { %v2851_v4 = vadd.f32 %v11835_v50, %v2121_v58  ;;  %v10814_v59 = vperm.slane %v6559_v25, 1  ;;  %v3576_v58 = vadd.f32 %v11842_v33, %v2846_v22  ;;  %v6483_v55 = vadd.f32 %v5869_v47, %v10655_v39  ;;  %v11844_v52 = vld [vmem:[#allocation94_spill] sm:$0xff]  ;;  %v11849_v22 = vld [vmem:[#allocation100_spill] sm:$0xff] }
 0x40a   :  { %v6512_v15 = vadd.f32 %v10780_v0, %v6482_v29  ;;  %v11838_v29 = vld [vmem:[#allocation92_spill] sm:$0xff]  ;;  %v3578_v3 = vadd.f32 %v11844_v52, %v2848_v24  ;;  %v3579_v50 = vadd.f32 %v11845_v38, %v2849_v45  ;;  %v10829_v46 = vadd.f32 %v11849_v22, %v2853_v2  ;;  %v11851_v24 = vld [vmem:[#allocation101_spill] sm:$0xff] }
 0x40b   :  { %v2854_v5 = vadd.f32 %v11838_v29, %v2124_v10  ;;  %v6511_v10 = vadd.f32 %v10780_v0, %v6481_v26  ;;  %v3581_v29 = vadd.f32 %v11847_v28, %v2851_v4  ;;  %v6513_v39 = vadd.f32 %v10780_v0, %v6483_v55  ;;  %v11853_v47 = vld [vmem:[#allocation104_spill] sm:$0xff]  ;;  %v11856_v52 = vld [vmem:[#allocation105_spill] sm:$0xff] }
 0x40c   :  { %v6536_v8 = vmax.f32 %v6512_v15, 0.0  ;;  %v11848_v15 = vld [vmem:[#allocation97_spill] sm:$0xff]  ;;  %v10836_v40 = vadd.f32 %v11851_v24, %v3573_v30  ;;  %v10842_v45 = vperm.slane %v6559_v25, 2  ;;  %v10847_v33 = vadd.f32 %v11853_v47, %v3576_v58  ;;  %v11855_v55 = vld [vmem:[#allocation108_spill] sm:$0xff] }
 0x40d   :  { %v10826_v51 = vadd.f32 %v11848_v15, %v2852_v61  ;;  %v10833_v26 = vadd.f32 %v11850_v11, %v2854_v5  ;;  %v6537_v4 = vmax.f32 %v6513_v39, 0.0  ;;  %v10844_v61 = vperm.slane %v6559_v25, 0  ;;  %v11859_v58 = vld [vmem:[#allocation109_spill] sm:$0xff] }
 0x40e   :  { %v6535_v2 = vmax.f32 %v6511_v10, 0.0  ;;  %v10850_v5 = vadd.f32 %v11854_v54, %v3575_v43  ;;  %v10853_v30 = vadd.f32 %v11855_v55, %v3580_v20  ;;  %v10856_v38 = vadd.f32 %v11856_v52, %v3577_v56 }
 0x40f   :  { %v5936_v21 = vpop.f32.mrf.mxu0  ;;  %v10865_v28 = vadd.f32 %v11859_v58, %v3581_v29  ;;  %v10873_v22 = vmul.f32 %v10842_v45, %v6537_v4 }
 0x410   :  { %v6485_v63 = vadd.f32 %v5936_v21, %v10666_v49  ;;  %v10840_v49 = vmul.f32 %v10814_v59, %v6536_v8  ;;  %v11857_v8 = vld [vmem:[#allocation106_spill] sm:$0xff] }
 0x411   :  { %v10859_v37 = vadd.f32 %v11857_v8, %v3578_v3  ;;  %v5956_v15 = vpop.f32.mrf.mxu1  ;;  %11861 = vst [vmem:[#allocation16_spill] sm:$0xff] %v10873_v22 }
 0x412   :  { %v6515_v31 = vadd.f32 %v10780_v0, %v6485_v63  ;;  %11852 = vst [vmem:[#allocation40_spill] sm:$0xff] %v10840_v49  ;;  %v11858_v63 = vld [vmem:[#allocation111_spill] sm:$0xff]  ;;  %v6636_v56 = vrot.slane %v10840_v49, 1  ;;  %v6486_v3 = vadd.f32 %v5956_v15, %v10670_v41  ;;  %v6846_v39 = vrot.slane %v10840_v49, 2 }
 0x413   :  { %v10862_v25 = vadd.f32 %v11858_v63, %v3579_v50  ;;  %v10877_v50 = vmul.f32 %v10844_v61, %v6535_v2  ;;  %v6952_v4 = vrot.slane %v10840_v49, 3  ;;  %v7058_v2 = vrot.slane %v10840_v49, 4 }
 0x414   :  { %v6539_v21 = vmax.f32 %v6515_v31, 0.0  ;;  %v6516_v31 = vadd.f32 %v10780_v0, %v6486_v3 }
 0x415   :  { %v5916_v10 = vpop.f32.mrf.mxu3  ;;  %v6615_v8 = vrot.slane %v10877_v50, 1  ;;  %v6832_v63 = vrot.slane %v10877_v50, 2  ;;  %v6938_v15 = vrot.slane %v10877_v50, 3 }
 0x416   :  { %v10868_v43 = vmul.f32 %v10814_v59, %v6539_v21  ;;  %v6484_v20 = vadd.f32 %v5916_v10, %v10615_v23  ;;  %v6540_v52 = vmax.f32 %v6516_v31, 0.0 }
 0x418   :  { %11860 = vst [vmem:[#allocation64_spill] sm:$0xff] %v10868_v43  ;;  %v6514_v29 = vadd.f32 %v10780_v0, %v6484_v20  ;;  %v10883_v11 = vsel %vm6616_vm10, %v10868_v43, %v6636_v56  ;;  %v6741_v23 = vrot.slane %v10868_v43, 7  ;;  %v6847_v24 = vrot.slane %v10868_v43, 1 }
 0x419   :  { %v6953_v41 = vrot.slane %v10868_v43, 2  ;;  %v7059_v21 = vrot.slane %v10868_v43, 3  ;;  %v6650_v20 = vrot.slane %v10873_v22, 1  ;;  %v10913_v3 = vmul.f32 %v10842_v45, %v6540_v52 }
 0x41a   :  { %v6538_v47 = vmax.f32 %v6514_v29, 0.0  ;;  %v10893_v54 = vsel %vm6616_vm10, %v6741_v23, %v10840_v49  ;;  %v10896_v55 = vsel %vm6616_vm10, %v6847_v24, %v6846_v39  ;;  %v6860_v39 = vrot.slane %v10873_v22, 2 }
 0x41b   :  { %v10902_v10 = vsel %vm6616_vm10, %v6953_v41, %v6952_v4  ;;  %v10910_v56 = vsel %vm6616_vm10, %v7059_v21, %v7058_v2  ;;  %11865 = vst [vmem:[#allocation41_spill] sm:$0xff] %v10913_v3  ;;  %v6966_v29 = vrot.slane %v10873_v22, 3  ;;  %v7072_v23 = vrot.slane %v10873_v22, 4 }
 0x41c   :  { %11862 = vst [vmem:[#allocation14_spill] sm:$0xff] %v10902_v10  ;;  %v10905_v58 = vmul.f32 %v10844_v61, %v6538_v47  ;;  %v10927_v2 = vsel %vm6616_vm10, %v10913_v3, %v6650_v20  ;;  %v6755_v47 = vrot.slane %v10913_v3, 7  ;;  %v6861_v21 = vrot.slane %v10913_v3, 1 }
 0x41d   :  { %11864 = vst [vmem:[#allocation10_spill] sm:$0xff] %v10910_v56  ;;  %v6967_v52 = vrot.slane %v10913_v3, 2  ;;  %v7073_v49 = vrot.slane %v10913_v3, 3 }
 0x41e   :  { %11863 = vst [vmem:[#allocation45_spill] sm:$0xff] %v10905_v58  ;;  %v10920_v24 = vsel %vm6616_vm10, %v10905_v58, %v6615_v8  ;;  %v6727_v31 = vrot.slane %v10905_v58, 7  ;;  %v6833_v4 = vrot.slane %v10905_v58, 1  ;;  %v6939_v41 = vrot.slane %v10905_v58, 2 }
 0x41f   :  { %v10945_v20 = vsel %vm6616_vm10, %v6755_v47, %v10873_v22  ;;  %v10948_v14 = vsel %vm6616_vm10, %v6861_v21, %v6860_v39  ;;  %v10951_v10 = vsel %vm6616_vm10, %v6967_v52, %v6966_v29  ;;  %v11870_v47 = vld [vmem:[#allocation112_spill] sm:$0xff]  ;;  %v11871_v39 = vld [vmem:[#allocation110_spill] sm:$0xff]  ;;  %v11872_v29 = vld [vmem:[#allocation113_spill] sm:$0xff] }
 0x420   :  { %v10934_v8 = vsel %vm6616_vm10, %v6727_v31, %v10877_v50  ;;  %v10937_v43 = vsel %vm6616_vm10, %v6833_v4, %v6832_v63  ;;  %v10941_v56 = vsel %vm6616_vm10, %v6939_v41, %v6938_v15  ;;  %11867 = vst [vmem:[#allocation43_spill] sm:$0xff] %v10948_v14  ;;  %v7044_v31 = vrot.slane %v10877_v50, 4  ;;  %v11873_v22 = vld [vmem:[#allocation116_spill] sm:$0xff]  ;;  %v6023_v14 = vpop.f32.mrf.mxu3 }
 0x421   :  { %11866 = vst [vmem:[#allocation12_spill] sm:$0xff] %v10941_v56  ;;  %v10955_v63 = vsel %vm6616_vm10, %v7073_v49, %v7072_v23  ;;  %v7045_v4 = vrot.slane %v10905_v58, 3  ;;  %v7150_v15 = vrot.slane %v10877_v50, 5  ;;  %v7151_v41 = vrot.slane %v10905_v58, 4  ;;  %v11874_v49 = vld [vmem:[#allocation38_spill] sm:$0xff] }
 0x422   :  { %11868 = vst [vmem:[#allocation13_spill] sm:$0xff] %v10951_v10  ;;  %v4314_v3 = vadd.f32 %v11870_v47, %v10833_v26  ;;  %v4312_v21 = vadd.f32 %v11871_v39, %v10826_v51  ;;  %v4313_v52 = vadd.f32 %v11872_v29, %v10829_v46  ;;  %v5033_v56 = vadd.f32 %v11873_v22, %v10836_v40  ;;  %v11876_v51 = vld [vmem:[#allocation119_spill] sm:$0xff]  ;;  %v11878_v40 = vld [vmem:[#allocation6_spill] sm:$0xff] }
 0x423   :  { %11869 = vst [vmem:[#allocation44_spill] sm:$0xff] %v10955_v63  ;;  %v5035_v23 = vadd.f32 %v11874_v49, %v10850_v5  ;;  %v11875_v63 = vld [vmem:[#allocation8_spill] sm:$0xff]  ;;  %v10973_v58 = vsel %vm6616_vm10, %v7045_v4, %v7044_v31  ;;  %v10976_v26 = vsel %vm6616_vm10, %v7151_v41, %v7150_v15  ;;  %v5036_v47 = vadd.f32 %v11876_v51, %v10847_v33  ;;  %v11877_v46 = vld [vmem:[#allocation39_spill] sm:$0xff]  ;;  %v6043_v33 = vpop.f32.mrf.mxu0 }
 0x424   :  { %v5037_v10 = vadd.f32 %v11875_v63, %v10856_v38  ;;  %v5038_v39 = vadd.f32 %v11877_v46, %v10859_v37  ;;  %v5040_v22 = vadd.f32 %v11878_v40, %v10853_v30  ;;  %v6488_v29 = vadd.f32 %v6023_v14, %v10650_v1 }
 0x425   :  { %v6003_v5 = vpop.f32.mrf.mxu2  ;;  %v5039_v38 = vadd.f32 %v10566_v34, %v10862_v25  ;;  %v5041_v31 = vadd.f32 %v10551_v53, %v10865_v28  ;;  %v5043_v63 = vadd.f32 %v10613_v16, %v4313_v52  ;;  %v5044_v15 = vadd.f32 %v10571_v57, %v4314_v3 }
 0x426   :  { %v6487_v4 = vadd.f32 %v6003_v5, %v10695_v60  ;;  %v5042_v37 = vadd.f32 %v10556_v17, %v4312_v21  ;;  %v6518_v30 = vadd.f32 %v10780_v0, %v6488_v29  ;;  %v6489_v41 = vadd.f32 %v6043_v33, %v10703_v19 }
 0x427   :  { %v10996_v1 = vadd.f32 %v10738_v62, %v5033_v56  ;;  %v10999_v34 = vadd.f32 %v10740_v32, %v5035_v23  ;;  %v11002_v53 = vadd.f32 %v10746_v6, %v5036_v47  ;;  %v11006_v60 = vadd.f32 %v10744_v13, %v5037_v10 }
 0x428   :  { %v6517_v16 = vadd.f32 %v10780_v0, %v6487_v4  ;;  %v11009_v17 = vadd.f32 %v10742_v12, %v5038_v39  ;;  %v6542_v57 = vmax.f32 %v6518_v30, 0.0  ;;  %v6519_v19 = vadd.f32 %v10780_v0, %v6489_v41 }
 0x429   :  { %v11013_v14 = vadd.f32 %v10748_v44, %v5039_v38  ;;  %v11016_v62 = vadd.f32 %v10762_v36, %v5040_v22  ;;  %v11019_v6 = vadd.f32 %v10752_v35, %v5041_v31  ;;  %v11022_v13 = vadd.f32 %v10750_v27, %v5042_v37  ;;  %v11881_v41 = vld [vmem:[#allocation13_spill] sm:$0xff] }
 0x42a   :  { %v6541_v32 = vmax.f32 %v6517_v16, 0.0  ;;  %v11025_v12 = vmul.f32 %v10814_v59, %v6542_v57  ;;  %v6543_v25 = vmax.f32 %v6519_v19, 0.0  ;;  %v11028_v28 = vadd.f32 %v10778_v48, %v5043_v63 }
 0x42b   :  { %v11031_v44 = vadd.f32 %v10810_v7, %v5044_v15  ;;  %v7256_v31 = vrot.slane %v10877_v50, 6 }
 0x42c   :  { %v11034_v36 = vmul.f32 %v10844_v61, %v6541_v32  ;;  %v11037_v35 = vmul.f32 %v10842_v45, %v6543_v25  ;;  %v6638_v56 = vrot.slane %v11025_v12, 7  ;;  %v6743_v3 = vrot.slane %v11025_v12, 6 }
 0x42d   :  { %v6110_v10 = vpop.f32.mrf.mxu2  ;;  %v6130_v27 = vpop.f32.mrf.mxu3  ;;  %v6849_v48 = vsel %vm6619_vm11, %v11025_v12, %v10896_v55 }
 0x42e   :  { %v6491_v7 = vadd.f32 %v6110_v10, %v10734_v42  ;;  %v6492_v21 = vadd.f32 %v6130_v27, %v10717_v18  ;;  %v6618_v52 = vrot.slane %v11034_v36, 7  ;;  %v6729_v49 = vrot.slane %v11034_v36, 6 }
 0x42f   :  { %v6090_v23 = vpop.f32.mrf.mxu1  ;;  %v6652_v51 = vrot.slane %v11037_v35, 7  ;;  %v6835_v47 = vsel %vm6619_vm11, %v11034_v36, %v10937_v43  ;;  %v6639_v46 = vsel %vm6619_vm11, %v6638_v56, %v10883_v11  ;;  %v6744_v55 = vsel %vm6619_vm11, %v6743_v3, %v10893_v54 }
 0x430   :  { %v6521_v42 = vadd.f32 %v10780_v0, %v6491_v7  ;;  %v6522_v18 = vadd.f32 %v10780_v0, %v6492_v21  ;;  %v6490_v39 = vadd.f32 %v6090_v23, %v10723_v9  ;;  %v6620_v40 = vsel %vm6619_vm11, %v6618_v52, %v10920_v24  ;;  %v11879_v9 = vld [vmem:[#allocation14_spill] sm:$0xff] }
 0x431   :  { %v6653_v22 = vsel %vm6619_vm11, %v6652_v51, %v10927_v2  ;;  %v6730_v43 = vsel %vm6619_vm11, %v6729_v49, %v10934_v8  ;;  %v6955_v11 = vrot.slane %v11025_v12, 1  ;;  %v6757_v5 = vrot.slane %v11037_v35, 6  ;;  %v11880_v2 = vld [vmem:[#allocation43_spill] sm:$0xff]  ;;  %v11882_v51 = vld [vmem:[#allocation9_spill] sm:$0xff] }
 0x432   :  { %v6545_v54 = vmax.f32 %v6521_v42, 0.0  ;;  %v6546_v29 = vmax.f32 %v6522_v18, 0.0  ;;  %v6520_v38 = vadd.f32 %v10780_v0, %v6490_v39  ;;  %v6863_v8 = vsel %vm6619_vm11, %v11037_v35, %v11880_v2 }
 0x433   :  { %v6956_v63 = vsel %vm6619_vm11, %v6955_v11, %v11879_v9  ;;  %v6758_v24 = vsel %vm6619_vm11, %v6757_v5, %v10945_v20  ;;  %v6969_v4 = vrot.slane %v11037_v35, 1  ;;  %v7075_v30 = vrot.slane %v11037_v35, 2 }
 0x434   :  { %v11078_v33 = vmul.f32 %v10814_v59, %v6545_v54  ;;  %v11081_v15 = vmul.f32 %v10842_v45, %v6546_v29  ;;  %v6544_v37 = vmax.f32 %v6520_v38, 0.0  ;;  %v6941_v20 = vrot.slane %v11034_v36, 1 }
 0x435   :  { %v6970_v16 = vsel %vm6619_vm11, %v6969_v4, %v11881_v41  ;;  %v7047_v57 = vrot.slane %v11034_v36, 2  ;;  %v7153_v19 = vrot.slane %v11034_v36, 3 }
 0x436   :  { %v11090_v32 = vmul.f32 %v10844_v61, %v6544_v37  ;;  %v6654_v25 = vrot.slane %v11081_v15, 6  ;;  %v6640_v10 = vrot.slane %v11078_v33, 6  ;;  %v6745_v27 = vrot.slane %v11078_v33, 5 }
 0x437   :  { %v6177_v56 = vpop.f32.mrf.mxu0  ;;  %v6197_v3 = vpop.f32.mrf.mxu1  ;;  %v6850_v7 = vrot.slane %v11078_v33, 7  ;;  %v6957_v21 = vsel %vm6622_vm12, %v11078_v33, %v6956_v63  ;;  %v6759_v52 = vrot.slane %v11081_v15, 5  ;;  %v6864_v49 = vrot.slane %v11081_v15, 7 }
 0x438   :  { %v6493_v23 = vadd.f32 %v6177_v56, %v10996_v1  ;;  %v6494_v42 = vadd.f32 %v6197_v3, %v11882_v51  ;;  %v11103_v18 = vsel %vm6622_vm12, %v6654_v25, %v6653_v22  ;;  %v6621_v39 = vrot.slane %v11090_v32, 6  ;;  %v6264_v41 = vpop.f32.mrf.mxu3 }
 0x439   :  { %v6731_v11 = vrot.slane %v11090_v32, 5  ;;  %v6836_v5 = vrot.slane %v11090_v32, 7  ;;  %v6641_v54 = vsel %vm6622_vm12, %v6640_v10, %v6639_v46  ;;  %v6746_v29 = vsel %vm6622_vm12, %v6745_v27, %v6744_v55  ;;  %v11884_v10 = vld [vmem:[#allocation12_spill] sm:$0xff] }
 0x43a   :  { %v6523_v38 = vadd.f32 %v10780_v0, %v6493_v23  ;;  %v6524_v1 = vadd.f32 %v10780_v0, %v6494_v42  ;;  %v6623_v9 = vsel %vm6622_vm12, %v6621_v39, %v6620_v40  ;;  %v6851_v22 = vsel %vm6622_vm12, %v6850_v7, %v6849_v48  ;;  %v11883_v40 = vld [vmem:[#allocation44_spill] sm:$0xff] }
 0x43b   :  { %v6732_v63 = vsel %vm6622_vm12, %v6731_v11, %v6730_v43  ;;  %v6837_v2 = vsel %vm6622_vm12, %v6836_v5, %v6835_v47  ;;  %v11117_v4 = vsel %vm6622_vm12, %v6759_v52, %v6758_v24  ;;  %v11120_v37 = vsel %vm6622_vm12, %v6864_v49, %v6863_v8 }
 0x43c   :  { %v6547_v46 = vmax.f32 %v6523_v38, 0.0  ;;  %v6548_v55 = vmax.f32 %v6524_v1, 0.0  ;;  %v11124_v25 = vsel %vm6622_vm12, %v11081_v15, %v6970_v16  ;;  %v7076_v48 = vsel %vm6619_vm11, %v7075_v30, %v11883_v40  ;;  %v11885_v16 = vld [vmem:[#allocation45_spill] sm:$0xff] }
 0x43d   :  { %v6496_v43 = vadd.f32 %v6264_v41, %v11002_v53  ;;  %v7077_v47 = vrot.slane %v11081_v15, 1  ;;  %v6942_v24 = vsel %vm6619_vm11, %v6941_v20, %v11884_v10  ;;  %v7048_v8 = vsel %vm6619_vm11, %v7047_v57, %v10973_v58 }
 0x43e   :  { %v11135_v27 = vmul.f32 %v10844_v61, %v6547_v46  ;;  %v11138_v56 = vmul.f32 %v10814_v59, %v6548_v55  ;;  %v6943_v30 = vsel %vm6622_vm12, %v11090_v32, %v6942_v24  ;;  %v7257_v53 = vrot.slane %v11885_v16, 5 }
 0x43f   :  { %v6526_v3 = vadd.f32 %v10780_v0, %v6496_v43  ;;  %v11145_v7 = vsel %vm6622_vm12, %v7077_v47, %v7076_v48  ;;  %v7049_v20 = vrot.slane %v11090_v32, 1  ;;  %v7154_v58 = vsel %vm6619_vm11, %v7153_v19, %v10976_v26 }
 0x440   :  { %v6624_v57 = vrot.slane %v11135_v27, 5  ;;  %v6733_v52 = vrot.slane %v11135_v27, 4  ;;  %v6838_v49 = vrot.slane %v11135_v27, 6  ;;  %v6642_v23 = vrot.slane %v11138_v56, 5 }
 0x441   :  { %v6550_v51 = vmax.f32 %v6526_v3, 0.0  ;;  %v6747_v42 = vrot.slane %v11138_v56, 4  ;;  %v6852_v39 = vrot.slane %v11138_v56, 6  ;;  %v6958_v11 = vrot.slane %v11138_v56, 7 }
 0x442   :  { %v6626_v5 = vsel %vm6625_vm13, %v6624_v57, %v6623_v9  ;;  %v6734_v38 = vsel %vm6625_vm13, %v6733_v52, %v6732_v63  ;;  %v6839_v26 = vsel %vm6625_vm13, %v6838_v49, %v6837_v2  ;;  %v11161_v19 = vsel %vm6625_vm13, %v6642_v23, %v6641_v54  ;;  %v6371_v9 = vpop.f32.mrf.mxu3 }
 0x443   :  { %v11164_v1 = vmul.f32 %v10844_v61, %v6550_v51  ;;  %v11167_v46 = vsel %vm6625_vm13, %v6747_v42, %v6746_v29  ;;  %v11170_v55 = vsel %vm6625_vm13, %v6852_v39, %v6851_v22  ;;  %v11173_v41 = vsel %vm6625_vm13, %v6958_v11, %v6957_v21 }
 0x444   :  { %v6944_v63 = vrot.slane %v11135_v27, 7  ;;  %v7050_v2 = vsel %vm6622_vm12, %v7049_v20, %v7048_v8  ;;  %v7155_v54 = vrot.slane %v11090_v32, 2  ;;  %v7157_v40 = vrot.slane %v11135_v27, 1 }
 0x445   :  { %v6217_v48 = vpop.f32.mrf.mxu2  ;;  %v6500_v43 = vadd.f32 %v6371_v9, %v11016_v62  ;;  %v6627_v29 = vrot.slane %v11164_v1, 4  ;;  %v6735_v22 = vrot.slane %v11164_v1, 3  ;;  %v6840_v47 = vrot.slane %v11164_v1, 5 }
 0x446   :  { %v6495_v21 = vadd.f32 %v6217_v48, %v10999_v34  ;;  %v6945_v10 = vsel %vm6625_vm13, %v6944_v63, %v6943_v30  ;;  %v6946_v24 = vrot.slane %v11164_v1, 6  ;;  %v7051_v8 = vsel %vm6625_vm13, %v11135_v27, %v7050_v2 }
 0x447   :  { %v6530_v3 = vadd.f32 %v10780_v0, %v6500_v43  ;;  %v6284_v20 = vpop.f32.mrf.mxu0  ;;  %v6304_v57 = vpop.f32.mrf.mxu1  ;;  %v11190_v62 = vsel %vm6628_vm14, %v6627_v29, %v6626_v5  ;;  %v11193_v52 = vsel %vm6628_vm14, %v6735_v22, %v6734_v38  ;;  %v11196_v49 = vsel %vm6628_vm14, %v6840_v47, %v6839_v26 }
 0x448   :  { %v6525_v34 = vadd.f32 %v10780_v0, %v6495_v21  ;;  %v6497_v30 = vadd.f32 %v6284_v20, %v11006_v60  ;;  %v6498_v23 = vadd.f32 %v6304_v57, %v11009_v17  ;;  %v11202_v51 = vsel %vm6628_vm14, %v6946_v24, %v6945_v10 }
 0x449   :  { %v6554_v42 = vmax.f32 %v6530_v3, 0.0  ;;  %v7052_v39 = vrot.slane %v11164_v1, 7  ;;  %v7156_v11 = vsel %vm6622_vm12, %v7155_v54, %v7154_v58  ;;  %v7061_v5 = vrot.slane %v11025_v12, 2  ;;  %v11886_v58 = vld [vmem:[#allocation10_spill] sm:$0xff] }
 0x44a   :  { %v6549_v38 = vmax.f32 %v6525_v34, 0.0  ;;  %v6527_v26 = vadd.f32 %v10780_v0, %v6497_v30  ;;  %v6528_v9 = vadd.f32 %v10780_v0, %v6498_v23  ;;  %v7158_v60 = vsel %vm6625_vm13, %v7157_v40, %v7156_v11 }
 0x44b   :  { %v11211_v17 = vmul.f32 %v10814_v59, %v6554_v42  ;;  %v11214_v63 = vsel %vm6628_vm14, %v7052_v39, %v7051_v8  ;;  %v11218_v2 = vsel %vm6628_vm14, %v11164_v1, %v7158_v60  ;;  %v11222_v54 = vsel %vm6619_vm11, %v7061_v5, %v11886_v58 }
 0x44c   :  { %v11225_v48 = vmul.f32 %v10842_v45, %v6549_v38  ;;  %v6551_v43 = vmax.f32 %v6527_v26, 0.0  ;;  %v6552_v29 = vmax.f32 %v6528_v9, 0.0  ;;  %v7063_v40 = vrot.slane %v11078_v33, 1 }
 0x44d   :  { %v6646_v22 = vrot.slane %v11211_v17, 3  ;;  %v6751_v47 = vrot.slane %v11211_v17, 2  ;;  %v6856_v21 = vrot.slane %v11211_v17, 4  ;;  %v6962_v10 = vrot.slane %v11211_v17, 5 }
 0x44e   :  { %v11233_v24 = vmul.f32 %v10814_v59, %v6551_v43  ;;  %v11236_v8 = vmul.f32 %v10842_v45, %v6552_v29  ;;  %v6351_v3 = vpop.f32.mrf.mxu2  ;;  %v6656_v20 = vrot.slane %v11225_v48, 5  ;;  %v6761_v57 = vrot.slane %v11225_v48, 4 }
 0x44f   :  { %v6499_v34 = vadd.f32 %v6351_v3, %v11013_v14  ;;  %v6391_v30 = vpop.f32.mrf.mxu0  ;;  %v6866_v23 = vrot.slane %v11225_v48, 6  ;;  %v6972_v42 = vrot.slane %v11225_v48, 7  ;;  %v7079_v39 = vsel %vm6625_vm13, %v11225_v48, %v11145_v7 }
 0x450   :  { %v6501_v11 = vadd.f32 %v6391_v30, %v11019_v6  ;;  %v6657_v5 = vsel %vm6625_vm13, %v6656_v20, %v11103_v18  ;;  %v6658_v38 = vrot.slane %v11236_v8, 4  ;;  %v6644_v26 = vrot.slane %v11233_v24, 4 }
 0x451   :  { %v6529_v14 = vadd.f32 %v10780_v0, %v6499_v34  ;;  %v6749_v9 = vrot.slane %v11233_v24, 3  ;;  %v6854_v60 = vrot.slane %v11233_v24, 5  ;;  %v6960_v58 = vrot.slane %v11233_v24, 6 }
 0x452   :  { %v6531_v43 = vadd.f32 %v10780_v0, %v6501_v11  ;;  %v6659_v7 = vsel %vm6628_vm14, %v6658_v38, %v6657_v5  ;;  %v6645_v6 = vsel %vm6628_vm14, %v6644_v26, %v11161_v19  ;;  %v6762_v18 = vsel %vm6625_vm13, %v6761_v57, %v11117_v4 }
 0x453   :  { %v6553_v29 = vmax.f32 %v6529_v14, 0.0  ;;  %v11262_v3 = vsel %vm6631_vm15, %v6646_v22, %v6645_v6  ;;  %v6750_v20 = vsel %vm6628_vm14, %v6749_v9, %v11167_v46  ;;  %v6855_v34 = vsel %vm6628_vm14, %v6854_v60, %v11170_v55 }
 0x454   :  { %v6555_v30 = vmax.f32 %v6531_v43, 0.0  ;;  %v11269_v11 = vsel %vm6631_vm15, %v6751_v47, %v6750_v20  ;;  %v11272_v5 = vsel %vm6631_vm15, %v6856_v21, %v6855_v34  ;;  %v6961_v4 = vsel %vm6628_vm14, %v6960_v58, %v11173_v41 }
 0x455   :  { %v11277_v19 = vmul.f32 %v10844_v61, %v6553_v29  ;;  %v6478_v22 = vpop.f32.mrf.mxu3  ;;  %v11280_v57 = vsel %vm6631_vm15, %v6962_v10, %v6961_v4  ;;  %v6763_v46 = vrot.slane %v11236_v8, 3  ;;  %v6867_v55 = vsel %vm6625_vm13, %v6866_v23, %v11120_v37 }
 0x456   :  { %v11286_v47 = vmul.f32 %v10842_v45, %v6555_v30  ;;  %v6504_v21 = vadd.f32 %v6478_v22, %v11031_v44  ;;  %v6868_v38 = vrot.slane %v11236_v8, 5  ;;  %v6973_v41 = vsel %vm6625_vm13, %v6972_v42, %v11124_v25 }
 0x457   :  { %v6438_v26 = vpop.f32.mrf.mxu1  ;;  %v6630_v10 = vrot.slane %v11277_v19, 3  ;;  %v6737_v14 = vrot.slane %v11277_v19, 2  ;;  %v6842_v9 = vrot.slane %v11277_v19, 4  ;;  %v6764_v37 = vsel %vm6628_vm14, %v6763_v46, %v6762_v18 }
 0x458   :  { %v6534_v23 = vadd.f32 %v10780_v0, %v6504_v21  ;;  %v6502_v60 = vadd.f32 %v6438_v26, %v11022_v13  ;;  %v6660_v44 = vrot.slane %v11286_v47, 3  ;;  %v6765_v58 = vrot.slane %v11286_v47, 2 }
 0x459   :  { %v6632_v25 = vsel %vm6631_vm15, %v6630_v10, %v11190_v62  ;;  %v6738_v42 = vsel %vm6631_vm15, %v6737_v14, %v11193_v52  ;;  %v6843_v43 = vsel %vm6631_vm15, %v6842_v9, %v11196_v49  ;;  %v6869_v6 = vsel %vm6628_vm14, %v6868_v38, %v6867_v55 }
 0x45a   :  { %v6558_v18 = vmax.f32 %v6534_v23, 0.0  ;;  %v6532_v29 = vadd.f32 %v10780_v0, %v6502_v60  ;;  %v6661_v13 = vsel %vm6631_vm15, %v6660_v44, %v6659_v7  ;;  %v6766_v20 = vsel %vm6631_vm15, %v6765_v58, %v6764_v37 }
 0x45b   :  { %v6870_v34 = vrot.slane %v11286_v47, 4  ;;  %v6974_v30 = vrot.slane %v11236_v8, 6  ;;  %v6976_v62 = vrot.slane %v11286_v47, 5  ;;  %v7080_v52 = vrot.slane %v11236_v8, 7 }
 0x45c   :  { %v11315_v4 = vmul.f32 %v10842_v45, %v6558_v18  ;;  %v6556_v49 = vmax.f32 %v6532_v29, 0.0  ;;  %v7082_v22 = vrot.slane %v11286_v47, 6  ;;  %v6948_v46 = vrot.slane %v11277_v19, 5 }
 0x45d   :  { %v6458_v55 = vpop.f32.mrf.mxu2  ;;  %v6871_v7 = vsel %vm6631_vm15, %v6870_v34, %v6869_v6  ;;  %v6975_v21 = vsel %vm6628_vm14, %v6974_v30, %v6973_v41  ;;  %v7081_v38 = vsel %vm6628_vm14, %v7080_v52, %v7079_v39  ;;  %v7054_v26 = vrot.slane %v11277_v19, 6 }
 0x45e   :  { %v11324_v10 = vmul.f32 %v10844_v61, %v6556_v49  ;;  %v6503_v45 = vadd.f32 %v6458_v55, %v11028_v28  ;;  %v6662_v14 = vrot.slane %v11315_v4, 2  ;;  %v6767_v9 = vrot.slane %v11315_v4, 1 }
 0x45f   :  { %v6872_v37 = vrot.slane %v11315_v4, 3  ;;  %v6977_v23 = vsel %vm6631_vm15, %v6976_v62, %v6975_v21  ;;  %v6978_v60 = vrot.slane %v11315_v4, 4  ;;  %v7083_v41 = vsel %vm6631_vm15, %v7082_v22, %v7081_v38 }
 0x460   :  { %v6533_v39 = vadd.f32 %v10780_v0, %v6503_v45  ;;  %v6663_v44 = vsel %vm6634_vm0, %v6662_v14, %v6661_v13  ;;  %v6633_v61 = vrot.slane %v11324_v10, 2  ;;  %v6739_v28 = vrot.slane %v11324_v10, 1 }
 0x461   :  { %6722 = vmatpush.xpose.msra.mxu2 %v6663_v44  ;;  %v6844_v58 = vrot.slane %v11324_v10, 3  ;;  %v11339_v6 = vsel %vm6634_vm0, %v6767_v9, %v6766_v20  ;;  %v11342_v18 = vsel %vm6634_vm0, %v6872_v37, %v6871_v7  ;;  %v11345_v29 = vsel %vm6634_vm0, %v6978_v60, %v6977_v23 }
 0x462   :  { %v6557_v34 = vmax.f32 %v6533_v39, 0.0  ;;  %v6635_v0 = vsel %vm6634_vm0, %v6633_v61, %v6632_v25  ;;  %v6740_v13 = vsel %vm6634_vm0, %v6739_v28, %v6738_v42  ;;  %v7084_v30 = vrot.slane %v11315_v4, 5  ;;  %v11887_v61 = vld [vmem:[#allocation40_spill] sm:$0xff] }
 0x463   :  { %6682 = vmatpush.xpose.msra.mxu0 %v6635_v0  ;;  %6787 = vmatpush.xpose.msra.mxu3 %v6740_v13  ;;  %v6845_v62 = vsel %vm6634_vm0, %v6844_v58, %v6843_v43  ;;  %v6949_v20 = vsel %vm6631_vm15, %v6948_v46, %v11202_v51  ;;  %v6950_v52 = vrot.slane %v11324_v10, 4  ;;  %v7055_v49 = vsel %vm6631_vm15, %v7054_v26, %v11214_v63 }
 0x464   :  { %v11357_v22 = vmul.f32 %v10814_v59, %v6557_v34  ;;  %v11360_v25 = vsel %vm6634_vm0, %v7084_v30, %v7083_v41  ;;  %v7056_v42 = vrot.slane %v11324_v10, 5  ;;  %v7160_v55 = vrot.slane %v11277_v19, 7  ;;  %6723 = vmatmul.f32.vlgmr.msra.gmra.mxu2 %v6663_v44  ;;  %v11888_v34 = vld [vmem:[#allocation64_spill] sm:$0xff] }
 0x465   :  { %6892 = vmatpush.xpose.msrb.mxu2 %v6845_v62  ;;  %v11365_v43 = vsel %vm6634_vm0, %v6950_v52, %v6949_v20  ;;  %v7162_v51 = vrot.slane %v11324_v10, 6  ;;  %v7064_v59 = vsel %vm6622_vm12, %v7063_v40, %v11222_v54  ;;  %v7066_v63 = vrot.slane %v11233_v24, 7 }
 0x466   :  { %6683 = vmatmul.f32.vlgmr.msra.gmra.mxu0 %v6635_v0  ;;  %6788 = vmatmul.f32.vlgmr.msra.gmra.mxu3 %v6740_v13  ;;  %v6648_v46 = vrot.slane %v11357_v22, 2  ;;  %v6753_v7 = vrot.slane %v11357_v22, 1  ;;  %v6858_v21 = vrot.slane %v11357_v22, 3  ;;  %v6964_v38 = vrot.slane %v11357_v22, 4 }
 0x467   :  { %v11378_v26 = vsel %vm6634_vm0, %v7056_v42, %v7055_v49  ;;  %v7161_v45 = vsel %vm6631_vm15, %v7160_v55, %v11218_v2  ;;  %v7065_v54 = vsel %vm6625_vm13, %v11138_v56, %v7064_v59  ;;  %v7068_v40 = vrot.slane %v11211_v17, 6 }
 0x468   :  { %v6649_v14 = vsel %vm6634_vm0, %v6648_v46, %v11262_v3  ;;  %v6754_v9 = vsel %vm6634_vm0, %v6753_v7, %v11269_v11  ;;  %v6859_v37 = vsel %vm6634_vm0, %v6858_v21, %v11272_v5  ;;  %v11393_v23 = vsel %vm6634_vm0, %v6964_v38, %v11280_v57 }
 0x469   :  { %6702 = vmatpush.xpose.msra.mxu1 %v6649_v14  ;;  %6807 = vmatpush.xpose.msrb.mxu0 %v6754_v9  ;;  %v11396_v2 = vsel %vm6634_vm0, %v7162_v51, %v7161_v45  ;;  %v7067_v60 = vsel %vm6628_vm14, %v7066_v63, %v7065_v54  ;;  %v7070_v41 = vrot.slane %v11357_v22, 5  ;;  %v7258_v3 = vsel %vm6616_vm10, %v7257_v53, %v7256_v31 }
 0x46a   :  { %6912 = vmatpush.xpose.msrb.mxu3 %v6859_v37  ;;  %7018 = vmatpush.xpose.msra.mxu2 %v11393_v23  ;;  %v7069_v11 = vsel %vm6631_vm15, %v7068_v40, %v7067_v60  ;;  %v7259_v5 = vrot.slane %v11034_v36, 4  ;;  %v7261_v57 = vrot.slane %v11090_v32, 3  ;;  %v7263_v39 = vrot.slane %v11135_v27, 2 }
 0x46b   :  { %v11413_v44 = vsel %vm6634_vm0, %v7070_v41, %v7069_v11  ;;  %v7265_v31 = vrot.slane %v11164_v1, 1  ;;  %v7268_v53 = vrot.slane %v11324_v10, 7  ;;  %v7164_v28 = vrot.slane %v11887_v61, 5 }
 0x46c   :  { %6703 = vmatmul.f32.vlgmr.msra.gmra.mxu1 %v6649_v14  ;;  %v7260_v58 = vsel %vm6619_vm11, %v7259_v5, %v7258_v3  ;;  %v7165_v0 = vrot.slane %v11888_v34, 4  ;;  %v7167_v13 = vrot.slane %v11025_v12, 3  ;;  %v7169_v30 = vrot.slane %v11078_v33, 2  ;;  %6893 = vmatmul.f32.vlgmr.msrb.gmra.mxu2 %v6845_v62  ;;  %v11889_v5 = vld [vmem:[#allocation16_spill] sm:$0xff] }
 0x46d   :  { %6827 = vmatpush.xpose.msrb.mxu1 %v11339_v6  ;;  %6932 = vmatpush.xpose.msra.mxu0 %v11342_v18  ;;  %v7262_v20 = vsel %vm6622_vm12, %v7261_v57, %v7260_v58  ;;  %v7171_v52 = vrot.slane %v11138_v56, 1  ;;  %v7174_v49 = vrot.slane %v11211_v17, 7  ;;  %v7176_v42 = vrot.slane %v11357_v22, 6 }
 0x46e   :  { %7038 = vmatpush.xpose.msra.mxu3 %v11345_v29  ;;  %7144 = vmatpush.xpose.msrb.mxu2 %v11360_v25  ;;  %v7264_v55 = vsel %vm6625_vm13, %v7263_v39, %v7262_v20  ;;  %v7166_v51 = vsel %vm6616_vm10, %v7165_v0, %v7164_v28  ;;  %v7270_v59 = vrot.slane %v11887_v61, 6  ;;  %v7271_v62 = vrot.slane %v11888_v34, 5 }
 0x46f   :  { %6808 = vmatmul.f32.vlgmr.msrb.gmra.mxu0 %v6754_v9  ;;  %6913 = vmatmul.f32.vlgmr.msrb.gmra.mxu3 %v6859_v37  ;;  %v7266_v63 = vsel %vm6628_vm14, %v7265_v31, %v7264_v55  ;;  %v7168_v46 = vsel %vm6619_vm11, %v7167_v13, %v7166_v51  ;;  %v7273_v7 = vrot.slane %v11025_v12, 4  ;;  %v7275_v21 = vrot.slane %v11078_v33, 3 }
 0x470   :  { %v7267_v38 = vsel %vm6631_vm15, %v11277_v19, %v7266_v63  ;;  %v7170_v45 = vsel %vm6622_vm12, %v7169_v30, %v7168_v46  ;;  %v7272_v54 = vsel %vm6616_vm10, %v7271_v62, %v7270_v59  ;;  %v7277_v40 = vrot.slane %v11138_v56, 2 }
 0x471   :  { %6998 = vmatpush.xpose.msra.mxu1 %v11365_v43  ;;  %7104 = vmatpush.xpose.msrb.mxu0 %v11378_v26  ;;  %v11445_v14 = vsel %vm6634_vm0, %v7268_v53, %v7267_v38  ;;  %v7172_v9 = vsel %vm6625_vm13, %v7171_v52, %v7170_v45  ;;  %v7274_v37 = vsel %vm6619_vm11, %v7273_v7, %v7272_v54  ;;  %v7279_v60 = vrot.slane %v11233_v24, 1  ;;  %v11890_v53 = vld [vmem:[#allocation41_spill] sm:$0xff] }
 0x472   :  { %7210 = vmatpush.xpose.msrb.mxu3 %v11396_v2  ;;  %v7173_v41 = vsel %vm6628_vm14, %v11233_v24, %v7172_v9  ;;  %v7276_v3 = vsel %vm6622_vm12, %v7275_v21, %v7274_v37  ;;  %v7282_v11 = vrot.slane %v11357_v22, 7  ;;  %v7178_v57 = vrot.slane %v11889_v5, 5 }
 0x473   :  { %v7175_v39 = vsel %vm6631_vm15, %v7174_v49, %v7173_v41  ;;  %v7278_v31 = vsel %vm6625_vm13, %v7277_v40, %v7276_v3  ;;  %v7179_v28 = vrot.slane %v11890_v53, 4  ;;  %v7181_v58 = vrot.slane %v11037_v35, 3 }
 0x474   :  { %6828 = vmatmul.f32.vlgmr.msrb.gmra.mxu1 %v11339_v6  ;;  %v11461_v0 = vsel %vm6634_vm0, %v7176_v42, %v7175_v39  ;;  %v7280_v13 = vsel %vm6628_vm14, %v7279_v60, %v7278_v31  ;;  %v7183_v30 = vrot.slane %v11081_v15, 2  ;;  %v7185_v20 = vrot.slane %v11225_v48, 1  ;;  %7019 = vmatmul.f32.vlgmr.msra.gmra.mxu2 %v11393_v23 }
 0x475   :  { %7124 = vmatpush.xpose.msrb.mxu1 %v11413_v44  ;;  %v7281_v52 = vsel %vm6631_vm15, %v11211_v17, %v7280_v13  ;;  %v7180_v49 = vsel %vm6616_vm10, %v7179_v28, %v7178_v57  ;;  %v7188_v6 = vrot.slane %v11286_v47, 7  ;;  %v7190_v42 = vrot.slane %v11315_v4, 6  ;;  %7316 = vmatpush.xpose.msra.mxu2 %v11445_v14 }
 0x476   :  { %v11476_v55 = vsel %vm6634_vm0, %v7282_v11, %v7281_v52  ;;  %v7182_v23 = vsel %vm6619_vm11, %v7181_v58, %v7180_v49  ;;  %v7376_v51 = vrot.slane %v11887_v61, 7  ;;  %v7377_v59 = vrot.slane %v11888_v34, 6 }
 0x477   :  { %6933 = vmatmul.f32.vlgmr.msra.gmra.mxu0 %v11342_v18  ;;  %7039 = vmatmul.f32.vlgmr.msra.gmra.mxu3 %v11345_v29  ;;  %v7184_v62 = vsel %vm6622_vm12, %v7183_v30, %v7182_v23  ;;  %v7379_v63 = vrot.slane %v11025_v12, 5  ;;  %v7381_v46 = vrot.slane %v11078_v33, 4  ;;  %v7383_v18 = vrot.slane %v11138_v56, 3 }
 0x478   :  { %7230 = vmatpush.xpose.msra.mxu0 %v11461_v0  ;;  %7336 = vmatpush.xpose.msra.mxu3 %v11476_v55  ;;  %v7186_v7 = vsel %vm6625_vm13, %v7185_v20, %v7184_v62  ;;  %v7378_v61 = vsel %vm6616_vm10, %v7377_v59, %v7376_v51  ;;  %v7385_v34 = vrot.slane %v11233_v24, 2  ;;  %v7387_v29 = vrot.slane %v11211_v17, 1 }
 0x479   :  { %v7187_v21 = vsel %vm6628_vm14, %v11236_v8, %v7186_v7  ;;  %v7380_v38 = vsel %vm6619_vm11, %v7379_v63, %v7378_v61  ;;  %v7284_v12 = vrot.slane %v11889_v5, 6  ;;  %v7285_v33 = vrot.slane %v11890_v53, 5 }
 0x47a   :  { %v7189_v56 = vsel %vm6631_vm15, %v7188_v6, %v7187_v21  ;;  %v7382_v45 = vsel %vm6622_vm12, %v7381_v46, %v7380_v38  ;;  %v7287_v54 = vrot.slane %v11037_v35, 4  ;;  %v7289_v40 = vrot.slane %v11081_v15, 3 }
 0x47b   :  { %v7191_v24 = vsel %vm6634_vm0, %v7190_v42, %v7189_v56  ;;  %v7384_v17 = vsel %vm6625_vm13, %v7383_v18, %v7382_v45  ;;  %v7286_v9 = vsel %vm6616_vm10, %v7285_v33, %v7284_v12  ;;  %v7291_v37 = vrot.slane %v11225_v48, 2 }
 0x47c   :  { %6999 = vmatmul.f32.vlgmr.msra.gmra.mxu1 %v11365_v43  ;;  %v7386_v60 = vsel %vm6628_vm14, %v7385_v34, %v7384_v17  ;;  %v7288_v41 = vsel %vm6619_vm11, %v7287_v54, %v7286_v9  ;;  %v7293_v3 = vrot.slane %v11236_v8, 1  ;;  %v7296_v11 = vrot.slane %v11315_v4, 7  ;;  %7145 = vmatmul.f32.vlgmr.msrb.gmra.mxu2 %v11360_v25 }
 0x47d   :  { %7250 = vmatpush.xpose.msra.mxu1 %v7191_v24  ;;  %v7388_v57 = vsel %vm6631_vm15, %v7387_v29, %v7386_v60  ;;  %v7290_v39 = vsel %vm6622_vm12, %v7289_v40, %v7288_v41  ;;  %v7390_v31 = vrot.slane %v11889_v5, 7  ;;  %v7391_v28 = vrot.slane %v11890_v53, 6 }
 0x47e   :  { %v7389_v43 = vsel %vm6634_vm0, %v11357_v22, %v7388_v57  ;;  %v7292_v58 = vsel %vm6625_vm13, %v7291_v37, %v7290_v39  ;;  %v7393_v13 = vrot.slane %v11037_v35, 5  ;;  %v7395_v25 = vrot.slane %v11081_v15, 4 }
 0x47f   :  { %7105 = vmatmul.f32.vlgmr.msrb.gmra.mxu0 %v11378_v26  ;;  %7442 = vmatpush.xpose.msrb.mxu2 %v7389_v43  ;;  %v7294_v30 = vsel %vm6628_vm14, %v7293_v3, %v7292_v58  ;;  %v7392_v5 = vsel %vm6616_vm10, %v7391_v28, %v7390_v31  ;;  %v7397_v53 = vrot.slane %v11225_v48, 3  ;;  %v7399_v20 = vrot.slane %v11236_v8, 2 }
 0x480   :  { %7211 = vmatmul.f32.vlgmr.msrb.gmra.mxu3 %v11396_v2  ;;  %v7295_v22 = vsel %vm6631_vm15, %v11286_v47, %v7294_v30  ;;  %v7394_v26 = vsel %vm6619_vm11, %v7393_v13, %v7392_v5  ;;  %v7401_v35 = vrot.slane %v11286_v47, 1  ;;  %v7362_v15 = vrot.slane %v10877_v50, 7 }
 0x481   :  { %v7297_v52 = vsel %vm6634_vm0, %v7296_v11, %v7295_v22  ;;  %v7396_v2 = vsel %vm6622_vm12, %v7395_v25, %v7394_v26  ;;  %v7363_v49 = vrot.slane %v11885_v16, 6  ;;  %v7365_v6 = vrot.slane %v11034_v36, 5 }
 0x482   :  { %7356 = vmatpush.xpose.msrb.mxu0 %v7297_v52  ;;  %v7398_v48 = vsel %vm6625_vm13, %v7397_v53, %v7396_v2  ;;  %v7367_v8 = vrot.slane %v11090_v32, 4  ;;  %v7369_v42 = vrot.slane %v11135_v27, 3  ;;  %v7371_v50 = vrot.slane %v11164_v1, 2 }
 0x483   :  { %v7400_v23 = vsel %vm6628_vm14, %v7399_v20, %v7398_v48  ;;  %v7364_v47 = vsel %vm6616_vm10, %v7363_v49, %v7362_v15  ;;  %v7373_v36 = vrot.slane %v11277_v19, 1  ;;  %v7468_v30 = vlaneseq }
 0x484   :  { %v7402_v51 = vsel %vm6631_vm15, %v7401_v35, %v7400_v23  ;;  %7125 = vmatmul.f32.vlgmr.msrb.gmra.mxu1 %v11413_v44  ;;  %v7366_v16 = vsel %vm6619_vm11, %v7365_v6, %v7364_v47  ;;  %7317 = vmatmul.f32.vlgmr.msra.gmra.mxu2 %v11445_v14 }
 0x485   :  { %v7403_v59 = vsel %vm6634_vm0, %v11315_v4, %v7402_v51  ;;  %v7368_v32 = vsel %vm6622_vm12, %v7367_v8, %v7366_v16  ;;  %v11556_v35 = vshrl.u32 %v7468_v30, 7  ;;  %v11558_v15 = vand.u32 127, %v7468_v30 }
 0x486   :  { %7462 = vmatpush.xpose.msrb.mxu3 %v7403_v59  ;;  %v7370_v27 = vsel %vm6625_vm13, %v7369_v42, %v7368_v32 }
 0x487   :  { %7231 = vmatmul.f32.vlgmr.msra.gmra.mxu0 %v11461_v0  ;;  %v7372_v1 = vsel %vm6628_vm14, %v7371_v50, %v7370_v27  ;;  %vm7472_vm1 = vcmp.eq.s32.totalorder %v11556_v35, %v11558_v15 }
 0x488   :  { %7337 = vmatmul.f32.vlgmr.msra.gmra.mxu3 %v11476_v55  ;;  %v7374_v44 = vsel %vm6631_vm15, %v7373_v36, %v7372_v1 }
 0x489   :  { %v7375_v19 = vsel %vm6634_vm0, %v11324_v10, %v7374_v44 }
 0x48a   :  { %7422 = vmatpush.xpose.msrb.mxu1 %v7375_v19 }
 0x48c   :  { %7251 = vmatmul.f32.vlgmr.msra.gmra.mxu1 %v7191_v24  ;;  %7443 = vmatmul.f32.vlgmr.msrb.gmra.mxu2 %v7389_v43 }
 0x48f   :  { %7357 = vmatmul.f32.vlgmr.msrb.gmra.mxu0 %v7297_v52 }
 0x490   :  { %7463 = vmatmul.f32.vlgmr.msrb.gmra.mxu3 %v7403_v59 }
 0x494   :  { %7423 = vmatmul.f32.vlgmr.msrb.gmra.mxu1 %v7375_v19 }
 0x4e3   :  { %v6684_v4 = vpop.f32.mrf.mxu0 }
 0x4e7   :  { %v6724_v14 = vpop.f32.mrf.mxu2 }
 0x4e9   :  { %v6704_v62 = vpop.f32.mrf.mxu1  ;;  %v6789_v63 = vpop.f32.mrf.mxu3 }
 0x4ea   :  { %v6705_v61 = vadd.f32 %v6704_v62, %v6684_v4 }
 0x4ec   :  { %v6809_v0 = vpop.f32.mrf.mxu0  ;;  %v6725_v38 = vadd.f32 %v6724_v14, %v6705_v61 }
 0x4ee   :  { %v6790_v12 = vadd.f32 %v6789_v63, %v6725_v38 }
 0x4ef   :  { %v6894_v46 = vpop.f32.mrf.mxu2 }
 0x4f0   :  { %v6810_v24 = vadd.f32 %v6809_v0, %v6790_v12 }
 0x4f1   :  { %v6829_v18 = vpop.f32.mrf.mxu1 }
 0x4f2   :  { %v6914_v7 = vpop.f32.mrf.mxu3  ;;  %v6830_v60 = vadd.f32 %v6829_v18, %v6810_v24 }
 0x4f3   :  { %v6915_v45 = vadd.f32 %v6914_v7, %v6894_v46 }
 0x4f4   :  { %v6934_v55 = vpop.f32.mrf.mxu0 }
 0x4f5   :  { %v6935_v9 = vadd.f32 %v6934_v55, %v6915_v45 }
 0x4f7   :  { %v7020_v34 = vpop.f32.mrf.mxu2  ;;  %v6937_v57 = vadd.f32 %v6935_v9, %v6830_v60 }
 0x4f9   :  { %v7000_v29 = vpop.f32.mrf.mxu1 }
 0x4fa   :  { %v7040_v21 = vpop.f32.mrf.mxu3  ;;  %v7021_v17 = vadd.f32 %v7020_v34, %v7000_v29 }
 0x4fc   :  { %v7106_v10 = vpop.f32.mrf.mxu0  ;;  %v7041_v41 = vadd.f32 %v7040_v21, %v7021_v17  ;;  %v8115_v21 = vmov 42.0  }
 0x4fe   :  { %v7043_v43 = vadd.f32 %v7041_v41, %v6937_v57  ;;  %v8116_v41 = vmov 6.0  }
 0x4ff   :  { %v7146_v33 = vpop.f32.mrf.mxu2 }
 0x501   :  { %v7126_v56 = vpop.f32.mrf.mxu1 }
 0x502   :  { %v7127_v37 = vadd.f32 %v7126_v56, %v7106_v10 }
 0x503   :  { %v7212_v54 = vpop.f32.mrf.mxu3 }
 0x504   :  { %v7232_v40 = vpop.f32.mrf.mxu0  ;;  %v7147_v39 = vadd.f32 %v7146_v33, %v7127_v37 }
 0x505   :  { %v7233_v31 = vadd.f32 %v7232_v40, %v7212_v54 }
 0x506   :  { %v7149_v5 = vadd.f32 %v7147_v39, %v7043_v43 }
 0x507   :  { %v7318_v3 = vpop.f32.mrf.mxu2 }
 0x509   :  { %v7252_v11 = vpop.f32.mrf.mxu1 }
 0x50a   :  { %v7253_v58 = vadd.f32 %v7252_v11, %v7233_v31 }
 0x50b   :  { %v7338_v28 = vpop.f32.mrf.mxu3 }
 0x50c   :  { %v7339_v13 = vadd.f32 %v7338_v28, %v7318_v3  ;;  %v7358_v25 = vpop.f32.mrf.mxu0  ;;  %v7255_v53 = vadd.f32 %v7253_v58, %v7149_v5 }
 0x50e   :  { %v7359_v20 = vadd.f32 %v7358_v25, %v7339_v13 }
 0x50f   :  { %v7444_v22 = vpop.f32.mrf.mxu2 }
 0x510   :  { %v7361_v49 = vadd.f32 %v7359_v20, %v7255_v53 }
 0x511   :  { %v7424_v26 = vpop.f32.mrf.mxu1 }
 0x512   :  { %v7445_v52 = vadd.f32 %v7444_v22, %v7424_v26 }
 0x513   :  { %v7464_v2 = vpop.f32.mrf.mxu3 }
 0x514   :  { %v7465_v6 = vadd.f32 %v7464_v2, %v7445_v52 }
 0x516   :  { %v7467_v48 = vadd.f32 %v7465_v6, %v7361_v49 }
 0x518   :  { %v7473_v8 = vsel %vm7472_vm1, %v7467_v48, 0.0  ;;  %v7485_v32 = vmul.f32 2.0, %v7467_v48 }
 0x519   :  { %v7475_v42 = vsel %vm7474_vm2, %v7473_v8, 0.0 }
 0x51a   :  { %7476 = vadd.xlane.f32.xlu0 %v7475_v42  ;;  %v7478_v23 = vrot.slane %v7475_v42, 4 }
 0x51c   :  { %v7479_v47 = vadd.f32 %v7478_v23, %v7475_v42 }
 0x51e   :  { %v7480_v50 = vrot.slane %v7479_v47, 2 }
 0x520   :  { %v7481_v51 = vadd.f32 %v7480_v50, %v7479_v47 }
 0x522   :  { %v7482_v16 = vrot.slane %v7481_v51, 1 }
 0x524   :  { %v7483_v36 = vadd.f32 %v7482_v16, %v7481_v51 }
 0x58d   :  { %v7477_v59 = vpop.xlane.xlu0 %7476 }
 0x58e   :  { %v7484_v27 = vadd.f32 %v7483_v36, %v7477_v59 }
 0x590   :  { %v7486_v1 = vsub.f32 %v7484_v27, %v7485_v32 }
 0x592   :  { %v7487_v44 = vmax.f32 %v7486_v1, 0.0 }
 0x594   :  { %v7488_v19 = vsel %vm7472_vm1, 0.0, %v7487_v44 }
 0x595   :  { %v7489_v4 = vadd.f32 1e-12, %v7488_v19 }
 0x597   :  { %8073 = vrsqrt.f32 %v7489_v4  ;;  %vm7497_vm3 = vcmp.eq.f32.partialorder %v7489_v4, inf  ;;  %v7500_v55 = vand.u32 2147483648, %v7489_v4  ;;  %vm7499_vm4 = vcmp.eq.f32.partialorder %v7489_v4, 0.0 }
 0x598   :  { %8075 = vrcp.f32 %v8115_v21 }
 0x599   :  { %8077 = vrcp.f32 %v8116_v41 }
 0x59d   :  { %v8074_v14 = vpop.eup %8073 }
 0x59e   :  { %v7491_v62 = vmul.f32 %v8074_v14, %v7489_v4  ;;  %v8076_v10 = vpop.eup %8075 }
 0x59f   :  { %v7528_v38 = vmul.f32 42.0, %v8076_v10  ;;  %vm7532_vm5 = vweird.f32 %v8076_v10  ;;  %v8078_v11 = vpop.eup %8077 }
 0x5a0   :  { %v7492_v63 = vmul.f32 %v8074_v14, %v7491_v62  ;;  %v7510_v39 = vmul.f32 6.0, %v8078_v11  ;;  %vm7514_vm6 = vweird.f32 %v8078_v11 }
 0x5a1   :  { %v7529_v12 = vsub.f32 1.0, %v7528_v38 }
 0x5a2   :  { %v7493_v0 = vmul.f32 0.5, %v7492_v63  ;;  %v7511_v28 = vsub.f32 1.0, %v7510_v39 }
 0x5a3   :  { %v7530_v54 = vmul.f32 %v8076_v10, %v7529_v12 }
 0x5a4   :  { %v7494_v46 = vsub.f32 1.5, %v7493_v0  ;;  %v7512_v58 = vmul.f32 %v8078_v11, %v7511_v28 }
 0x5a5   :  { %v7531_v17 = vadd.f32 %v8076_v10, %v7530_v54 }
 0x5a6   :  { %v7495_v18 = vmul.f32 %v8074_v14, %v7494_v46  ;;  %v7513_v25 = vadd.f32 %v8078_v11, %v7512_v58 }
 0x5a7   :  { %v7533_v60 = vsel %vm7532_vm5, %v8076_v10, %v7531_v17 }
 0x5a8   :  { %v7496_v7 = vmul.f32 %v7495_v18, %v7489_v4  ;;  %v7515_v5 = vsel %vm7514_vm6, %v8078_v11, %v7513_v25 }
 0x5aa   :  { %v7498_v61 = vsel %vm7497_vm3, %v7489_v4, %v7496_v7 }
 0x5ab   :  { %v7501_v34 = vsel %vm7499_vm4, %v7500_v55, %v7498_v61 }
 0x5ac   :  { %v7502_v29 = vsel %vm7474_vm2, %v7501_v34, 0.0 }
 0x5ad   :  { %7517 = vadd.xlane.f32.xlu1 %v7502_v29  ;;  %v7503_v3 = vrot.slane %v7502_v29, 4 }
 0x5af   :  { %v7504_v57 = vadd.f32 %v7503_v3, %v7502_v29 }
 0x5b1   :  { %v7505_v31 = vrot.slane %v7504_v57, 2 }
 0x5b3   :  { %v7506_v43 = vadd.f32 %v7505_v31, %v7504_v57 }
 0x5b5   :  { %v7507_v13 = vrot.slane %v7506_v43, 1 }
 0x5b7   :  { %v7508_v30 = vadd.f32 %v7507_v13, %v7506_v43 }
 0x5b9   :  { %v7516_v53 = vmul.f32 %v7515_v5, %v7508_v30 }
 0x5bb   :  { %v7536_v22 = vsub.f32 %v7501_v34, %v7516_v53 }
 0x620   :  { %v7518_v33 = vpop.xlane.xlu1 %7517 }
 0x621   :  { %v7520_v56 = vrot.slane %v7518_v33, 4  ;;  %v7519_v20 = vmul.f32 %v7518_v33, %v7515_v5 }
 0x623   :  { %v7521_v45 = vadd.f32 %v7520_v56, %v7518_v33  ;;  %v7537_v26 = vsub.f32 %v7536_v22, %v7519_v20 }
 0x625   :  { %v7522_v40 = vrot.slane %v7521_v45, 2 }
 0x627   :  { %v7523_v24 = vadd.f32 %v7522_v40, %v7521_v45 }
 0x629   :  { %v7524_v9 = vrot.slane %v7523_v24, 1 }
 0x62b   :  { %v7525_v37 = vadd.f32 %v7524_v9, %v7523_v24 }
 0x62d   :  { %8054 = vpush %v7525_v37 }
 0x62e   :  { %8056 = vpush %v7533_v60 }
 0x65e   :  { %s8055_s4 = spop %8054 }
 0x65f   :  { %s8057_s18 = spop %8056 }
 0x660   :  { %s7535_s19 = smul.f32 %s8057_s18, %s8055_s4 }
 0x662   :  { %v7538_v52 = vstv %s7535_s19 }
 0x663   :  { %v7539_v2 = vadd.f32 %v7538_v52, %v7537_v26 }
 0x665   :  { %v7540_v49 = vsel %vm7472_vm1, 0.0, %v7539_v2 }
 0x666   :  { %7541 = vst.msk [vmem:[#allocation2] sm:$0xff] %vm7474_vm2, %v7540_v49 }
 0x667   :  { %7552 = dma.vmem_to_hbm [thread:$0]  %s7548_s21, 128, %s7550_s2, [#allocation3]  }
 0x668   :  { %8103 = dma.done.wait [#allocation3], 128  }
 0x669   :  { %8104 = vsyncadd [#allocation3], 4294967168 }
 0x66a   :  { %7557 = vsyncpa [#allocation3], 1 }

</bundles_post_ra>
